<compile_context>
chip_gen: v6e
topology: v6e:2x2x1
jax: 0.10.0
libtpu: 0.0.40
codegen_flags: <defaults>
</compile_context>

<pallas_src>
import functools
import math

import jax
import jax.numpy as jnp
from jax.experimental import pallas as pl
from jax.experimental.pallas import tpu as pltpu


_MATMUL_DTYPE = jnp.bfloat16            # MXU operand dtype (f32 accumulation everywhere)
_ROW_TILE = 256                         # target rows per grid step for row-tiled kernels
_VMEM_LIMIT_BYTES = 48 * 1024 * 1024    # explicit scoped-VMEM limit (fits v7x's 64 MiB)
_LN_EPS = 1e-5


def _round_up(x, m):
    return (x + m - 1) // m * m


def _row_tiles(n):
    """Even row split: tile size (multiple of 8) and padded row count (= tile * n_tiles)."""
    n = max(n, 1)
    nt = -(-n // _ROW_TILE)
    tm = _round_up(-(-n // nt), 8)
    return tm, tm * nt


def _cparams(*semantics):
    return pltpu.CompilerParams(dimension_semantics=tuple(semantics),
                                vmem_limit_bytes=_VMEM_LIMIT_BYTES)


# --- probe whether this jax supports single-buffered (Buffered(1)) constant blocks ------

def _probe_kernel(x_ref, o_ref):
    o_ref[...] = x_ref[...] * 2.0


def _probe_buffered_weights():
    try:
        spec = pl.BlockSpec((8, 128), lambda i: (0, 0), pipeline_mode=pl.Buffered(1))
        f = pl.pallas_call(
            _probe_kernel,
            grid=(1,),
            in_specs=[spec],
            out_specs=pl.BlockSpec((8, 128), lambda i: (0, 0)),
            out_shape=jax.ShapeDtypeStruct((8, 128), jnp.float32),
        )
        jax.block_until_ready(f(jnp.ones((8, 128), jnp.float32)))
        return True
    except Exception:
        return False


_WEIGHT_BUFFERED = _probe_buffered_weights()


def _const_spec(shape):
    """BlockSpec for a grid-invariant (weight/bias) operand; single-buffered if supported."""
    idx = lambda *_: (0,) * len(shape)
    if _WEIGHT_BUFFERED:
        return pl.BlockSpec(shape, idx, pipeline_mode=pl.Buffered(1))
    return pl.BlockSpec(shape, idx)


# ----------------------------- Pallas kernels ------------------------------

def _linear_kernel(x_ref, w_ref, b_ref, o_ref):
    x = x_ref[...].astype(_MATMUL_DTYPE)
    w = w_ref[...].astype(_MATMUL_DTYPE)        # no-op: weights already bf16 in HBM
    o_ref[...] = jnp.dot(x, w, preferred_element_type=jnp.float32) + b_ref[...]


def linear(x2d, w, b):
    """x2d: [N, Din] f32, w: [Din, Dout] bf16, b: [1, Dout] f32 -> [N, Dout] f32."""
    n, din = x2d.shape
    dout = w.shape[1]
    tm, n_pad = _row_tiles(n)
    if n_pad != n:
        x2d = jnp.pad(x2d, ((0, n_pad - n), (0, 0)))
    cost = pl.CostEstimate(
        flops=2 * n_pad * din * dout,
        transcendentals=0,
        bytes_accessed=(x2d.dtype.itemsize * n_pad * din + w.dtype.itemsize * din * dout
                        + 4 * (n_pad * dout + dout)))
    y = pl.pallas_call(
        _linear_kernel,
        grid=(n_pad // tm,),
        in_specs=[pl.BlockSpec((tm, din), lambda i: (i, 0)),
                  _const_spec(w.shape),
                  _const_spec(b.shape)],
        out_specs=pl.BlockSpec((tm, dout), lambda i: (i, 0)),
        out_shape=jax.ShapeDtypeStruct((n_pad, dout), jnp.float32),
        compiler_params=_cparams("parallel"),
        cost_estimate=cost,
    )(x2d, w, b)
    return y[:n] if n_pad != n else y


def _linear_add_ln_kernel(x_ref, r_ref, w_ref, b_ref, g_ref, be_ref, o_ref, *, eps):
    # y = x @ W + b;  z = residual + y;  out = LayerNorm(z)
    y = jnp.dot(x_ref[...].astype(_MATMUL_DTYPE), w_ref[...].astype(_MATMUL_DTYPE),
                preferred_element_type=jnp.float32) + b_ref[...]
    z = r_ref[...] + y
    mean = jnp.mean(z, axis=-1, keepdims=True)
    var = jnp.mean(jnp.square(z - mean), axis=-1, keepdims=True)
    o_ref[...] = (z - mean) * jax.lax.rsqrt(var + eps) * g_ref[...] + be_ref[...]


def linear_add_ln(x2d, res2d, w, b, g, beta):
    """LayerNorm(res + x2d @ w + b), residual + LN fused into the GEMM epilogue."""
    n, din = x2d.shape
    dout = w.shape[1]
    tm, n_pad = _row_tiles(n)
    if n_pad != n:
        x2d = jnp.pad(x2d, ((0, n_pad - n), (0, 0)))
        res2d = jnp.pad(res2d, ((0, n_pad - n), (0, 0)))
    cost = pl.CostEstimate(
        flops=2 * n_pad * din * dout,
        transcendentals=0,
        bytes_accessed=(4 * n_pad * (din + 2 * dout) + w.dtype.itemsize * din * dout
                        + 4 * 3 * dout))
    y = pl.pallas_call(
        functools.partial(_linear_add_ln_kernel, eps=_LN_EPS),
        grid=(n_pad // tm,),
        in_specs=[pl.BlockSpec((tm, din), lambda i: (i, 0)),
                  pl.BlockSpec((tm, dout), lambda i: (i, 0)),
                  _const_spec(w.shape), _const_spec(b.shape),
                  _const_spec(g.shape), _const_spec(beta.shape)],
        out_specs=pl.BlockSpec((tm, dout), lambda i: (i, 0)),
        out_shape=jax.ShapeDtypeStruct((n_pad, dout), jnp.float32),
        compiler_params=_cparams("parallel"),
        cost_estimate=cost,
    )(x2d, res2d, w, b, g, beta)
    return y[:n] if n_pad != n else y


def _ffn_ln_kernel(x_ref, w1_ref, b1_ref, w2_ref, b2_ref, g_ref, be_ref, o_ref, *, eps):
    # Fused FFN (l1 + swish + l2) with residual-add + LayerNorm epilogue.
    x = x_ref[...]
    h = jnp.dot(x.astype(_MATMUL_DTYPE), w1_ref[...].astype(_MATMUL_DTYPE),
                preferred_element_type=jnp.float32) + b1_ref[...]
    h = h * jax.nn.sigmoid(h)
    y = jnp.dot(h.astype(_MATMUL_DTYPE), w2_ref[...].astype(_MATMUL_DTYPE),
                preferred_element_type=jnp.float32) + b2_ref[...]
    z = x + y
    mean = jnp.mean(z, axis=-1, keepdims=True)
    var = jnp.mean(jnp.square(z - mean), axis=-1, keepdims=True)
    o_ref[...] = (z - mean) * jax.lax.rsqrt(var + eps) * g_ref[...] + be_ref[...]


def feed_forward_ln(x, p, ln):
    """LayerNorm(x + FFN(x)) in one row-tiled kernel (weights VMEM-resident, bf16)."""
    B, T, D = x.shape
    w1, b1, w2, b2 = p["l1"]["w"], p["l1"]["b"], p["l2"]["w"], p["l2"]["b"]
    dh = w1.shape[1]
    x2 = x.reshape(-1, D)
    n = x2.shape[0]
    tm, n_pad = _row_tiles(n)
    if n_pad != n:
        x2 = jnp.pad(x2, ((0, n_pad - n), (0, 0)))
    cost = pl.CostEstimate(
        flops=4 * n_pad * D * dh,
        transcendentals=n_pad * dh,
        bytes_accessed=(4 * 2 * n_pad * D + w1.dtype.itemsize * 2 * D * dh
                        + 4 * (dh + 3 * D)))
    y = pl.pallas_call(
        functools.partial(_ffn_ln_kernel, eps=_LN_EPS),
        grid=(n_pad // tm,),
        in_specs=[pl.BlockSpec((tm, D), lambda i: (i, 0)),
                  _const_spec(w1.shape), _const_spec(b1.shape),
                  _const_spec(w2.shape), _const_spec(b2.shape),
                  _const_spec(ln["g"].shape), _const_spec(ln["b"].shape)],
        out_specs=pl.BlockSpec((tm, D), lambda i: (i, 0)),
        out_shape=jax.ShapeDtypeStruct((n_pad, D), jnp.float32),
        compiler_params=_cparams("parallel"),
        cost_estimate=cost,
    )(x2, w1, b1, w2, b2, ln["g"], ln["b"])
    y = y[:n] if n_pad != n else y
    return y.reshape(B, T, D)


def _attn_kernel(qkv_ref, m_ref, o_ref, *, H, scale, masking_value):
    # All heads of one batch element.  Head slices are read straight out of the fused
    # QKV projection ([T, 3D], q|k|v concatenated, per-head columns h*dk:(h+1)*dk), and
    # the per-head contexts are concatenated into one lane-dense (T, D) store.
    # TODO(synk): flash-tile over Tk (online softmax) for long sequences / v7x VMEM.
    qkv = qkv_ref[0]                                   # (T, 3D) f32
    mask = m_ref[0]                                    # (1, T)  float, 1.0 = data
    D = qkv.shape[1] // 3
    dk = D // H
    outs = []
    for hh in range(H):
        q = qkv[:, hh * dk:(hh + 1) * dk].astype(_MATMUL_DTYPE)
        k = qkv[:, D + hh * dk:D + (hh + 1) * dk].astype(_MATMUL_DTYPE)
        v = qkv[:, 2 * D + hh * dk:2 * D + (hh + 1) * dk].astype(_MATMUL_DTYPE)
        s = jax.lax.dot_general(q, k, (((1,), (1,)), ((), ())),
                                preferred_element_type=jnp.float32) * scale
        s = jnp.where(mask > 0.5, s, masking_value)    # key-side padding mask
        s = s - jnp.max(s, axis=-1, keepdims=True)
        p = jnp.exp(s)
        p = p / jnp.sum(p, axis=-1, keepdims=True)     # exact reciprocal (parity w/ torch)
        outs.append(jnp.dot(p.astype(_MATMUL_DTYPE), v, preferred_element_type=jnp.float32))
    o_ref[0] = jnp.concatenate(outs, axis=-1)          # (T, D) lane-dense store


def attention_core(qkv, mask_f, H, scale, masking_value):
    """qkv: [B, T, 3D] (fused projection), mask_f: [B, 1, T] float -> [B, T, D]."""
    B, T, D3 = qkv.shape
    D = D3 // 3
    dk = D // H
    cost = pl.CostEstimate(
        flops=4 * B * H * T * T * dk,
        transcendentals=B * H * T * T,
        bytes_accessed=4 * B * T * (D3 + D) + 4 * B * T)
    return pl.pallas_call(
        functools.partial(_attn_kernel, H=H, scale=scale, masking_value=masking_value),
        grid=(B,),
        in_specs=[pl.BlockSpec((1, T, D3), lambda b: (b, 0, 0)),
                  pl.BlockSpec((1, 1, T), lambda b: (b, 0, 0))],
        out_specs=pl.BlockSpec((1, T, D), lambda b: (b, 0, 0)),
        out_shape=jax.ShapeDtypeStruct((B, T, D), jnp.float32),
        compiler_params=_cparams("parallel"),
        cost_estimate=cost,
    )(qkv, mask_f)


def _conv_module_kernel(x_ref, w1_ref, b1_ref, dw_ref, dwb_ref, s_ref, sh_ref,
                        w2_ref, b2_ref, g_ref, be_ref, o_ref, hp_ref,
                        *, K, pad_l, eps):
    # Entire Squeezeformer conv module for one batch element, fused:
    # pointwise(d->d)+swish -> depthwise(K)+BN(eval)+swish -> pointwise(d->d)
    # with residual-add + LayerNorm epilogue.
    # TODO(synk): tile over T with a halo for very long sequences (v7x 64 MiB VMEM).
    x = x_ref[0]                                                   # (T, D)
    T, D = x.shape
    h = jnp.dot(x.astype(_MATMUL_DTYPE), w1_ref[...].astype(_MATMUL_DTYPE),
                preferred_element_type=jnp.float32) + b1_ref[...]
    h = h * jax.nn.sigmoid(h)
    hp_ref[...] = jnp.zeros_like(hp_ref)                           # 'same' halo scratch
    hp_ref[pad_l:pad_l + T, :] = h
    w = dw_ref[...]                                                # (K, D) per-channel taps
    acc = jnp.zeros((T, D), jnp.float32)
    for k in range(K):                                             # shifted in-VMEM reads
        acc = acc + hp_ref[k:k + T, :] * w[k:k + 1, :]
    y = acc + dwb_ref[...]
    y = y * s_ref[...] + sh_ref[...]                               # folded BatchNorm (eval)
    y = y * jax.nn.sigmoid(y)
    y = jnp.dot(y.astype(_MATMUL_DTYPE), w2_ref[...].astype(_MATMUL_DTYPE),
                preferred_element_type=jnp.float32) + b2_ref[...]
    z = x + y                                                      # residual
    mean = jnp.mean(z, axis=-1, keepdims=True)
    var = jnp.mean(jnp.square(z - mean), axis=-1, keepdims=True)
    o_ref[0] = (z - mean) * jax.lax.rsqrt(var + eps) * g_ref[...] + be_ref[...]


def conv_module_ln(x, p, ln):
    B, T, D = x.shape
    K = p["dw_w"].shape[0]
    pad_l = (K - 1) // 2
    spec_x = pl.BlockSpec((1, T, D), lambda b: (b, 0, 0))
    return pl.pallas_call(
        functools.partial(_conv_module_kernel, K=K, pad_l=pad_l, eps=_LN_EPS),
        grid=(B,),
        in_specs=[spec_x,
                  _const_spec(p["pw1"]["w"].shape), _const_spec(p["pw1"]["b"].shape),
                  _const_spec(p["dw_w"].shape), _const_spec(p["dw_b"].shape),
                  _const_spec(p["bn_scale"].shape), _const_spec(p["bn_shift"].shape),
                  _const_spec(p["pw2"]["w"].shape), _const_spec(p["pw2"]["b"].shape),
                  _const_spec(ln["g"].shape), _const_spec(ln["b"].shape)],
        out_specs=spec_x,
        out_shape=jax.ShapeDtypeStruct((B, T, D), jnp.float32),
        scratch_shapes=[pltpu.VMEM((T + K - 1, D), jnp.float32)],
        compiler_params=_cparams("parallel"),
    )(x, p["pw1"]["w"], p["pw1"]["b"], p["dw_w"], p["dw_b"],
      p["bn_scale"], p["bn_shift"], p["pw2"]["w"], p["pw2"]["b"], ln["g"], ln["b"])


def _dwconv_taps_kernel(t_ref, w_ref, b_ref, o_ref, *, K):
    taps = t_ref[...]                       # (K, 1, Lout, D)
    w = w_ref[...]                          # (K, D)
    acc = jnp.zeros(o_ref.shape, jnp.float32)
    for k in range(K):
        acc = acc + taps[k] * w[k:k + 1, :]
    o_ref[...] = acc + b_ref[...]


# ----------------------------- utils (speeq) -------------------------------

def get_mask_from_lens(lengths, max_len):
    return jnp.arange(max_len)[None, :] < lengths[:, None]


def calc_data_len(result_len, pad_len, data_len, kernel_size, stride):
    inp_len = data_len + pad_len
    unconvolved = (inp_len - kernel_size) % stride
    convolved_pad = pad_len - unconvolved
    new_pad_len = (convolved_pad - kernel_size) // stride + 1
    new_pad_len = jnp.where(pad_len >= kernel_size, new_pad_len, 0)
    new_pad_len = jnp.where(pad_len > unconvolved, new_pad_len, 0)
    return result_len - new_pad_len


# ----------------------------- model pieces --------------------------------

def mhsa_ln(x, mask_f, p, ln, h, masking_value):
    """LayerNorm(x + MHSA(x)); QKV fused into one GEMM, residual+LN fused into o-proj."""
    B, T, D = x.shape
    dk = D // h
    qkv = linear(x.reshape(-1, D), p["qkv"]["w"], p["qkv"]["b"]).reshape(B, T, 3 * D)
    ctx = attention_core(qkv, mask_f, h, 1.0 / math.sqrt(dk), masking_value)  # (B, T, D)
    out = linear_add_ln(ctx.reshape(-1, D), x.reshape(-1, D),
                        p["o"]["w"], p["o"]["b"], ln["g"], ln["b"])
    return out.reshape(B, T, D)


def squeezeformer_block(x, mask_f, p, h, masking_value):
    # Post-LayerNorm structure (MHSA -> LN -> FFN -> LN -> Conv -> LN -> FFN -> LN);
    # every residual-add + LN is fused as an epilogue of the producing kernel.
    x = mhsa_ln(x, mask_f, p["mhsa"], p["ln1"], h, masking_value)
    x = feed_forward_ln(x, p["ff1"], p["ln2"])
    x = conv_module_ln(x, p["conv"], p["ln3"])
    x = feed_forward_ln(x, p["ff2"], p["ln4"])
    return x


def conv1d_dense(x, w, b, stride):
    # groups=1 Conv1d via im2col (XLA glue) + row-tiled Pallas GEMM.
    # x: [B, L, Cin] f32; w: torch layout [Cout, Cin, K] bf16; b: [1, Cout] f32
    B, L, Cin = x.shape
    Cout, _, K = w.shape
    Lout = (L - K) // stride + 1
    taps = [x[:, k:k + (Lout - 1) * stride + 1:stride, :] for k in range(K)]
    patches = jnp.stack(taps, axis=-1).reshape(B * Lout, Cin * K)   # (c, k) order
    w2 = jnp.transpose(w, (1, 2, 0)).reshape(Cin * K, Cout)
    return linear(patches, w2, b).reshape(B, Lout, Cout)


def prenet(x, lengths, p, cfg):
    # ConformerPreNet: Conv1d(in_features, in_features, ss_kernel, ss_stride) x N
    # (time subsampling) + Linear(in_features, d_model); dropout = identity.
    # TODO(synk): speeq ConformerPreNet source not provided; conv stack assumed activation-free.
    for conv_p in p["convs"]:
        L_in = x.shape[1]
        x_new = conv1d_dense(x, conv_p["w"], conv_p["b"], cfg["ss_stride"])
        lengths = calc_data_len(x_new.shape[1], L_in - lengths, lengths,
                                cfg["ss_kernel_size"], cfg["ss_stride"])
        x = x_new
    B, T, C = x.shape
    out = linear(x.reshape(-1, C), p["fc"]["w"], p["fc"]["b"]).reshape(B, T, -1)
    return out, lengths


def time_pooling(x, p, K, stride):
    # nn.Conv1d(d, d, K, stride, groups=d) over time (strided depthwise).
    # TODO(synk): tap gather stays in XLA; runs once per forward so traffic is negligible.
    B, L, D = x.shape
    Lout = (L - K) // stride + 1
    taps = jnp.stack([x[:, k:k + (Lout - 1) * stride + 1:stride, :] for k in range(K)], axis=0)
    spec_t = pl.BlockSpec((K, 1, Lout, D), lambda b: (0, b, 0, 0))
    spec_o = pl.BlockSpec((1, Lout, D), lambda b: (b, 0, 0))
    return pl.pallas_call(
        functools.partial(_dwconv_taps_kernel, K=K),
        grid=(B,),
        in_specs=[spec_t, _const_spec(p["w"].shape), _const_spec(p["b"].shape)],
        out_specs=spec_o,
        out_shape=jax.ShapeDtypeStruct((B, Lout, D), jnp.float32),
        compiler_params=_cparams("parallel"),
    )(taps, p["w"], p["b"])


def upsample(x, target_len, p, stride):
    # nn.ConvTranspose1d(d, d, K, stride) as: zero-dilate input, pad K-1, correlate with
    # the flipped/transposed kernel via im2col + one tiled Pallas GEMM, then right-pad
    # with zeros up to target_len (== torch.cat([out, zeros], dim=-1)).
    # TODO(synk): polyphase-split to skip the structurally-zero dilated columns.
    B, Lin, Cin = x.shape
    wt = p["w"]                                     # torch ConvTranspose1d layout [Cin, Cout, K]
    Cout, K = wt.shape[1], wt.shape[2]
    if stride > 1:
        z = jnp.zeros((B, Lin, stride - 1, Cin), jnp.float32)
        xd = jnp.concatenate([x[:, :, None, :], z], axis=2).reshape(B, Lin * stride, Cin)
        xd = xd[:, : (Lin - 1) * stride + 1, :]
    else:
        xd = x
    xd = jnp.pad(xd, ((0, 0), (K - 1, K - 1), (0, 0)))
    w_conv = jnp.flip(jnp.transpose(wt, (1, 0, 2)), axis=2)        # [Cout, Cin, K]
    out = conv1d_dense(xd, w_conv, p["b"].reshape(1, Cout), stride=1)
    Lt = (Lin - 1) * stride + K
    # TODO(synk): assumes Lt <= target_len, same as the torch reference's positive res_len.
    out = jnp.pad(out, ((0, 0), (0, target_len - Lt), (0, 0)))
    return out


def squeezeformer_encoder(x, mask, params, cfg):
    lengths = jnp.sum(mask.astype(jnp.int32), axis=-1)
    out, lengths = prenet(x, lengths, params["prenet"], cfg)
    mask1_f = get_mask_from_lens(lengths, out.shape[1]).astype(jnp.float32)[:, None, :]
    for blk in params["layers1"]:
        out = squeezeformer_block(out, mask1_f, blk, cfg["h"], cfg["masking_value"])
    result = time_pooling(out, params["pooling"],
                          cfg["pooling_kernel_size"], cfg["pooling_stride"])
    pooled_len = calc_data_len(result.shape[1], out.shape[1] - lengths, lengths,
                               cfg["pooling_kernel_size"], cfg["pooling_stride"])
    pooled_mask_f = get_mask_from_lens(pooled_len,
                                       result.shape[1]).astype(jnp.float32)[:, None, :]
    for blk in params["layers2"]:
        result = squeezeformer_block(result, pooled_mask_f, blk, cfg["h"], cfg["masking_value"])
    result = upsample(result, out.shape[1], params["upsample"], cfg["pooling_stride"])
    out = result + out
    out = squeezeformer_block(out, mask1_f, params["sf_layer"], cfg["h"], cfg["masking_value"])
    return out, lengths


# ----------------------------- parameter init ------------------------------

def init_params(key, cfg):
    kit = iter(jax.random.split(key, 512))

    def nrm(shape, s=0.1):
        return jax.random.normal(next(kit), shape, jnp.float32) * s

    def dense(din, dout):
        # GEMM weights stored bf16 in HBM (loaded directly as bf16 blocks); biases f32.
        return {"w": nrm((din, dout)).astype(_MATMUL_DTYPE), "b": nrm((1, dout), 0.01)}

    def ln(d):
        return {"g": jnp.ones((1, d), jnp.float32), "b": jnp.zeros((1, d), jnp.float32)}

    D, K, e = cfg["d_model"], cfg["kernel_size"], cfg["ff_expansion_factor"]

    def dw_weight(k):
        wt = nrm((D, 1, k))                               # torch depthwise layout [D, 1, K]
        return jnp.transpose(wt[:, 0, :], (1, 0))         # -> (K, D), f32 (VPU elementwise)

    def block():
        return {
            # Real checkpoints: concat W_q|W_k|W_v (and biases) along the output dim.
            "mhsa": {"qkv": dense(D, 3 * D), "o": dense(D, D)},
            "ln1": ln(D), "ln2": ln(D), "ln3": ln(D), "ln4": ln(D),
            "ff1": {"l1": dense(D, D * e), "l2": dense(D * e, D)},
            "ff2": {"l1": dense(D, D * e), "l2": dense(D * e, D)},
            "conv": {
                "pw1": dense(D, D),
                "dw_w": dw_weight(K),
                "dw_b": nrm((1, D), 0.01),
                # BatchNorm1d eval with default stats (mean=0, var=1, gamma=1, beta=0)
                "bn_scale": jnp.full((1, D), 1.0 / math.sqrt(1.0 + 1e-5), jnp.float32),
                "bn_shift": jnp.zeros((1, D), jnp.float32),
                "pw2": dense(D, D),
            },
        }

    in_f = cfg["in_features"]
    return {
        "prenet": {
            "convs": [{"w": nrm((in_f, in_f, cfg["ss_kernel_size"])).astype(_MATMUL_DTYPE),
                       "b": nrm((1, in_f), 0.01)}                   # torch [Cout, Cin, K]
                      for _ in range(cfg["ss_n_conv_layers"])],
            "fc": dense(in_f, D),
        },
        "layers1": [block() for _ in range(cfg["n"] - 1)],
        "pooling": {"w": dw_weight(cfg["pooling_kernel_size"]), "b": nrm((1, D), 0.01)},
        "layers2": [block() for _ in range(cfg["n"])],
        "upsample": {"w": nrm((D, D, cfg["pooling_kernel_size"])).astype(_MATMUL_DTYPE),
                     "b": nrm((D,), 0.01)},                          # torch [Cin, Cout, K]
        "sf_layer": block(),
    }


# --------------------------------- main -------------------------------------

if __name__ == "__main__":
    cfg = dict(
        in_features=16, n=2, d_model=32, ff_expansion_factor=2, h=4,
        kernel_size=5, pooling_kernel_size=3, pooling_stride=2,
        ss_kernel_size=3, ss_stride=2, ss_n_conv_layers=1,
        p_dropout=0.1,                 # dropout is identity at inference
        ss_groups=1, masking_value=-1e15,
    )
    key = jax.random.PRNGKey(0)
    kp, kx = jax.random.split(key)
    params = init_params(kp, cfg)

    B, M = 2, 32
    x = jax.random.normal(kx, (B, M, cfg["in_features"]), jnp.float32)
    lengths_in = jnp.array([M, 24], jnp.int32)
    mask = jnp.arange(M)[None, :] < lengths_in[:, None]    # [B, M] bool, True = data

    fwd = jax.jit(functools.partial(squeezeformer_encoder, cfg=cfg))
    out, lengths = fwd(x, mask, params)
    jax.block_until_ready((out, lengths))

    # Subsampled length: floor((32 - 3) / 2) + 1 = 15
    assert out.shape == (B, 15, cfg["d_model"]), out.shape
    assert lengths.shape == (B,), lengths.shape
    assert bool(jnp.all(jnp.isfinite(out)))
    print("KERNEL_OK")
</pallas_src>

<mosaic_0001>
module attributes {stable_mosaic.version = 11 : i64} {
  func.func @_probe_kernel(%arg0: i32, %arg1: memref<8x128xf32, #tpu.memory_space<vmem>>, %arg2: memref<8x128xf32, #tpu.memory_space<vmem>>) attributes {dimension_semantics = [#tpu.dimension_semantics<arbitrary>], iteration_bounds = array<i64: 1>, scalar_prefetch = 0 : i64, scratch_operands = 0 : i64, tpu.core_type = #tpu.core_type<tc>, window_params = [{pipeline_mode = #tpu.pipeline_mode<synchronous>, transform_indices = @transform_0, window_bounds = array<i64: 8, 128>}, {pipeline_mode = #tpu.pipeline_mode<synchronous>, transform_indices = @transform_1, window_bounds = array<i64: 8, 128>}]} {
    %c0 = arith.constant 0 : index
    %c0_0 = arith.constant 0 : index
    %0 = vector.load %arg1[%c0, %c0_0] : memref<8x128xf32, #tpu.memory_space<vmem>>, vector<8x128xf32>
    %cst = arith.constant 2.000000e+00 : f32
    %1 = vector.broadcast %cst : f32 to vector<8x128xf32>
    %2 = arith.mulf %0, %1 : vector<8x128xf32>
    %c0_1 = arith.constant 0 : index
    %c0_2 = arith.constant 0 : index
    %3 = vector.load %arg2[%c0_1, %c0_2] : memref<8x128xf32, #tpu.memory_space<vmem>>, vector<8x128xf32>
    tpu.vector_store %arg2[%c0_1, %c0_2], %2 {strides = array<i32>} : memref<8x128xf32, #tpu.memory_space<vmem>>, vector<8x128xf32>,
    return
  }
  func.func @transform_0(%arg0: i32) -> (i32, i32) {
    %c0_i32 = arith.constant 0 : i32
    %c0_i32_0 = arith.constant 0 : i32
    %c0_i32_1 = arith.constant 0 : i32
    return %c0_i32, %c0_i32_0 : i32, i32
  }
  func.func @transform_1(%arg0: i32) -> (i32, i32) {
    %c0_i32 = arith.constant 0 : i32
    %c0_i32_0 = arith.constant 0 : i32
    %c0_i32_1 = arith.constant 0 : i32
    return %c0_i32, %c0_i32_0 : i32, i32
  }
}

module attributes {stable_mosaic.version = 11 : i64} {
  func.func @_linear_kernel(%arg0: i32, %arg1: memref<32x32xf32, #tpu.memory_space<vmem>>, %arg2: memref<32x96xbf16, #tpu.memory_space<vmem>>, %arg3: memref<1x96xf32, #tpu.memory_space<vmem>>, %arg4: memref<32x96xf32, #tpu.memory_space<vmem>>) attributes {dimension_semantics = [#tpu.dimension_semantics<parallel>], iteration_bounds = array<i64: 1>, scalar_prefetch = 0 : i64, scratch_operands = 0 : i64, tpu.core_type = #tpu.core_type<tc>, window_params = [{transform_indices = @transform_0, window_bounds = array<i64: 32, 32>}, {pipeline_mode = #tpu.pipeline_mode<synchronous>, transform_indices = @transform_1, window_bounds = array<i64: 32, 96>}, {pipeline_mode = #tpu.pipeline_mode<synchronous>, transform_indices = @transform_2, window_bounds = array<i64: 1, 96>}, {transform_indices = @transform_3, window_bounds = array<i64: 32, 96>}]} {
    %c0 = arith.constant 0 : index
    %c0_0 = arith.constant 0 : index
    %0 = vector.load %arg1[%c0, %c0_0] : memref<32x32xf32, #tpu.memory_space<vmem>>, vector<32x32xf32>
    %1 = arith.truncf %0 : vector<32x32xf32> to vector<32x32xbf16>
    %c0_1 = arith.constant 0 : index
    %c0_2 = arith.constant 0 : index
    %2 = vector.load %arg2[%c0_1, %c0_2] : memref<32x96xbf16, #tpu.memory_space<vmem>>, vector<32x96xbf16>
    %cst = arith.constant dense<0.000000e+00> : vector<32x96xf32>
    %3 = tpu.matmul %1, %2, %cst {dimension_numbers = #tpu.dot_dimension_numbers<[1], [0], [0], [1], [0, 0, 1, 1], [], []>} : vector<32x32xbf16>, vector<32x96xbf16>, vector<32x96xf32> -> vector<32x96xf32>
    %c0_3 = arith.constant 0 : index
    %c0_4 = arith.constant 0 : index
    %4 = vector.load %arg3[%c0_3, %c0_4] : memref<1x96xf32, #tpu.memory_space<vmem>>, vector<1x96xf32>
    %5 = vector.broadcast %4 : vector<1x96xf32> to vector<32x96xf32>
    %6 = arith.addf %3, %5 : vector<32x96xf32>
    %c0_5 = arith.constant 0 : index
    %c0_6 = arith.constant 0 : index
    %7 = vector.load %arg4[%c0_5, %c0_6] : memref<32x96xf32, #tpu.memory_space<vmem>>, vector<32x96xf32>
    tpu.vector_store %arg4[%c0_5, %c0_6], %6 {strides = array<i32>} : memref<32x96xf32, #tpu.memory_space<vmem>>, vector<32x96xf32>,
    return
  }
  func.func @transform_0(%arg0: i32) -> (i32, i32) {
    %c0_i32 = arith.constant 0 : i32
    %c0_i32_0 = arith.constant 0 : i32
    return %arg0, %c0_i32 : i32, i32
  }
  func.func @transform_1(%arg0: i32) -> (i32, i32) {
    %c0_i32 = arith.constant 0 : i32
    %c0_i32_0 = arith.constant 0 : i32
    %c0_i32_1 = arith.constant 0 : i32
    return %c0_i32, %c0_i32_0 : i32, i32
  }
  func.func @transform_2(%arg0: i32) -> (i32, i32) {
    %c0_i32 = arith.constant 0 : i32
    %c0_i32_0 = arith.constant 0 : i32
    %c0_i32_1 = arith.constant 0 : i32
    return %c0_i32, %c0_i32_0 : i32, i32
  }
  func.func @transform_3(%arg0: i32) -> (i32, i32) {
    %c0_i32 = arith.constant 0 : i32
    %c0_i32_0 = arith.constant 0 : i32
    return %arg0, %c0_i32 : i32, i32
  }
}

module attributes {stable_mosaic.version = 11 : i64} {
  func.func @_linear_kernel(%arg0: i32, %arg1: memref<32x48xf32, #tpu.memory_space<vmem>>, %arg2: memref<48x16xbf16, #tpu.memory_space<vmem>>, %arg3: memref<1x16xf32, #tpu.memory_space<vmem>>, %arg4: memref<32x16xf32, #tpu.memory_space<vmem>>) attributes {dimension_semantics = [#tpu.dimension_semantics<parallel>], iteration_bounds = array<i64: 1>, scalar_prefetch = 0 : i64, scratch_operands = 0 : i64, tpu.core_type = #tpu.core_type<tc>, window_params = [{transform_indices = @transform_0, window_bounds = array<i64: 32, 48>}, {pipeline_mode = #tpu.pipeline_mode<synchronous>, transform_indices = @transform_1, window_bounds = array<i64: 48, 16>}, {pipeline_mode = #tpu.pipeline_mode<synchronous>, transform_indices = @transform_2, window_bounds = array<i64: 1, 16>}, {transform_indices = @transform_3, window_bounds = array<i64: 32, 16>}]} {
    %c0 = arith.constant 0 : index
    %c0_0 = arith.constant 0 : index
    %0 = vector.load %arg1[%c0, %c0_0] : memref<32x48xf32, #tpu.memory_space<vmem>>, vector<32x48xf32>
    %1 = arith.truncf %0 : vector<32x48xf32> to vector<32x48xbf16>
    %c0_1 = arith.constant 0 : index
    %c0_2 = arith.constant 0 : index
    %2 = vector.load %arg2[%c0_1, %c0_2] : memref<48x16xbf16, #tpu.memory_space<vmem>>, vector<48x16xbf16>
    %cst = arith.constant dense<0.000000e+00> : vector<32x16xf32>
    %3 = tpu.matmul %1, %2, %cst {dimension_numbers = #tpu.dot_dimension_numbers<[1], [0], [0], [1], [0, 0, 1, 1], [], []>} : vector<32x48xbf16>, vector<48x16xbf16>, vector<32x16xf32> -> vector<32x16xf32>
    %c0_3 = arith.constant 0 : index
    %c0_4 = arith.constant 0 : index
    %4 = vector.load %arg3[%c0_3, %c0_4] : memref<1x16xf32, #tpu.memory_space<vmem>>, vector<1x16xf32>
    %5 = vector.broadcast %4 : vector<1x16xf32> to vector<32x16xf32>
    %6 = arith.addf %3, %5 : vector<32x16xf32>
    %c0_5 = arith.constant 0 : index
    %c0_6 = arith.constant 0 : index
    %7 = vector.load %arg4[%c0_5, %c0_6] : memref<32x16xf32, #tpu.memory_space<vmem>>, vector<32x16xf32>
    tpu.vector_store %arg4[%c0_5, %c0_6], %6 {strides = array<i32>} : memref<32x16xf32, #tpu.memory_space<vmem>>, vector<32x16xf32>,
    return
  }
  func.func @transform_0(%arg0: i32) -> (i32, i32) {
    %c0_i32 = arith.constant 0 : i32
    %c0_i32_0 = arith.constant 0 : i32
    return %arg0, %c0_i32 : i32, i32
  }
  func.func @transform_1(%arg0: i32) -> (i32, i32) {
    %c0_i32 = arith.constant 0 : i32
    %c0_i32_0 = arith.constant 0 : i32
    %c0_i32_1 = arith.constant 0 : i32
    return %c0_i32, %c0_i32_0 : i32, i32
  }
  func.func @transform_2(%arg0: i32) -> (i32, i32) {
    %c0_i32 = arith.constant 0 : i32
    %c0_i32_0 = arith.constant 0 : i32
    %c0_i32_1 = arith.constant 0 : i32
    return %c0_i32, %c0_i32_0 : i32, i32
  }
  func.func @transform_3(%arg0: i32) -> (i32, i32) {
    %c0_i32 = arith.constant 0 : i32
    %c0_i32_0 = arith.constant 0 : i32
    return %arg0, %c0_i32 : i32, i32
  }
}

module attributes {stable_mosaic.version = 11 : i64} {
  func.func @_linear_kernel(%arg0: i32, %arg1: memref<32x16xf32, #tpu.memory_space<vmem>>, %arg2: memref<16x32xbf16, #tpu.memory_space<vmem>>, %arg3: memref<1x32xf32, #tpu.memory_space<vmem>>, %arg4: memref<32x32xf32, #tpu.memory_space<vmem>>) attributes {dimension_semantics = [#tpu.dimension_semantics<parallel>], iteration_bounds = array<i64: 1>, scalar_prefetch = 0 : i64, scratch_operands = 0 : i64, tpu.core_type = #tpu.core_type<tc>, window_params = [{transform_indices = @transform_0, window_bounds = array<i64: 32, 16>}, {pipeline_mode = #tpu.pipeline_mode<synchronous>, transform_indices = @transform_1, window_bounds = array<i64: 16, 32>}, {pipeline_mode = #tpu.pipeline_mode<synchronous>, transform_indices = @transform_2, window_bounds = array<i64: 1, 32>}, {transform_indices = @transform_3, window_bounds = array<i64: 32, 32>}]} {
    %c0 = arith.constant 0 : index
    %c0_0 = arith.constant 0 : index
    %0 = vector.load %arg1[%c0, %c0_0] : memref<32x16xf32, #tpu.memory_space<vmem>>, vector<32x16xf32>
    %1 = arith.truncf %0 : vector<32x16xf32> to vector<32x16xbf16>
    %c0_1 = arith.constant 0 : index
    %c0_2 = arith.constant 0 : index
    %2 = vector.load %arg2[%c0_1, %c0_2] : memref<16x32xbf16, #tpu.memory_space<vmem>>, vector<16x32xbf16>
    %cst = arith.constant dense<0.000000e+00> : vector<32x32xf32>
    %3 = tpu.matmul %1, %2, %cst {dimension_numbers = #tpu.dot_dimension_numbers<[1], [0], [0], [1], [0, 0, 1, 1], [], []>} : vector<32x16xbf16>, vector<16x32xbf16>, vector<32x32xf32> -> vector<32x32xf32>
    %c0_3 = arith.constant 0 : index
    %c0_4 = arith.constant 0 : index
    %4 = vector.load %arg3[%c0_3, %c0_4] : memref<1x32xf32, #tpu.memory_space<vmem>>, vector<1x32xf32>
    %5 = vector.broadcast %4 : vector<1x32xf32> to vector<32x32xf32>
    %6 = arith.addf %3, %5 : vector<32x32xf32>
    %c0_5 = arith.constant 0 : index
    %c0_6 = arith.constant 0 : index
    %7 = vector.load %arg4[%c0_5, %c0_6] : memref<32x32xf32, #tpu.memory_space<vmem>>, vector<32x32xf32>
    tpu.vector_store %arg4[%c0_5, %c0_6], %6 {strides = array<i32>} : memref<32x32xf32, #tpu.memory_space<vmem>>, vector<32x32xf32>,
    return
  }
  func.func @transform_0(%arg0: i32) -> (i32, i32) {
    %c0_i32 = arith.constant 0 : i32
    %c0_i32_0 = arith.constant 0 : i32
    return %arg0, %c0_i32 : i32, i32
  }
  func.func @transform_1(%arg0: i32) -> (i32, i32) {
    %c0_i32 = arith.constant 0 : i32
    %c0_i32_0 = arith.constant 0 : i32
    %c0_i32_1 = arith.constant 0 : i32
    return %c0_i32, %c0_i32_0 : i32, i32
  }
  func.func @transform_2(%arg0: i32) -> (i32, i32) {
    %c0_i32 = arith.constant 0 : i32
    %c0_i32_0 = arith.constant 0 : i32
    %c0_i32_1 = arith.constant 0 : i32
    return %c0_i32, %c0_i32_0 : i32, i32
  }
  func.func @transform_3(%arg0: i32) -> (i32, i32) {
    %c0_i32 = arith.constant 0 : i32
    %c0_i32_0 = arith.constant 0 : i32
    return %arg0, %c0_i32 : i32, i32
  }
}

module attributes {stable_mosaic.version = 11 : i64} {
  func.func @_attn_kernel(%arg0: i32, %arg1: memref<1x15x96xf32, #tpu.memory_space<vmem>>, %arg2: memref<1x1x15xf32, #tpu.memory_space<vmem>>, %arg3: memref<1x15x32xf32, #tpu.memory_space<vmem>>) attributes {dimension_semantics = [#tpu.dimension_semantics<parallel>], iteration_bounds = array<i64: 2>, scalar_prefetch = 0 : i64, scratch_operands = 0 : i64, tpu.core_type = #tpu.core_type<tc>, window_params = [{transform_indices = @transform_0, window_bounds = array<i64: 1, 15, 96>}, {transform_indices = @transform_1, window_bounds = array<i64: 1, 1, 15>}, {transform_indices = @transform_2, window_bounds = array<i64: 1, 15, 32>}]} {
    %c0 = arith.constant 0 : index
    %c0_0 = arith.constant 0 : index
    %c0_1 = arith.constant 0 : index
    %0 = vector.load %arg1[%c0, %c0_0, %c0_1] : memref<1x15x96xf32, #tpu.memory_space<vmem>>, vector<1x15x96xf32>
    %1 = vector.shape_cast %0 : vector<1x15x96xf32> to vector<15x96xf32>
    %c0_2 = arith.constant 0 : index
    %c0_3 = arith.constant 0 : index
    %c0_4 = arith.constant 0 : index
    %2 = vector.load %arg2[%c0_2, %c0_3, %c0_4] : memref<1x1x15xf32, #tpu.memory_space<vmem>>, vector<1x1x15xf32>
    %3 = vector.shape_cast %2 : vector<1x1x15xf32> to vector<1x15xf32>
    %4 = vector.extract_strided_slice %1 {offsets = [0, 0], sizes = [15, 8], strides = [1, 1]} : vector<15x96xf32> to vector<15x8xf32>
    %5 = arith.truncf %4 : vector<15x8xf32> to vector<15x8xbf16>
    %6 = vector.extract_strided_slice %1 {offsets = [0, 32], sizes = [15, 8], strides = [1, 1]} : vector<15x96xf32> to vector<15x8xf32>
    %7 = arith.truncf %6 : vector<15x8xf32> to vector<15x8xbf16>
    %8 = vector.extract_strided_slice %1 {offsets = [0, 64], sizes = [15, 8], strides = [1, 1]} : vector<15x96xf32> to vector<15x8xf32>
    %9 = arith.truncf %8 : vector<15x8xf32> to vector<15x8xbf16>
    %cst = arith.constant dense<0.000000e+00> : vector<15x15xf32>
    %10 = tpu.matmul %5, %7, %cst {dimension_numbers = #tpu.dot_dimension_numbers<[1], [1], [0], [0], [0, 0, 1, 0], [], []>} : vector<15x8xbf16>, vector<15x8xbf16>, vector<15x15xf32> -> vector<15x15xf32>
    %cst_5 = arith.constant 0.353553385 : f32
    %11 = vector.broadcast %cst_5 : f32 to vector<15x15xf32>
    %12 = arith.mulf %10, %11 : vector<15x15xf32>
    %cst_6 = arith.constant 5.000000e-01 : f32
    %13 = vector.broadcast %cst_6 : f32 to vector<1x15xf32>
    %14 = arith.cmpf ogt, %3, %13 : vector<1x15xf32>
    %cst_7 = arith.constant -9.99999986E+14 : f32
    %15 = vector.shape_cast %14 : vector<1x15xi1> to vector<1x15xi1>
    %16 = vector.broadcast %15 : vector<1x15xi1> to vector<15x15xi1>
    %17 = vector.broadcast %cst_7 : f32 to vector<15x15xf32>
    %18 = arith.select %16, %12, %17 : vector<15x15xi1>, vector<15x15xf32>
    %cst_8 = arith.constant dense<0xFF800000> : vector<15xf32>
    %19 = vector.multi_reduction <maximumf>, %18, %cst_8 [1] : vector<15x15xf32> to vector<15xf32>
    %20 = vector.shape_cast %19 : vector<15xf32> to vector<15x1xf32>
    %21 = vector.broadcast %20 : vector<15x1xf32> to vector<15x15xf32>
    %22 = arith.subf %18, %21 : vector<15x15xf32>
    %23 = math.exp %22 : vector<15x15xf32>
    %cst_9 = arith.constant dense<0.000000e+00> : vector<15xf32>
    %24 = vector.multi_reduction <add>, %23, %cst_9 [1] : vector<15x15xf32> to vector<15xf32>
    %25 = vector.shape_cast %24 : vector<15xf32> to vector<15x1xf32>
    %26 = vector.broadcast %25 : vector<15x1xf32> to vector<15x15xf32>
    %27 = arith.divf %23, %26 : vector<15x15xf32>
    %28 = arith.truncf %27 : vector<15x15xf32> to vector<15x15xbf16>
    %cst_10 = arith.constant dense<0.000000e+00> : vector<15x8xf32>
    %29 = tpu.matmul %28, %9, %cst_10 {dimension_numbers = #tpu.dot_dimension_numbers<[1], [0], [0], [1], [0, 0, 1, 1], [], []>} : vector<15x15xbf16>, vector<15x8xbf16>, vector<15x8xf32> -> vector<15x8xf32>
    %30 = vector.extract_strided_slice %1 {offsets = [0, 8], sizes = [15, 8], strides = [1, 1]} : vector<15x96xf32> to vector<15x8xf32>
    %31 = arith.truncf %30 : vector<15x8xf32> to vector<15x8xbf16>
    %32 = vector.extract_strided_slice %1 {offsets = [0, 40], sizes = [15, 8], strides = [1, 1]} : vector<15x96xf32> to vector<15x8xf32>
    %33 = arith.truncf %32 : vector<15x8xf32> to vector<15x8xbf16>
    %34 = vector.extract_strided_slice %1 {offsets = [0, 72], sizes = [15, 8], strides = [1, 1]} : vector<15x96xf32> to vector<15x8xf32>
    %35 = arith.truncf %34 : vector<15x8xf32> to vector<15x8xbf16>
    %cst_11 = arith.constant dense<0.000000e+00> : vector<15x15xf32>
    %36 = tpu.matmul %31, %33, %cst_11 {dimension_numbers = #tpu.dot_dimension_numbers<[1], [1], [0], [0], [0, 0, 1, 0], [], []>} : vector<15x8xbf16>, vector<15x8xbf16>, vector<15x15xf32> -> vector<15x15xf32>
    %cst_12 = arith.constant 0.353553385 : f32
    %37 = vector.broadcast %cst_12 : f32 to vector<15x15xf32>
    %38 = arith.mulf %36, %37 : vector<15x15xf32>
    %cst_13 = arith.constant 5.000000e-01 : f32
    %39 = vector.broadcast %cst_13 : f32 to vector<1x15xf32>
    %40 = arith.cmpf ogt, %3, %39 : vector<1x15xf32>
    %cst_14 = arith.constant -9.99999986E+14 : f32
    %41 = vector.shape_cast %40 : vector<1x15xi1> to vector<1x15xi1>
    %42 = vector.broadcast %41 : vector<1x15xi1> to vector<15x15xi1>
    %43 = vector.broadcast %cst_14 : f32 to vector<15x15xf32>
    %44 = arith.select %42, %38, %43 : vector<15x15xi1>, vector<15x15xf32>
    %cst_15 = arith.constant dense<0xFF800000> : vector<15xf32>
    %45 = vector.multi_reduction <maximumf>, %44, %cst_15 [1] : vector<15x15xf32> to vector<15xf32>
    %46 = vector.shape_cast %45 : vector<15xf32> to vector<15x1xf32>
    %47 = vector.broadcast %46 : vector<15x1xf32> to vector<15x15xf32>
    %48 = arith.subf %44, %47 : vector<15x15xf32>
    %49 = math.exp %48 : vector<15x15xf32>
    %cst_16 = arith.constant dense<0.000000e+00> : vector<15xf32>
    %50 = vector.multi_reduction <add>, %49, %cst_16 [1] : vector<15x15xf32> to vector<15xf32>
    %51 = vector.shape_cast %50 : vector<15xf32> to vector<15x1xf32>
    %52 = vector.broadcast %51 : vector<15x1xf32> to vector<15x15xf32>
    %53 = arith.divf %49, %52 : vector<15x15xf32>
    %54 = arith.truncf %53 : vector<15x15xf32> to vector<15x15xbf16>
    %cst_17 = arith.constant dense<0.000000e+00> : vector<15x8xf32>
    %55 = tpu.matmul %54, %35, %cst_17 {dimension_numbers = #tpu.dot_dimension_numbers<[1], [0], [0], [1], [0, 0, 1, 1], [], []>} : vector<15x15xbf16>, vector<15x8xbf16>, vector<15x8xf32> -> vector<15x8xf32>
    %56 = vector.extract_strided_slice %1 {offsets = [0, 16], sizes = [15, 8], strides = [1, 1]} : vector<15x96xf32> to vector<15x8xf32>
    %57 = arith.truncf %56 : vector<15x8xf32> to vector<15x8xbf16>
    %58 = vector.extract_strided_slice %1 {offsets = [0, 48], sizes = [15, 8], strides = [1, 1]} : vector<15x96xf32> to vector<15x8xf32>
    %59 = arith.truncf %58 : vector<15x8xf32> to vector<15x8xbf16>
    %60 = vector.extract_strided_slice %1 {offsets = [0, 80], sizes = [15, 8], strides = [1, 1]} : vector<15x96xf32> to vector<15x8xf32>
    %61 = arith.truncf %60 : vector<15x8xf32> to vector<15x8xbf16>
    %cst_18 = arith.constant dense<0.000000e+00> : vector<15x15xf32>
    %62 = tpu.matmul %57, %59, %cst_18 {dimension_numbers = #tpu.dot_dimension_numbers<[1], [1], [0], [0], [0, 0, 1, 0], [], []>} : vector<15x8xbf16>, vector<15x8xbf16>, vector<15x15xf32> -> vector<15x15xf32>
    %cst_19 = arith.constant 0.353553385 : f32
    %63 = vector.broadcast %cst_19 : f32 to vector<15x15xf32>
    %64 = arith.mulf %62, %63 : vector<15x15xf32>
    %cst_20 = arith.constant 5.000000e-01 : f32
    %65 = vector.broadcast %cst_20 : f32 to vector<1x15xf32>
    %66 = arith.cmpf ogt, %3, %65 : vector<1x15xf32>
    %cst_21 = arith.constant -9.99999986E+14 : f32
    %67 = vector.shape_cast %66 : vector<1x15xi1> to vector<1x15xi1>
    %68 = vector.broadcast %67 : vector<1x15xi1> to vector<15x15xi1>
    %69 = vector.broadcast %cst_21 : f32 to vector<15x15xf32>
    %70 = arith.select %68, %64, %69 : vector<15x15xi1>, vector<15x15xf32>
    %cst_22 = arith.constant dense<0xFF800000> : vector<15xf32>
    %71 = vector.multi_reduction <maximumf>, %70, %cst_22 [1] : vector<15x15xf32> to vector<15xf32>
    %72 = vector.shape_cast %71 : vector<15xf32> to vector<15x1xf32>
    %73 = vector.broadcast %72 : vector<15x1xf32> to vector<15x15xf32>
    %74 = arith.subf %70, %73 : vector<15x15xf32>
    %75 = math.exp %74 : vector<15x15xf32>
    %cst_23 = arith.constant dense<0.000000e+00> : vector<15xf32>
    %76 = vector.multi_reduction <add>, %75, %cst_23 [1] : vector<15x15xf32> to vector<15xf32>
    %77 = vector.shape_cast %76 : vector<15xf32> to vector<15x1xf32>
    %78 = vector.broadcast %77 : vector<15x1xf32> to vector<15x15xf32>
    %79 = arith.divf %75, %78 : vector<15x15xf32>
    %80 = arith.truncf %79 : vector<15x15xf32> to vector<15x15xbf16>
    %cst_24 = arith.constant dense<0.000000e+00> : vector<15x8xf32>
    %81 = tpu.matmul %80, %61, %cst_24 {dimension_numbers = #tpu.dot_dimension_numbers<[1], [0], [0], [1], [0, 0, 1, 1], [], []>} : vector<15x15xbf16>, vector<15x8xbf16>, vector<15x8xf32> -> vector<15x8xf32>
    %82 = vector.extract_strided_slice %1 {offsets = [0, 24], sizes = [15, 8], strides = [1, 1]} : vector<15x96xf32> to vector<15x8xf32>
    %83 = arith.truncf %82 : vector<15x8xf32> to vector<15x8xbf16>
    %84 = vector.extract_strided_slice %1 {offsets = [0, 56], sizes = [15, 8], strides = [1, 1]} : vector<15x96xf32> to vector<15x8xf32>
    %85 = arith.truncf %84 : vector<15x8xf32> to vector<15x8xbf16>
    %86 = vector.extract_strided_slice %1 {offsets = [0, 88], sizes = [15, 8], strides = [1, 1]} : vector<15x96xf32> to vector<15x8xf32>
    %87 = arith.truncf %86 : vector<15x8xf32> to vector<15x8xbf16>
    %cst_25 = arith.constant dense<0.000000e+00> : vector<15x15xf32>
    %88 = tpu.matmul %83, %85, %cst_25 {dimension_numbers = #tpu.dot_dimension_numbers<[1], [1], [0], [0], [0, 0, 1, 0], [], []>} : vector<15x8xbf16>, vector<15x8xbf16>, vector<15x15xf32> -> vector<15x15xf32>
    %cst_26 = arith.constant 0.353553385 : f32
    %89 = vector.broadcast %cst_26 : f32 to vector<15x15xf32>
    %90 = arith.mulf %88, %89 : vector<15x15xf32>
    %cst_27 = arith.constant 5.000000e-01 : f32
    %91 = vector.broadcast %cst_27 : f32 to vector<1x15xf32>
    %92 = arith.cmpf ogt, %3, %91 : vector<1x15xf32>
    %cst_28 = arith.constant -9.99999986E+14 : f32
    %93 = vector.shape_cast %92 : vector<1x15xi1> to vector<1x15xi1>
    %94 = vector.broadcast %93 : vector<1x15xi1> to vector<15x15xi1>
    %95 = vector.broadcast %cst_28 : f32 to vector<15x15xf32>
    %96 = arith.select %94, %90, %95 : vector<15x15xi1>, vector<15x15xf32>
    %cst_29 = arith.constant dense<0xFF800000> : vector<15xf32>
    %97 = vector.multi_reduction <maximumf>, %96, %cst_29 [1] : vector<15x15xf32> to vector<15xf32>
    %98 = vector.shape_cast %97 : vector<15xf32> to vector<15x1xf32>
    %99 = vector.broadcast %98 : vector<15x1xf32> to vector<15x15xf32>
    %100 = arith.subf %96, %99 : vector<15x15xf32>
    %101 = math.exp %100 : vector<15x15xf32>
    %cst_30 = arith.constant dense<0.000000e+00> : vector<15xf32>
    %102 = vector.multi_reduction <add>, %101, %cst_30 [1] : vector<15x15xf32> to vector<15xf32>
    %103 = vector.shape_cast %102 : vector<15xf32> to vector<15x1xf32>
    %104 = vector.broadcast %103 : vector<15x1xf32> to vector<15x15xf32>
    %105 = arith.divf %101, %104 : vector<15x15xf32>
    %106 = arith.truncf %105 : vector<15x15xf32> to vector<15x15xbf16>
    %cst_31 = arith.constant dense<0.000000e+00> : vector<15x8xf32>
    %107 = tpu.matmul %106, %87, %cst_31 {dimension_numbers = #tpu.dot_dimension_numbers<[1], [0], [0], [1], [0, 0, 1, 1], [], []>} : vector<15x15xbf16>, vector<15x8xbf16>, vector<15x8xf32> -> vector<15x8xf32>
    %108 = tpu.concatenate %29, %55, %81, %107 in 1 : vector<15x8xf32>, vector<15x8xf32>, vector<15x8xf32>, vector<15x8xf32> -> vector<15x32xf32>
    %c0_32 = arith.constant 0 : index
    %c0_33 = arith.constant 0 : index
    %c0_34 = arith.constant 0 : index
    %109 = vector.load %arg3[%c0_32, %c0_33, %c0_34] : memref<1x15x32xf32, #tpu.memory_space<vmem>>, vector<1x15x32xf32>
    %110 = vector.shape_cast %109 : vector<1x15x32xf32> to vector<15x32xf32>
    %111 = vector.shape_cast %108 : vector<15x32xf32> to vector<1x15x32xf32>
    tpu.vector_store %arg3[%c0_32, %c0_33, %c0_34], %111 {strides = array<i32>} : memref<1x15x32xf32, #tpu.memory_space<vmem>>, vector<1x15x32xf32>,
    return
  }
  func.func @transform_0(%arg0: i32) -> (i32, i32, i32) {
    %c0_i32 = arith.constant 0 : i32
    %c0_i32_0 = arith.constant 0 : i32
    %c0_i32_1 = arith.constant 0 : i32
    return %arg0, %c0_i32, %c0_i32_0 : i32, i32, i32
  }
  func.func @transform_1(%arg0: i32) -> (i32, i32, i32) {
    %c0_i32 = arith.constant 0 : i32
    %c0_i32_0 = arith.constant 0 : i32
    %c0_i32_1 = arith.constant 0 : i32
    return %arg0, %c0_i32, %c0_i32_0 : i32, i32, i32
  }
  func.func @transform_2(%arg0: i32) -> (i32, i32, i32) {
    %c0_i32 = arith.constant 0 : i32
    %c0_i32_0 = arith.constant 0 : i32
    %c0_i32_1 = arith.constant 0 : i32
    return %arg0, %c0_i32, %c0_i32_0 : i32, i32, i32
  }
}

module attributes {stable_mosaic.version = 11 : i64} {
  func.func @_linear_add_ln_kernel(%arg0: i32, %arg1: memref<32x32xf32, #tpu.memory_space<vmem>>, %arg2: memref<32x32xf32, #tpu.memory_space<vmem>>, %arg3: memref<32x32xbf16, #tpu.memory_space<vmem>>, %arg4: memref<1x32xf32, #tpu.memory_space<vmem>>, %arg5: memref<1x32xf32, #tpu.memory_space<vmem>>, %arg6: memref<1x32xf32, #tpu.memory_space<vmem>>, %arg7: memref<32x32xf32, #tpu.memory_space<vmem>>) attributes {dimension_semantics = [#tpu.dimension_semantics<parallel>], iteration_bounds = array<i64: 1>, scalar_prefetch = 0 : i64, scratch_operands = 0 : i64, tpu.core_type = #tpu.core_type<tc>, window_params = [{transform_indices = @transform_0, window_bounds = array<i64: 32, 32>}, {transform_indices = @transform_1, window_bounds = array<i64: 32, 32>}, {pipeline_mode = #tpu.pipeline_mode<synchronous>, transform_indices = @transform_2, window_bounds = array<i64: 32, 32>}, {pipeline_mode = #tpu.pipeline_mode<synchronous>, transform_indices = @transform_3, window_bounds = array<i64: 1, 32>}, {pipeline_mode = #tpu.pipeline_mode<synchronous>, transform_indices = @transform_4, window_bounds = array<i64: 1, 32>}, {pipeline_mode = #tpu.pipeline_mode<synchronous>, transform_indices = @transform_5, window_bounds = array<i64: 1, 32>}, {transform_indices = @transform_6, window_bounds = array<i64: 32, 32>}]} {
    %c0 = arith.constant 0 : index
    %c0_0 = arith.constant 0 : index
    %0 = vector.load %arg1[%c0, %c0_0] : memref<32x32xf32, #tpu.memory_space<vmem>>, vector<32x32xf32>
    %1 = arith.truncf %0 : vector<32x32xf32> to vector<32x32xbf16>
    %c0_1 = arith.constant 0 : index
    %c0_2 = arith.constant 0 : index
    %2 = vector.load %arg3[%c0_1, %c0_2] : memref<32x32xbf16, #tpu.memory_space<vmem>>, vector<32x32xbf16>
    %cst = arith.constant dense<0.000000e+00> : vector<32x32xf32>
    %3 = tpu.matmul %1, %2, %cst {dimension_numbers = #tpu.dot_dimension_numbers<[1], [0], [0], [1], [0, 0, 1, 1], [], []>} : vector<32x32xbf16>, vector<32x32xbf16>, vector<32x32xf32> -> vector<32x32xf32>
    %c0_3 = arith.constant 0 : index
    %c0_4 = arith.constant 0 : index
    %4 = vector.load %arg4[%c0_3, %c0_4] : memref<1x32xf32, #tpu.memory_space<vmem>>, vector<1x32xf32>
    %5 = vector.broadcast %4 : vector<1x32xf32> to vector<32x32xf32>
    %6 = arith.addf %3, %5 : vector<32x32xf32>
    %c0_5 = arith.constant 0 : index
    %c0_6 = arith.constant 0 : index
    %7 = vector.load %arg2[%c0_5, %c0_6] : memref<32x32xf32, #tpu.memory_space<vmem>>, vector<32x32xf32>
    %8 = arith.addf %7, %6 : vector<32x32xf32>
    %cst_7 = arith.constant dense<0.000000e+00> : vector<32xf32>
    %9 = vector.multi_reduction <add>, %8, %cst_7 [1] : vector<32x32xf32> to vector<32xf32>
    %10 = vector.shape_cast %9 : vector<32xf32> to vector<32x1xf32>
    %cst_8 = arith.constant 3.200000e+01 : f32
    %11 = vector.broadcast %cst_8 : f32 to vector<32x1xf32>
    %12 = arith.divf %10, %11 : vector<32x1xf32>
    %13 = vector.broadcast %12 : vector<32x1xf32> to vector<32x32xf32>
    %14 = arith.subf %8, %13 : vector<32x32xf32>
    %15 = arith.mulf %14, %14 : vector<32x32xf32>
    %cst_9 = arith.constant dense<0.000000e+00> : vector<32xf32>
    %16 = vector.multi_reduction <add>, %15, %cst_9 [1] : vector<32x32xf32> to vector<32xf32>
    %17 = vector.shape_cast %16 : vector<32xf32> to vector<32x1xf32>
    %cst_10 = arith.constant 3.200000e+01 : f32
    %18 = vector.broadcast %cst_10 : f32 to vector<32x1xf32>
    %19 = arith.divf %17, %18 : vector<32x1xf32>
    %20 = vector.broadcast %12 : vector<32x1xf32> to vector<32x32xf32>
    %21 = arith.subf %8, %20 : vector<32x32xf32>
    %cst_11 = arith.constant 9.99999974E-6 : f32
    %22 = vector.broadcast %cst_11 : f32 to vector<32x1xf32>
    %23 = arith.addf %19, %22 : vector<32x1xf32>
    %24 = math.rsqrt %23 : vector<32x1xf32>
    %25 = vector.broadcast %24 : vector<32x1xf32> to vector<32x32xf32>
    %26 = arith.mulf %21, %25 : vector<32x32xf32>
    %c0_12 = arith.constant 0 : index
    %c0_13 = arith.constant 0 : index
    %27 = vector.load %arg5[%c0_12, %c0_13] : memref<1x32xf32, #tpu.memory_space<vmem>>, vector<1x32xf32>
    %28 = vector.broadcast %27 : vector<1x32xf32> to vector<32x32xf32>
    %29 = arith.mulf %26, %28 : vector<32x32xf32>
    %c0_14 = arith.constant 0 : index
    %c0_15 = arith.constant 0 : index
    %30 = vector.load %arg6[%c0_14, %c0_15] : memref<1x32xf32, #tpu.memory_space<vmem>>, vector<1x32xf32>
    %31 = vector.broadcast %30 : vector<1x32xf32> to vector<32x32xf32>
    %32 = arith.addf %29, %31 : vector<32x32xf32>
    %c0_16 = arith.constant 0 : index
    %c0_17 = arith.constant 0 : index
    %33 = vector.load %arg7[%c0_16, %c0_17] : memref<32x32xf32, #tpu.memory_space<vmem>>, vector<32x32xf32>
    tpu.vector_store %arg7[%c0_16, %c0_17], %32 {strides = array<i32>} : memref<32x32xf32, #tpu.memory_space<vmem>>, vector<32x32xf32>,
    return
  }
  func.func @transform_0(%arg0: i32) -> (i32, i32) {
    %c0_i32 = arith.constant 0 : i32
    %c0_i32_0 = arith.constant 0 : i32
    return %arg0, %c0_i32 : i32, i32
  }
  func.func @transform_1(%arg0: i32) -> (i32, i32) {
    %c0_i32 = arith.constant 0 : i32
    %c0_i32_0 = arith.constant 0 : i32
    return %arg0, %c0_i32 : i32, i32
  }
  func.func @transform_2(%arg0: i32) -> (i32, i32) {
    %c0_i32 = arith.constant 0 : i32
    %c0_i32_0 = arith.constant 0 : i32
    %c0_i32_1 = arith.constant 0 : i32
    return %c0_i32, %c0_i32_0 : i32, i32
  }
  func.func @transform_3(%arg0: i32) -> (i32, i32) {
    %c0_i32 = arith.constant 0 : i32
    %c0_i32_0 = arith.constant 0 : i32
    %c0_i32_1 = arith.constant 0 : i32
    return %c0_i32, %c0_i32_0 : i32, i32
  }
  func.func @transform_4(%arg0: i32) -> (i32, i32) {
    %c0_i32 = arith.constant 0 : i32
    %c0_i32_0 = arith.constant 0 : i32
    %c0_i32_1 = arith.constant 0 : i32
    return %c0_i32, %c0_i32_0 : i32, i32
  }
  func.func @transform_5(%arg0: i32) -> (i32, i32) {
    %c0_i32 = arith.constant 0 : i32
    %c0_i32_0 = arith.constant 0 : i32
    %c0_i32_1 = arith.constant 0 : i32
    return %c0_i32, %c0_i32_0 : i32, i32
  }
  func.func @transform_6(%arg0: i32) -> (i32, i32) {
    %c0_i32 = arith.constant 0 : i32
    %c0_i32_0 = arith.constant 0 : i32
    return %arg0, %c0_i32 : i32, i32
  }
}

module attributes {stable_mosaic.version = 11 : i64} {
  func.func @_conv_module_kernel(%arg0: i32, %arg1: memref<1x15x32xf32, #tpu.memory_space<vmem>>, %arg2: memref<32x32xbf16, #tpu.memory_space<vmem>>, %arg3: memref<1x32xf32, #tpu.memory_space<vmem>>, %arg4: memref<5x32xf32, #tpu.memory_space<vmem>>, %arg5: memref<1x32xf32, #tpu.memory_space<vmem>>, %arg6: memref<1x32xf32, #tpu.memory_space<vmem>>, %arg7: memref<1x32xf32, #tpu.memory_space<vmem>>, %arg8: memref<32x32xbf16, #tpu.memory_space<vmem>>, %arg9: memref<1x32xf32, #tpu.memory_space<vmem>>, %arg10: memref<1x32xf32, #tpu.memory_space<vmem>>, %arg11: memref<1x32xf32, #tpu.memory_space<vmem>>, %arg12: memref<1x15x32xf32, #tpu.memory_space<vmem>>, %arg13: memref<19x32xf32, #tpu.memory_space<vmem>>) attributes {dimension_semantics = [#tpu.dimension_semantics<parallel>], iteration_bounds = array<i64: 2>, scalar_prefetch = 0 : i64, scratch_operands = 1 : i64, tpu.core_type = #tpu.core_type<tc>, window_params = [{transform_indices = @transform_0, window_bounds = array<i64: 1, 15, 32>}, {pipeline_mode = #tpu.pipeline_mode<synchronous>, transform_indices = @transform_1, window_bounds = array<i64: 32, 32>}, {pipeline_mode = #tpu.pipeline_mode<synchronous>, transform_indices = @transform_2, window_bounds = array<i64: 1, 32>}, {pipeline_mode = #tpu.pipeline_mode<synchronous>, transform_indices = @transform_3, window_bounds = array<i64: 5, 32>}, {pipeline_mode = #tpu.pipeline_mode<synchronous>, transform_indices = @transform_4, window_bounds = array<i64: 1, 32>}, {pipeline_mode = #tpu.pipeline_mode<synchronous>, transform_indices = @transform_5, window_bounds = array<i64: 1, 32>}, {pipeline_mode = #tpu.pipeline_mode<synchronous>, transform_indices = @transform_6, window_bounds = array<i64: 1, 32>}, {pipeline_mode = #tpu.pipeline_mode<synchronous>, transform_indices = @transform_7, window_bounds = array<i64: 32, 32>}, {pipeline_mode = #tpu.pipeline_mode<synchronous>, transform_indices = @transform_8, window_bounds = array<i64: 1, 32>}, {pipeline_mode = #tpu.pipeline_mode<synchronous>, transform_indices = @transform_9, window_bounds = array<i64: 1, 32>}, {pipeline_mode = #tpu.pipeline_mode<synchronous>, transform_indices = @transform_10, window_bounds = array<i64: 1, 32>}, {transform_indices = @transform_11, window_bounds = array<i64: 1, 15, 32>}]} {
    %c0 = arith.constant 0 : index
    %c0_0 = arith.constant 0 : index
    %c0_1 = arith.constant 0 : index
    %0 = vector.load %arg1[%c0, %c0_0, %c0_1] : memref<1x15x32xf32, #tpu.memory_space<vmem>>, vector<1x15x32xf32>
    %1 = vector.shape_cast %0 : vector<1x15x32xf32> to vector<15x32xf32>
    %2 = arith.truncf %1 : vector<15x32xf32> to vector<15x32xbf16>
    %c0_2 = arith.constant 0 : index
    %c0_3 = arith.constant 0 : index
    %3 = vector.load %arg2[%c0_2, %c0_3] : memref<32x32xbf16, #tpu.memory_space<vmem>>, vector<32x32xbf16>
    %cst = arith.constant dense<0.000000e+00> : vector<15x32xf32>
    %4 = tpu.matmul %2, %3, %cst {dimension_numbers = #tpu.dot_dimension_numbers<[1], [0], [0], [1], [0, 0, 1, 1], [], []>} : vector<15x32xbf16>, vector<32x32xbf16>, vector<15x32xf32> -> vector<15x32xf32>
    %c0_4 = arith.constant 0 : index
    %c0_5 = arith.constant 0 : index
    %5 = vector.load %arg3[%c0_4, %c0_5] : memref<1x32xf32, #tpu.memory_space<vmem>>, vector<1x32xf32>
    %6 = vector.broadcast %5 : vector<1x32xf32> to vector<15x32xf32>
    %7 = arith.addf %4, %6 : vector<15x32xf32>
    %8 = arith.negf %7 : vector<15x32xf32>
    %9 = math.exp %8 : vector<15x32xf32>
    %cst_6 = arith.constant 1.000000e+00 : f32
    %10 = vector.broadcast %cst_6 : f32 to vector<15x32xf32>
    %11 = arith.addf %10, %9 : vector<15x32xf32>
    %12 = arith.divf %10, %11 : vector<15x32xf32>
    %13 = arith.mulf %7, %12 : vector<15x32xf32>
    %cst_7 = arith.constant 0.000000e+00 : f32
    %14 = vector.broadcast %cst_7 : f32 to vector<19x32xf32>
    %c0_8 = arith.constant 0 : index
    %c0_9 = arith.constant 0 : index
    %15 = vector.load %arg13[%c0_8, %c0_9] : memref<19x32xf32, #tpu.memory_space<vmem>>, vector<19x32xf32>
    tpu.vector_store %arg13[%c0_8, %c0_9], %14 {strides = array<i32>} : memref<19x32xf32, #tpu.memory_space<vmem>>, vector<19x32xf32>,
    %c2 = arith.constant 2 : index
    %c0_10 = arith.constant 0 : index
    %16 = vector.load %arg13[%c2, %c0_10] : memref<19x32xf32, #tpu.memory_space<vmem>>, vector<15x32xf32>
    tpu.vector_store %arg13[%c2, %c0_10], %13 {strides = array<i32>} : memref<19x32xf32, #tpu.memory_space<vmem>>, vector<15x32xf32>,
    %c0_11 = arith.constant 0 : index
    %c0_12 = arith.constant 0 : index
    %17 = vector.load %arg4[%c0_11, %c0_12] : memref<5x32xf32, #tpu.memory_space<vmem>>, vector<5x32xf32>
    %cst_13 = arith.constant 0.000000e+00 : f32
    %18 = vector.broadcast %cst_13 : f32 to vector<15x32xf32>
    %c0_14 = arith.constant 0 : index
    %c0_15 = arith.constant 0 : index
    %19 = vector.load %arg13[%c0_14, %c0_15] : memref<19x32xf32, #tpu.memory_space<vmem>>, vector<15x32xf32>
    %20 = vector.extract_strided_slice %17 {offsets = [0, 0], sizes = [1, 32], strides = [1, 1]} : vector<5x32xf32> to vector<1x32xf32>
    %21 = vector.broadcast %20 : vector<1x32xf32> to vector<15x32xf32>
    %22 = arith.mulf %19, %21 : vector<15x32xf32>
    %23 = arith.addf %18, %22 : vector<15x32xf32>
    %c1 = arith.constant 1 : index
    %c0_16 = arith.constant 0 : index
    %24 = vector.load %arg13[%c1, %c0_16] : memref<19x32xf32, #tpu.memory_space<vmem>>, vector<15x32xf32>
    %25 = vector.extract_strided_slice %17 {offsets = [1, 0], sizes = [1, 32], strides = [1, 1]} : vector<5x32xf32> to vector<1x32xf32>
    %26 = vector.broadcast %25 : vector<1x32xf32> to vector<15x32xf32>
    %27 = arith.mulf %24, %26 : vector<15x32xf32>
    %28 = arith.addf %23, %27 : vector<15x32xf32>
    %c2_17 = arith.constant 2 : index
    %c0_18 = arith.constant 0 : index
    %29 = vector.load %arg13[%c2_17, %c0_18] : memref<19x32xf32, #tpu.memory_space<vmem>>, vector<15x32xf32>
    %30 = vector.extract_strided_slice %17 {offsets = [2, 0], sizes = [1, 32], strides = [1, 1]} : vector<5x32xf32> to vector<1x32xf32>
    %31 = vector.broadcast %30 : vector<1x32xf32> to vector<15x32xf32>
    %32 = arith.mulf %29, %31 : vector<15x32xf32>
    %33 = arith.addf %28, %32 : vector<15x32xf32>
    %c3 = arith.constant 3 : index
    %c0_19 = arith.constant 0 : index
    %34 = vector.load %arg13[%c3, %c0_19] : memref<19x32xf32, #tpu.memory_space<vmem>>, vector<15x32xf32>
    %35 = vector.extract_strided_slice %17 {offsets = [3, 0], sizes = [1, 32], strides = [1, 1]} : vector<5x32xf32> to vector<1x32xf32>
    %36 = vector.broadcast %35 : vector<1x32xf32> to vector<15x32xf32>
    %37 = arith.mulf %34, %36 : vector<15x32xf32>
    %38 = arith.addf %33, %37 : vector<15x32xf32>
    %c4 = arith.constant 4 : index
    %c0_20 = arith.constant 0 : index
    %39 = vector.load %arg13[%c4, %c0_20] : memref<19x32xf32, #tpu.memory_space<vmem>>, vector<15x32xf32>
    %40 = vector.extract_strided_slice %17 {offsets = [4, 0], sizes = [1, 32], strides = [1, 1]} : vector<5x32xf32> to vector<1x32xf32>
    %41 = vector.broadcast %40 : vector<1x32xf32> to vector<15x32xf32>
    %42 = arith.mulf %39, %41 : vector<15x32xf32>
    %43 = arith.addf %38, %42 : vector<15x32xf32>
    %c0_21 = arith.constant 0 : index
    %c0_22 = arith.constant 0 : index
    %44 = vector.load %arg5[%c0_21, %c0_22] : memref<1x32xf32, #tpu.memory_space<vmem>>, vector<1x32xf32>
    %45 = vector.broadcast %44 : vector<1x32xf32> to vector<15x32xf32>
    %46 = arith.addf %43, %45 : vector<15x32xf32>
    %c0_23 = arith.constant 0 : index
    %c0_24 = arith.constant 0 : index
    %47 = vector.load %arg6[%c0_23, %c0_24] : memref<1x32xf32, #tpu.memory_space<vmem>>, vector<1x32xf32>
    %48 = vector.broadcast %47 : vector<1x32xf32> to vector<15x32xf32>
    %49 = arith.mulf %46, %48 : vector<15x32xf32>
    %c0_25 = arith.constant 0 : index
    %c0_26 = arith.constant 0 : index
    %50 = vector.load %arg7[%c0_25, %c0_26] : memref<1x32xf32, #tpu.memory_space<vmem>>, vector<1x32xf32>
    %51 = vector.broadcast %50 : vector<1x32xf32> to vector<15x32xf32>
    %52 = arith.addf %49, %51 : vector<15x32xf32>
    %53 = arith.negf %52 : vector<15x32xf32>
    %54 = math.exp %53 : vector<15x32xf32>
    %cst_27 = arith.constant 1.000000e+00 : f32
    %55 = vector.broadcast %cst_27 : f32 to vector<15x32xf32>
    %56 = arith.addf %55, %54 : vector<15x32xf32>
    %57 = arith.divf %55, %56 : vector<15x32xf32>
    %58 = arith.mulf %52, %57 : vector<15x32xf32>
    %59 = arith.truncf %58 : vector<15x32xf32> to vector<15x32xbf16>
    %c0_28 = arith.constant 0 : index
    %c0_29 = arith.constant 0 : index
    %60 = vector.load %arg8[%c0_28, %c0_29] : memref<32x32xbf16, #tpu.memory_space<vmem>>, vector<32x32xbf16>
    %cst_30 = arith.constant dense<0.000000e+00> : vector<15x32xf32>
    %61 = tpu.matmul %59, %60, %cst_30 {dimension_numbers = #tpu.dot_dimension_numbers<[1], [0], [0], [1], [0, 0, 1, 1], [], []>} : vector<15x32xbf16>, vector<32x32xbf16>, vector<15x32xf32> -> vector<15x32xf32>
    %c0_31 = arith.constant 0 : index
    %c0_32 = arith.constant 0 : index
    %62 = vector.load %arg9[%c0_31, %c0_32] : memref<1x32xf32, #tpu.memory_space<vmem>>, vector<1x32xf32>
    %63 = vector.broadcast %62 : vector<1x32xf32> to vector<15x32xf32>
    %64 = arith.addf %61, %63 : vector<15x32xf32>
    %65 = arith.addf %1, %64 : vector<15x32xf32>
    %cst_33 = arith.constant dense<0.000000e+00> : vector<15xf32>
    %66 = vector.multi_reduction <add>, %65, %cst_33 [1] : vector<15x32xf32> to vector<15xf32>
    %67 = vector.shape_cast %66 : vector<15xf32> to vector<15x1xf32>
    %cst_34 = arith.constant 3.200000e+01 : f32
    %68 = vector.broadcast %cst_34 : f32 to vector<15x1xf32>
    %69 = arith.divf %67, %68 : vector<15x1xf32>
    %70 = vector.broadcast %69 : vector<15x1xf32> to vector<15x32xf32>
    %71 = arith.subf %65, %70 : vector<15x32xf32>
    %72 = arith.mulf %71, %71 : vector<15x32xf32>
    %cst_35 = arith.constant dense<0.000000e+00> : vector<15xf32>
    %73 = vector.multi_reduction <add>, %72, %cst_35 [1] : vector<15x32xf32> to vector<15xf32>
    %74 = vector.shape_cast %73 : vector<15xf32> to vector<15x1xf32>
    %cst_36 = arith.constant 3.200000e+01 : f32
    %75 = vector.broadcast %cst_36 : f32 to vector<15x1xf32>
    %76 = arith.divf %74, %75 : vector<15x1xf32>
    %77 = vector.broadcast %69 : vector<15x1xf32> to vector<15x32xf32>
    %78 = arith.subf %65, %77 : vector<15x32xf32>
    %cst_37 = arith.constant 9.99999974E-6 : f32
    %79 = vector.broadcast %cst_37 : f32 to vector<15x1xf32>
    %80 = arith.addf %76, %79 : vector<15x1xf32>
    %81 = math.rsqrt %80 : vector<15x1xf32>
    %82 = vector.broadcast %81 : vector<15x1xf32> to vector<15x32xf32>
    %83 = arith.mulf %78, %82 : vector<15x32xf32>
    %c0_38 = arith.constant 0 : index
    %c0_39 = arith.constant 0 : index
    %84 = vector.load %arg10[%c0_38, %c0_39] : memref<1x32xf32, #tpu.memory_space<vmem>>, vector<1x32xf32>
    %85 = vector.broadcast %84 : vector<1x32xf32> to vector<15x32xf32>
    %86 = arith.mulf %83, %85 : vector<15x32xf32>
    %c0_40 = arith.constant 0 : index
    %c0_41 = arith.constant 0 : index
    %87 = vector.load %arg11[%c0_40, %c0_41] : memref<1x32xf32, #tpu.memory_space<vmem>>, vector<1x32xf32>
    %88 = vector.broadcast %87 : vector<1x32xf32> to vector<15x32xf32>
    %89 = arith.addf %86, %88 : vector<15x32xf32>
    %c0_42 = arith.constant 0 : index
    %c0_43 = arith.constant 0 : index
    %c0_44 = arith.constant 0 : index
    %90 = vector.load %arg12[%c0_42, %c0_43, %c0_44] : memref<1x15x32xf32, #tpu.memory_space<vmem>>, vector<1x15x32xf32>
    %91 = vector.shape_cast %90 : vector<1x15x32xf32> to vector<15x32xf32>
    %92 = vector.shape_cast %89 : vector<15x32xf32> to vector<1x15x32xf32>
    tpu.vector_store %arg12[%c0_42, %c0_43, %c0_44], %92 {strides = array<i32>} : memref<1x15x32xf32, #tpu.memory_space<vmem>>, vector<1x15x32xf32>,
    return
  }
  func.func @transform_0(%arg0: i32) -> (i32, i32, i32) {
    %c0_i32 = arith.constant 0 : i32
    %c0_i32_0 = arith.constant 0 : i32
    %c0_i32_1 = arith.constant 0 : i32
    return %arg0, %c0_i32, %c0_i32_0 : i32, i32, i32
  }
  func.func @transform_1(%arg0: i32) -> (i32, i32) {
    %c0_i32 = arith.constant 0 : i32
    %c0_i32_0 = arith.constant 0 : i32
    %c0_i32_1 = arith.constant 0 : i32
    return %c0_i32, %c0_i32_0 : i32, i32
  }
  func.func @transform_2(%arg0: i32) -> (i32, i32) {
    %c0_i32 = arith.constant 0 : i32
    %c0_i32_0 = arith.constant 0 : i32
    %c0_i32_1 = arith.constant 0 : i32
    return %c0_i32, %c0_i32_0 : i32, i32
  }
  func.func @transform_3(%arg0: i32) -> (i32, i32) {
    %c0_i32 = arith.constant 0 : i32
    %c0_i32_0 = arith.constant 0 : i32
    %c0_i32_1 = arith.constant 0 : i32
    return %c0_i32, %c0_i32_0 : i32, i32
  }
  func.func @transform_4(%arg0: i32) -> (i32, i32) {
    %c0_i32 = arith.constant 0 : i32
    %c0_i32_0 = arith.constant 0 : i32
    %c0_i32_1 = arith.constant 0 : i32
    return %c0_i32, %c0_i32_0 : i32, i32
  }
  func.func @transform_5(%arg0: i32) -> (i32, i32) {
    %c0_i32 = arith.constant 0 : i32
    %c0_i32_0 = arith.constant 0 : i32
    %c0_i32_1 = arith.constant 0 : i32
    return %c0_i32, %c0_i32_0 : i32, i32
  }
  func.func @transform_6(%arg0: i32) -> (i32, i32) {
    %c0_i32 = arith.constant 0 : i32
    %c0_i32_0 = arith.constant 0 : i32
    %c0_i32_1 = arith.constant 0 : i32
    return %c0_i32, %c0_i32_0 : i32, i32
  }
  func.func @transform_7(%arg0: i32) -> (i32, i32) {
    %c0_i32 = arith.constant 0 : i32
    %c0_i32_0 = arith.constant 0 : i32
    %c0_i32_1 = arith.constant 0 : i32
    return %c0_i32, %c0_i32_0 : i32, i32
  }
  func.func @transform_8(%arg0: i32) -> (i32, i32) {
    %c0_i32 = arith.constant 0 : i32
    %c0_i32_0 = arith.constant 0 : i32
    %c0_i32_1 = arith.constant 0 : i32
    return %c0_i32, %c0_i32_0 : i32, i32
  }
  func.func @transform_9(%arg0: i32) -> (i32, i32) {
    %c0_i32 = arith.constant 0 : i32
    %c0_i32_0 = arith.constant 0 : i32
    %c0_i32_1 = arith.constant 0 : i32
    return %c0_i32, %c0_i32_0 : i32, i32
  }
  func.func @transform_10(%arg0: i32) -> (i32, i32) {
    %c0_i32 = arith.constant 0 : i32
    %c0_i32_0 = arith.constant 0 : i32
    %c0_i32_1 = arith.constant 0 : i32
    return %c0_i32, %c0_i32_0 : i32, i32
  }
  func.func @transform_11(%arg0: i32) -> (i32, i32, i32) {
    %c0_i32 = arith.constant 0 : i32
    %c0_i32_0 = arith.constant 0 : i32
    %c0_i32_1 = arith.constant 0 : i32
    return %arg0, %c0_i32, %c0_i32_0 : i32, i32, i32
  }
}

module attributes {stable_mosaic.version = 11 : i64} {
  func.func @_ffn_ln_kernel(%arg0: i32, %arg1: memref<32x32xf32, #tpu.memory_space<vmem>>, %arg2: memref<32x64xbf16, #tpu.memory_space<vmem>>, %arg3: memref<1x64xf32, #tpu.memory_space<vmem>>, %arg4: memref<64x32xbf16, #tpu.memory_space<vmem>>, %arg5: memref<1x32xf32, #tpu.memory_space<vmem>>, %arg6: memref<1x32xf32, #tpu.memory_space<vmem>>, %arg7: memref<1x32xf32, #tpu.memory_space<vmem>>, %arg8: memref<32x32xf32, #tpu.memory_space<vmem>>) attributes {dimension_semantics = [#tpu.dimension_semantics<parallel>], iteration_bounds = array<i64: 1>, scalar_prefetch = 0 : i64, scratch_operands = 0 : i64, tpu.core_type = #tpu.core_type<tc>, window_params = [{transform_indices = @transform_0, window_bounds = array<i64: 32, 32>}, {pipeline_mode = #tpu.pipeline_mode<synchronous>, transform_indices = @transform_1, window_bounds = array<i64: 32, 64>}, {pipeline_mode = #tpu.pipeline_mode<synchronous>, transform_indices = @transform_2, window_bounds = array<i64: 1, 64>}, {pipeline_mode = #tpu.pipeline_mode<synchronous>, transform_indices = @transform_3, window_bounds = array<i64: 64, 32>}, {pipeline_mode = #tpu.pipeline_mode<synchronous>, transform_indices = @transform_4, window_bounds = array<i64: 1, 32>}, {pipeline_mode = #tpu.pipeline_mode<synchronous>, transform_indices = @transform_5, window_bounds = array<i64: 1, 32>}, {pipeline_mode = #tpu.pipeline_mode<synchronous>, transform_indices = @transform_6, window_bounds = array<i64: 1, 32>}, {transform_indices = @transform_7, window_bounds = array<i64: 32, 32>}]} {
    %c0 = arith.constant 0 : index
    %c0_0 = arith.constant 0 : index
    %0 = vector.load %arg1[%c0, %c0_0] : memref<32x32xf32, #tpu.memory_space<vmem>>, vector<32x32xf32>
    %1 = arith.truncf %0 : vector<32x32xf32> to vector<32x32xbf16>
    %c0_1 = arith.constant 0 : index
    %c0_2 = arith.constant 0 : index
    %2 = vector.load %arg2[%c0_1, %c0_2] : memref<32x64xbf16, #tpu.memory_space<vmem>>, vector<32x64xbf16>
    %cst = arith.constant dense<0.000000e+00> : vector<32x64xf32>
    %3 = tpu.matmul %1, %2, %cst {dimension_numbers = #tpu.dot_dimension_numbers<[1], [0], [0], [1], [0, 0, 1, 1], [], []>} : vector<32x32xbf16>, vector<32x64xbf16>, vector<32x64xf32> -> vector<32x64xf32>
    %c0_3 = arith.constant 0 : index
    %c0_4 = arith.constant 0 : index
    %4 = vector.load %arg3[%c0_3, %c0_4] : memref<1x64xf32, #tpu.memory_space<vmem>>, vector<1x64xf32>
    %5 = vector.broadcast %4 : vector<1x64xf32> to vector<32x64xf32>
    %6 = arith.addf %3, %5 : vector<32x64xf32>
    %7 = arith.negf %6 : vector<32x64xf32>
    %8 = math.exp %7 : vector<32x64xf32>
    %cst_5 = arith.constant 1.000000e+00 : f32
    %9 = vector.broadcast %cst_5 : f32 to vector<32x64xf32>
    %10 = arith.addf %9, %8 : vector<32x64xf32>
    %11 = arith.divf %9, %10 : vector<32x64xf32>
    %12 = arith.mulf %6, %11 : vector<32x64xf32>
    %13 = arith.truncf %12 : vector<32x64xf32> to vector<32x64xbf16>
    %c0_6 = arith.constant 0 : index
    %c0_7 = arith.constant 0 : index
    %14 = vector.load %arg4[%c0_6, %c0_7] : memref<64x32xbf16, #tpu.memory_space<vmem>>, vector<64x32xbf16>
    %cst_8 = arith.constant dense<0.000000e+00> : vector<32x32xf32>
    %15 = tpu.matmul %13, %14, %cst_8 {dimension_numbers = #tpu.dot_dimension_numbers<[1], [0], [0], [1], [0, 0, 1, 1], [], []>} : vector<32x64xbf16>, vector<64x32xbf16>, vector<32x32xf32> -> vector<32x32xf32>
    %c0_9 = arith.constant 0 : index
    %c0_10 = arith.constant 0 : index
    %16 = vector.load %arg5[%c0_9, %c0_10] : memref<1x32xf32, #tpu.memory_space<vmem>>, vector<1x32xf32>
    %17 = vector.broadcast %16 : vector<1x32xf32> to vector<32x32xf32>
    %18 = arith.addf %15, %17 : vector<32x32xf32>
    %19 = arith.addf %0, %18 : vector<32x32xf32>
    %cst_11 = arith.constant dense<0.000000e+00> : vector<32xf32>
    %20 = vector.multi_reduction <add>, %19, %cst_11 [1] : vector<32x32xf32> to vector<32xf32>
    %21 = vector.shape_cast %20 : vector<32xf32> to vector<32x1xf32>
    %cst_12 = arith.constant 3.200000e+01 : f32
    %22 = vector.broadcast %cst_12 : f32 to vector<32x1xf32>
    %23 = arith.divf %21, %22 : vector<32x1xf32>
    %24 = vector.broadcast %23 : vector<32x1xf32> to vector<32x32xf32>
    %25 = arith.subf %19, %24 : vector<32x32xf32>
    %26 = arith.mulf %25, %25 : vector<32x32xf32>
    %cst_13 = arith.constant dense<0.000000e+00> : vector<32xf32>
    %27 = vector.multi_reduction <add>, %26, %cst_13 [1] : vector<32x32xf32> to vector<32xf32>
    %28 = vector.shape_cast %27 : vector<32xf32> to vector<32x1xf32>
    %cst_14 = arith.constant 3.200000e+01 : f32
    %29 = vector.broadcast %cst_14 : f32 to vector<32x1xf32>
    %30 = arith.divf %28, %29 : vector<32x1xf32>
    %31 = vector.broadcast %23 : vector<32x1xf32> to vector<32x32xf32>
    %32 = arith.subf %19, %31 : vector<32x32xf32>
    %cst_15 = arith.constant 9.99999974E-6 : f32
    %33 = vector.broadcast %cst_15 : f32 to vector<32x1xf32>
    %34 = arith.addf %30, %33 : vector<32x1xf32>
    %35 = math.rsqrt %34 : vector<32x1xf32>
    %36 = vector.broadcast %35 : vector<32x1xf32> to vector<32x32xf32>
    %37 = arith.mulf %32, %36 : vector<32x32xf32>
    %c0_16 = arith.constant 0 : index
    %c0_17 = arith.constant 0 : index
    %38 = vector.load %arg6[%c0_16, %c0_17] : memref<1x32xf32, #tpu.memory_space<vmem>>, vector<1x32xf32>
    %39 = vector.broadcast %38 : vector<1x32xf32> to vector<32x32xf32>
    %40 = arith.mulf %37, %39 : vector<32x32xf32>
    %c0_18 = arith.constant 0 : index
    %c0_19 = arith.constant 0 : index
    %41 = vector.load %arg7[%c0_18, %c0_19] : memref<1x32xf32, #tpu.memory_space<vmem>>, vector<1x32xf32>
    %42 = vector.broadcast %41 : vector<1x32xf32> to vector<32x32xf32>
    %43 = arith.addf %40, %42 : vector<32x32xf32>
    %c0_20 = arith.constant 0 : index
    %c0_21 = arith.constant 0 : index
    %44 = vector.load %arg8[%c0_20, %c0_21] : memref<32x32xf32, #tpu.memory_space<vmem>>, vector<32x32xf32>
    tpu.vector_store %arg8[%c0_20, %c0_21], %43 {strides = array<i32>} : memref<32x32xf32, #tpu.memory_space<vmem>>, vector<32x32xf32>,
    return
  }
  func.func @transform_0(%arg0: i32) -> (i32, i32) {
    %c0_i32 = arith.constant 0 : i32
    %c0_i32_0 = arith.constant 0 : i32
    return %arg0, %c0_i32 : i32, i32
  }
  func.func @transform_1(%arg0: i32) -> (i32, i32) {
    %c0_i32 = arith.constant 0 : i32
    %c0_i32_0 = arith.constant 0 : i32
    %c0_i32_1 = arith.constant 0 : i32
    return %c0_i32, %c0_i32_0 : i32, i32
  }
  func.func @transform_2(%arg0: i32) -> (i32, i32) {
    %c0_i32 = arith.constant 0 : i32
    %c0_i32_0 = arith.constant 0 : i32
    %c0_i32_1 = arith.constant 0 : i32
    return %c0_i32, %c0_i32_0 : i32, i32
  }
  func.func @transform_3(%arg0: i32) -> (i32, i32) {
    %c0_i32 = arith.constant 0 : i32
    %c0_i32_0 = arith.constant 0 : i32
    %c0_i32_1 = arith.constant 0 : i32
    return %c0_i32, %c0_i32_0 : i32, i32
  }
  func.func @transform_4(%arg0: i32) -> (i32, i32) {
    %c0_i32 = arith.constant 0 : i32
    %c0_i32_0 = arith.constant 0 : i32
    %c0_i32_1 = arith.constant 0 : i32
    return %c0_i32, %c0_i32_0 : i32, i32
  }
  func.func @transform_5(%arg0: i32) -> (i32, i32) {
    %c0_i32 = arith.constant 0 : i32
    %c0_i32_0 = arith.constant 0 : i32
    %c0_i32_1 = arith.constant 0 : i32
    return %c0_i32, %c0_i32_0 : i32, i32
  }
  func.func @transform_6(%arg0: i32) -> (i32, i32) {
    %c0_i32 = arith.constant 0 : i32
    %c0_i32_0 = arith.constant 0 : i32
    %c0_i32_1 = arith.constant 0 : i32
    return %c0_i32, %c0_i32_0 : i32, i32
  }
  func.func @transform_7(%arg0: i32) -> (i32, i32) {
    %c0_i32 = arith.constant 0 : i32
    %c0_i32_0 = arith.constant 0 : i32
    return %arg0, %c0_i32 : i32, i32
  }
}

module attributes {stable_mosaic.version = 11 : i64} {
  func.func @_dwconv_taps_kernel(%arg0: i32, %arg1: memref<3x1x7x32xf32, #tpu.memory_space<vmem>>, %arg2: memref<3x32xf32, #tpu.memory_space<vmem>>, %arg3: memref<1x32xf32, #tpu.memory_space<vmem>>, %arg4: memref<1x7x32xf32, #tpu.memory_space<vmem>>) attributes {dimension_semantics = [#tpu.dimension_semantics<parallel>], iteration_bounds = array<i64: 2>, scalar_prefetch = 0 : i64, scratch_operands = 0 : i64, tpu.core_type = #tpu.core_type<tc>, window_params = [{transform_indices = @transform_0, window_bounds = array<i64: 3, 1, 7, 32>}, {pipeline_mode = #tpu.pipeline_mode<synchronous>, transform_indices = @transform_1, window_bounds = array<i64: 3, 32>}, {pipeline_mode = #tpu.pipeline_mode<synchronous>, transform_indices = @transform_2, window_bounds = array<i64: 1, 32>}, {transform_indices = @transform_3, window_bounds = array<i64: 1, 7, 32>}]} {
    %c0 = arith.constant 0 : index
    %c0_0 = arith.constant 0 : index
    %c0_1 = arith.constant 0 : index
    %c0_2 = arith.constant 0 : index
    %0 = vector.load %arg1[%c0, %c0_0, %c0_1, %c0_2] : memref<3x1x7x32xf32, #tpu.memory_space<vmem>>, vector<3x1x7x32xf32>
    %c0_3 = arith.constant 0 : index
    %c0_4 = arith.constant 0 : index
    %1 = vector.load %arg2[%c0_3, %c0_4] : memref<3x32xf32, #tpu.memory_space<vmem>>, vector<3x32xf32>
    %cst = arith.constant 0.000000e+00 : f32
    %2 = vector.broadcast %cst : f32 to vector<1x7x32xf32>
    %3 = vector.extract_strided_slice %0 {offsets = [0, 0, 0, 0], sizes = [1, 1, 7, 32], strides = [1, 1, 1, 1]} : vector<3x1x7x32xf32> to vector<1x1x7x32xf32>
    %4 = vector.shape_cast %3 : vector<1x1x7x32xf32> to vector<1x7x32xf32>
    %5 = vector.extract_strided_slice %1 {offsets = [0, 0], sizes = [1, 32], strides = [1, 1]} : vector<3x32xf32> to vector<1x32xf32>
    %6 = vector.shape_cast %5 : vector<1x32xf32> to vector<1x1x32xf32>
    %7 = vector.broadcast %6 : vector<1x1x32xf32> to vector<1x7x32xf32>
    %8 = arith.mulf %4, %7 : vector<1x7x32xf32>
    %9 = arith.addf %2, %8 : vector<1x7x32xf32>
    %10 = vector.extract_strided_slice %0 {offsets = [1, 0, 0, 0], sizes = [1, 1, 7, 32], strides = [1, 1, 1, 1]} : vector<3x1x7x32xf32> to vector<1x1x7x32xf32>
    %11 = vector.shape_cast %10 : vector<1x1x7x32xf32> to vector<1x7x32xf32>
    %12 = vector.extract_strided_slice %1 {offsets = [1, 0], sizes = [1, 32], strides = [1, 1]} : vector<3x32xf32> to vector<1x32xf32>
    %13 = vector.shape_cast %12 : vector<1x32xf32> to vector<1x1x32xf32>
    %14 = vector.broadcast %13 : vector<1x1x32xf32> to vector<1x7x32xf32>
    %15 = arith.mulf %11, %14 : vector<1x7x32xf32>
    %16 = arith.addf %9, %15 : vector<1x7x32xf32>
    %17 = vector.extract_strided_slice %0 {offsets = [2, 0, 0, 0], sizes = [1, 1, 7, 32], strides = [1, 1, 1, 1]} : vector<3x1x7x32xf32> to vector<1x1x7x32xf32>
    %18 = vector.shape_cast %17 : vector<1x1x7x32xf32> to vector<1x7x32xf32>
    %19 = vector.extract_strided_slice %1 {offsets = [2, 0], sizes = [1, 32], strides = [1, 1]} : vector<3x32xf32> to vector<1x32xf32>
    %20 = vector.shape_cast %19 : vector<1x32xf32> to vector<1x1x32xf32>
    %21 = vector.broadcast %20 : vector<1x1x32xf32> to vector<1x7x32xf32>
    %22 = arith.mulf %18, %21 : vector<1x7x32xf32>
    %23 = arith.addf %16, %22 : vector<1x7x32xf32>
    %c0_5 = arith.constant 0 : index
    %c0_6 = arith.constant 0 : index
    %24 = vector.load %arg3[%c0_5, %c0_6] : memref<1x32xf32, #tpu.memory_space<vmem>>, vector<1x32xf32>
    %25 = vector.shape_cast %24 : vector<1x32xf32> to vector<1x1x32xf32>
    %26 = vector.broadcast %25 : vector<1x1x32xf32> to vector<1x7x32xf32>
    %27 = arith.addf %23, %26 : vector<1x7x32xf32>
    %c0_7 = arith.constant 0 : index
    %c0_8 = arith.constant 0 : index
    %c0_9 = arith.constant 0 : index
    %28 = vector.load %arg4[%c0_7, %c0_8, %c0_9] : memref<1x7x32xf32, #tpu.memory_space<vmem>>, vector<1x7x32xf32>
    tpu.vector_store %arg4[%c0_7, %c0_8, %c0_9], %27 {strides = array<i32>} : memref<1x7x32xf32, #tpu.memory_space<vmem>>, vector<1x7x32xf32>,
    return
  }
  func.func @transform_0(%arg0: i32) -> (i32, i32, i32, i32) {
    %c0_i32 = arith.constant 0 : i32
    %c0_i32_0 = arith.constant 0 : i32
    %c0_i32_1 = arith.constant 0 : i32
    %c0_i32_2 = arith.constant 0 : i32
    return %c0_i32, %arg0, %c0_i32_0, %c0_i32_1 : i32, i32, i32, i32
  }
  func.func @transform_1(%arg0: i32) -> (i32, i32) {
    %c0_i32 = arith.constant 0 : i32
    %c0_i32_0 = arith.constant 0 : i32
    %c0_i32_1 = arith.constant 0 : i32
    return %c0_i32, %c0_i32_0 : i32, i32
  }
  func.func @transform_2(%arg0: i32) -> (i32, i32) {
    %c0_i32 = arith.constant 0 : i32
    %c0_i32_0 = arith.constant 0 : i32
    %c0_i32_1 = arith.constant 0 : i32
    return %c0_i32, %c0_i32_0 : i32, i32
  }
  func.func @transform_3(%arg0: i32) -> (i32, i32, i32) {
    %c0_i32 = arith.constant 0 : i32
    %c0_i32_0 = arith.constant 0 : i32
    %c0_i32_1 = arith.constant 0 : i32
    return %arg0, %c0_i32, %c0_i32_0 : i32, i32, i32
  }
}

module attributes {stable_mosaic.version = 11 : i64} {
  func.func @_attn_kernel(%arg0: i32, %arg1: memref<1x7x96xf32, #tpu.memory_space<vmem>>, %arg2: memref<1x1x7xf32, #tpu.memory_space<vmem>>, %arg3: memref<1x7x32xf32, #tpu.memory_space<vmem>>) attributes {dimension_semantics = [#tpu.dimension_semantics<parallel>], iteration_bounds = array<i64: 2>, scalar_prefetch = 0 : i64, scratch_operands = 0 : i64, tpu.core_type = #tpu.core_type<tc>, window_params = [{transform_indices = @transform_0, window_bounds = array<i64: 1, 7, 96>}, {transform_indices = @transform_1, window_bounds = array<i64: 1, 1, 7>}, {transform_indices = @transform_2, window_bounds = array<i64: 1, 7, 32>}]} {
    %c0 = arith.constant 0 : index
    %c0_0 = arith.constant 0 : index
    %c0_1 = arith.constant 0 : index
    %0 = vector.load %arg1[%c0, %c0_0, %c0_1] : memref<1x7x96xf32, #tpu.memory_space<vmem>>, vector<1x7x96xf32>
    %1 = vector.shape_cast %0 : vector<1x7x96xf32> to vector<7x96xf32>
    %c0_2 = arith.constant 0 : index
    %c0_3 = arith.constant 0 : index
    %c0_4 = arith.constant 0 : index
    %2 = vector.load %arg2[%c0_2, %c0_3, %c0_4] : memref<1x1x7xf32, #tpu.memory_space<vmem>>, vector<1x1x7xf32>
    %3 = vector.shape_cast %2 : vector<1x1x7xf32> to vector<1x7xf32>
    %4 = vector.extract_strided_slice %1 {offsets = [0, 0], sizes = [7, 8], strides = [1, 1]} : vector<7x96xf32> to vector<7x8xf32>
    %5 = arith.truncf %4 : vector<7x8xf32> to vector<7x8xbf16>
    %6 = vector.extract_strided_slice %1 {offsets = [0, 32], sizes = [7, 8], strides = [1, 1]} : vector<7x96xf32> to vector<7x8xf32>
    %7 = arith.truncf %6 : vector<7x8xf32> to vector<7x8xbf16>
    %8 = vector.extract_strided_slice %1 {offsets = [0, 64], sizes = [7, 8], strides = [1, 1]} : vector<7x96xf32> to vector<7x8xf32>
    %9 = arith.truncf %8 : vector<7x8xf32> to vector<7x8xbf16>
    %cst = arith.constant dense<0.000000e+00> : vector<7x7xf32>
    %10 = tpu.matmul %5, %7, %cst {dimension_numbers = #tpu.dot_dimension_numbers<[1], [1], [0], [0], [0, 0, 1, 0], [], []>} : vector<7x8xbf16>, vector<7x8xbf16>, vector<7x7xf32> -> vector<7x7xf32>
    %cst_5 = arith.constant 0.353553385 : f32
    %11 = vector.broadcast %cst_5 : f32 to vector<7x7xf32>
    %12 = arith.mulf %10, %11 : vector<7x7xf32>
    %cst_6 = arith.constant 5.000000e-01 : f32
    %13 = vector.broadcast %cst_6 : f32 to vector<1x7xf32>
    %14 = arith.cmpf ogt, %3, %13 : vector<1x7xf32>
    %cst_7 = arith.constant -9.99999986E+14 : f32
    %15 = vector.shape_cast %14 : vector<1x7xi1> to vector<1x7xi1>
    %16 = vector.broadcast %15 : vector<1x7xi1> to vector<7x7xi1>
    %17 = vector.broadcast %cst_7 : f32 to vector<7x7xf32>
    %18 = arith.select %16, %12, %17 : vector<7x7xi1>, vector<7x7xf32>
    %cst_8 = arith.constant dense<0xFF800000> : vector<7xf32>
    %19 = vector.multi_reduction <maximumf>, %18, %cst_8 [1] : vector<7x7xf32> to vector<7xf32>
    %20 = vector.shape_cast %19 : vector<7xf32> to vector<7x1xf32>
    %21 = vector.broadcast %20 : vector<7x1xf32> to vector<7x7xf32>
    %22 = arith.subf %18, %21 : vector<7x7xf32>
    %23 = math.exp %22 : vector<7x7xf32>
    %cst_9 = arith.constant dense<0.000000e+00> : vector<7xf32>
    %24 = vector.multi_reduction <add>, %23, %cst_9 [1] : vector<7x7xf32> to vector<7xf32>
    %25 = vector.shape_cast %24 : vector<7xf32> to vector<7x1xf32>
    %26 = vector.broadcast %25 : vector<7x1xf32> to vector<7x7xf32>
    %27 = arith.divf %23, %26 : vector<7x7xf32>
    %28 = arith.truncf %27 : vector<7x7xf32> to vector<7x7xbf16>
    %cst_10 = arith.constant dense<0.000000e+00> : vector<7x8xf32>
    %29 = tpu.matmul %28, %9, %cst_10 {dimension_numbers = #tpu.dot_dimension_numbers<[1], [0], [0], [1], [0, 0, 1, 1], [], []>} : vector<7x7xbf16>, vector<7x8xbf16>, vector<7x8xf32> -> vector<7x8xf32>
    %30 = vector.extract_strided_slice %1 {offsets = [0, 8], sizes = [7, 8], strides = [1, 1]} : vector<7x96xf32> to vector<7x8xf32>
    %31 = arith.truncf %30 : vector<7x8xf32> to vector<7x8xbf16>
    %32 = vector.extract_strided_slice %1 {offsets = [0, 40], sizes = [7, 8], strides = [1, 1]} : vector<7x96xf32> to vector<7x8xf32>
    %33 = arith.truncf %32 : vector<7x8xf32> to vector<7x8xbf16>
    %34 = vector.extract_strided_slice %1 {offsets = [0, 72], sizes = [7, 8], strides = [1, 1]} : vector<7x96xf32> to vector<7x8xf32>
    %35 = arith.truncf %34 : vector<7x8xf32> to vector<7x8xbf16>
    %cst_11 = arith.constant dense<0.000000e+00> : vector<7x7xf32>
    %36 = tpu.matmul %31, %33, %cst_11 {dimension_numbers = #tpu.dot_dimension_numbers<[1], [1], [0], [0], [0, 0, 1, 0], [], []>} : vector<7x8xbf16>, vector<7x8xbf16>, vector<7x7xf32> -> vector<7x7xf32>
    %cst_12 = arith.constant 0.353553385 : f32
    %37 = vector.broadcast %cst_12 : f32 to vector<7x7xf32>
    %38 = arith.mulf %36, %37 : vector<7x7xf32>
    %cst_13 = arith.constant 5.000000e-01 : f32
    %39 = vector.broadcast %cst_13 : f32 to vector<1x7xf32>
    %40 = arith.cmpf ogt, %3, %39 : vector<1x7xf32>
    %cst_14 = arith.constant -9.99999986E+14 : f32
    %41 = vector.shape_cast %40 : vector<1x7xi1> to vector<1x7xi1>
    %42 = vector.broadcast %41 : vector<1x7xi1> to vector<7x7xi1>
    %43 = vector.broadcast %cst_14 : f32 to vector<7x7xf32>
    %44 = arith.select %42, %38, %43 : vector<7x7xi1>, vector<7x7xf32>
    %cst_15 = arith.constant dense<0xFF800000> : vector<7xf32>
    %45 = vector.multi_reduction <maximumf>, %44, %cst_15 [1] : vector<7x7xf32> to vector<7xf32>
    %46 = vector.shape_cast %45 : vector<7xf32> to vector<7x1xf32>
    %47 = vector.broadcast %46 : vector<7x1xf32> to vector<7x7xf32>
    %48 = arith.subf %44, %47 : vector<7x7xf32>
    %49 = math.exp %48 : vector<7x7xf32>
    %cst_16 = arith.constant dense<0.000000e+00> : vector<7xf32>
    %50 = vector.multi_reduction <add>, %49, %cst_16 [1] : vector<7x7xf32> to vector<7xf32>
    %51 = vector.shape_cast %50 : vector<7xf32> to vector<7x1xf32>
    %52 = vector.broadcast %51 : vector<7x1xf32> to vector<7x7xf32>
    %53 = arith.divf %49, %52 : vector<7x7xf32>
    %54 = arith.truncf %53 : vector<7x7xf32> to vector<7x7xbf16>
    %cst_17 = arith.constant dense<0.000000e+00> : vector<7x8xf32>
    %55 = tpu.matmul %54, %35, %cst_17 {dimension_numbers = #tpu.dot_dimension_numbers<[1], [0], [0], [1], [0, 0, 1, 1], [], []>} : vector<7x7xbf16>, vector<7x8xbf16>, vector<7x8xf32> -> vector<7x8xf32>
    %56 = vector.extract_strided_slice %1 {offsets = [0, 16], sizes = [7, 8], strides = [1, 1]} : vector<7x96xf32> to vector<7x8xf32>
    %57 = arith.truncf %56 : vector<7x8xf32> to vector<7x8xbf16>
    %58 = vector.extract_strided_slice %1 {offsets = [0, 48], sizes = [7, 8], strides = [1, 1]} : vector<7x96xf32> to vector<7x8xf32>
    %59 = arith.truncf %58 : vector<7x8xf32> to vector<7x8xbf16>
    %60 = vector.extract_strided_slice %1 {offsets = [0, 80], sizes = [7, 8], strides = [1, 1]} : vector<7x96xf32> to vector<7x8xf32>
    %61 = arith.truncf %60 : vector<7x8xf32> to vector<7x8xbf16>
    %cst_18 = arith.constant dense<0.000000e+00> : vector<7x7xf32>
    %62 = tpu.matmul %57, %59, %cst_18 {dimension_numbers = #tpu.dot_dimension_numbers<[1], [1], [0], [0], [0, 0, 1, 0], [], []>} : vector<7x8xbf16>, vector<7x8xbf16>, vector<7x7xf32> -> vector<7x7xf32>
    %cst_19 = arith.constant 0.353553385 : f32
    %63 = vector.broadcast %cst_19 : f32 to vector<7x7xf32>
    %64 = arith.mulf %62, %63 : vector<7x7xf32>
    %cst_20 = arith.constant 5.000000e-01 : f32
    %65 = vector.broadcast %cst_20 : f32 to vector<1x7xf32>
    %66 = arith.cmpf ogt, %3, %65 : vector<1x7xf32>
    %cst_21 = arith.constant -9.99999986E+14 : f32
    %67 = vector.shape_cast %66 : vector<1x7xi1> to vector<1x7xi1>
    %68 = vector.broadcast %67 : vector<1x7xi1> to vector<7x7xi1>
    %69 = vector.broadcast %cst_21 : f32 to vector<7x7xf32>
    %70 = arith.select %68, %64, %69 : vector<7x7xi1>, vector<7x7xf32>
    %cst_22 = arith.constant dense<0xFF800000> : vector<7xf32>
    %71 = vector.multi_reduction <maximumf>, %70, %cst_22 [1] : vector<7x7xf32> to vector<7xf32>
    %72 = vector.shape_cast %71 : vector<7xf32> to vector<7x1xf32>
    %73 = vector.broadcast %72 : vector<7x1xf32> to vector<7x7xf32>
    %74 = arith.subf %70, %73 : vector<7x7xf32>
    %75 = math.exp %74 : vector<7x7xf32>
    %cst_23 = arith.constant dense<0.000000e+00> : vector<7xf32>
    %76 = vector.multi_reduction <add>, %75, %cst_23 [1] : vector<7x7xf32> to vector<7xf32>
    %77 = vector.shape_cast %76 : vector<7xf32> to vector<7x1xf32>
    %78 = vector.broadcast %77 : vector<7x1xf32> to vector<7x7xf32>
    %79 = arith.divf %75, %78 : vector<7x7xf32>
    %80 = arith.truncf %79 : vector<7x7xf32> to vector<7x7xbf16>
    %cst_24 = arith.constant dense<0.000000e+00> : vector<7x8xf32>
    %81 = tpu.matmul %80, %61, %cst_24 {dimension_numbers = #tpu.dot_dimension_numbers<[1], [0], [0], [1], [0, 0, 1, 1], [], []>} : vector<7x7xbf16>, vector<7x8xbf16>, vector<7x8xf32> -> vector<7x8xf32>
    %82 = vector.extract_strided_slice %1 {offsets = [0, 24], sizes = [7, 8], strides = [1, 1]} : vector<7x96xf32> to vector<7x8xf32>
    %83 = arith.truncf %82 : vector<7x8xf32> to vector<7x8xbf16>
    %84 = vector.extract_strided_slice %1 {offsets = [0, 56], sizes = [7, 8], strides = [1, 1]} : vector<7x96xf32> to vector<7x8xf32>
    %85 = arith.truncf %84 : vector<7x8xf32> to vector<7x8xbf16>
    %86 = vector.extract_strided_slice %1 {offsets = [0, 88], sizes = [7, 8], strides = [1, 1]} : vector<7x96xf32> to vector<7x8xf32>
    %87 = arith.truncf %86 : vector<7x8xf32> to vector<7x8xbf16>
    %cst_25 = arith.constant dense<0.000000e+00> : vector<7x7xf32>
    %88 = tpu.matmul %83, %85, %cst_25 {dimension_numbers = #tpu.dot_dimension_numbers<[1], [1], [0], [0], [0, 0, 1, 0], [], []>} : vector<7x8xbf16>, vector<7x8xbf16>, vector<7x7xf32> -> vector<7x7xf32>
    %cst_26 = arith.constant 0.353553385 : f32
    %89 = vector.broadcast %cst_26 : f32 to vector<7x7xf32>
    %90 = arith.mulf %88, %89 : vector<7x7xf32>
    %cst_27 = arith.constant 5.000000e-01 : f32
    %91 = vector.broadcast %cst_27 : f32 to vector<1x7xf32>
    %92 = arith.cmpf ogt, %3, %91 : vector<1x7xf32>
    %cst_28 = arith.constant -9.99999986E+14 : f32
    %93 = vector.shape_cast %92 : vector<1x7xi1> to vector<1x7xi1>
    %94 = vector.broadcast %93 : vector<1x7xi1> to vector<7x7xi1>
    %95 = vector.broadcast %cst_28 : f32 to vector<7x7xf32>
    %96 = arith.select %94, %90, %95 : vector<7x7xi1>, vector<7x7xf32>
    %cst_29 = arith.constant dense<0xFF800000> : vector<7xf32>
    %97 = vector.multi_reduction <maximumf>, %96, %cst_29 [1] : vector<7x7xf32> to vector<7xf32>
    %98 = vector.shape_cast %97 : vector<7xf32> to vector<7x1xf32>
    %99 = vector.broadcast %98 : vector<7x1xf32> to vector<7x7xf32>
    %100 = arith.subf %96, %99 : vector<7x7xf32>
    %101 = math.exp %100 : vector<7x7xf32>
    %cst_30 = arith.constant dense<0.000000e+00> : vector<7xf32>
    %102 = vector.multi_reduction <add>, %101, %cst_30 [1] : vector<7x7xf32> to vector<7xf32>
    %103 = vector.shape_cast %102 : vector<7xf32> to vector<7x1xf32>
    %104 = vector.broadcast %103 : vector<7x1xf32> to vector<7x7xf32>
    %105 = arith.divf %101, %104 : vector<7x7xf32>
    %106 = arith.truncf %105 : vector<7x7xf32> to vector<7x7xbf16>
    %cst_31 = arith.constant dense<0.000000e+00> : vector<7x8xf32>
    %107 = tpu.matmul %106, %87, %cst_31 {dimension_numbers = #tpu.dot_dimension_numbers<[1], [0], [0], [1], [0, 0, 1, 1], [], []>} : vector<7x7xbf16>, vector<7x8xbf16>, vector<7x8xf32> -> vector<7x8xf32>
    %108 = tpu.concatenate %29, %55, %81, %107 in 1 : vector<7x8xf32>, vector<7x8xf32>, vector<7x8xf32>, vector<7x8xf32> -> vector<7x32xf32>
    %c0_32 = arith.constant 0 : index
    %c0_33 = arith.constant 0 : index
    %c0_34 = arith.constant 0 : index
    %109 = vector.load %arg3[%c0_32, %c0_33, %c0_34] : memref<1x7x32xf32, #tpu.memory_space<vmem>>, vector<1x7x32xf32>
    %110 = vector.shape_cast %109 : vector<1x7x32xf32> to vector<7x32xf32>
    %111 = vector.shape_cast %108 : vector<7x32xf32> to vector<1x7x32xf32>
    tpu.vector_store %arg3[%c0_32, %c0_33, %c0_34], %111 {strides = array<i32>} : memref<1x7x32xf32, #tpu.memory_space<vmem>>, vector<1x7x32xf32>,
    return
  }
  func.func @transform_0(%arg0: i32) -> (i32, i32, i32) {
    %c0_i32 = arith.constant 0 : i32
    %c0_i32_0 = arith.constant 0 : i32
    %c0_i32_1 = arith.constant 0 : i32
    return %arg0, %c0_i32, %c0_i32_0 : i32, i32, i32
  }
  func.func @transform_1(%arg0: i32) -> (i32, i32, i32) {
    %c0_i32 = arith.constant 0 : i32
    %c0_i32_0 = arith.constant 0 : i32
    %c0_i32_1 = arith.constant 0 : i32
    return %arg0, %c0_i32, %c0_i32_0 : i32, i32, i32
  }
  func.func @transform_2(%arg0: i32) -> (i32, i32, i32) {
    %c0_i32 = arith.constant 0 : i32
    %c0_i32_0 = arith.constant 0 : i32
    %c0_i32_1 = arith.constant 0 : i32
    return %arg0, %c0_i32, %c0_i32_0 : i32, i32, i32
  }
}

module attributes {stable_mosaic.version = 11 : i64} {
  func.func @_linear_kernel(%arg0: i32, %arg1: memref<16x32xf32, #tpu.memory_space<vmem>>, %arg2: memref<32x96xbf16, #tpu.memory_space<vmem>>, %arg3: memref<1x96xf32, #tpu.memory_space<vmem>>, %arg4: memref<16x96xf32, #tpu.memory_space<vmem>>) attributes {dimension_semantics = [#tpu.dimension_semantics<parallel>], iteration_bounds = array<i64: 1>, scalar_prefetch = 0 : i64, scratch_operands = 0 : i64, tpu.core_type = #tpu.core_type<tc>, window_params = [{transform_indices = @transform_0, window_bounds = array<i64: 16, 32>}, {pipeline_mode = #tpu.pipeline_mode<synchronous>, transform_indices = @transform_1, window_bounds = array<i64: 32, 96>}, {pipeline_mode = #tpu.pipeline_mode<synchronous>, transform_indices = @transform_2, window_bounds = array<i64: 1, 96>}, {transform_indices = @transform_3, window_bounds = array<i64: 16, 96>}]} {
    %c0 = arith.constant 0 : index
    %c0_0 = arith.constant 0 : index
    %0 = vector.load %arg1[%c0, %c0_0] : memref<16x32xf32, #tpu.memory_space<vmem>>, vector<16x32xf32>
    %1 = arith.truncf %0 : vector<16x32xf32> to vector<16x32xbf16>
    %c0_1 = arith.constant 0 : index
    %c0_2 = arith.constant 0 : index
    %2 = vector.load %arg2[%c0_1, %c0_2] : memref<32x96xbf16, #tpu.memory_space<vmem>>, vector<32x96xbf16>
    %cst = arith.constant dense<0.000000e+00> : vector<16x96xf32>
    %3 = tpu.matmul %1, %2, %cst {dimension_numbers = #tpu.dot_dimension_numbers<[1], [0], [0], [1], [0, 0, 1, 1], [], []>} : vector<16x32xbf16>, vector<32x96xbf16>, vector<16x96xf32> -> vector<16x96xf32>
    %c0_3 = arith.constant 0 : index
    %c0_4 = arith.constant 0 : index
    %4 = vector.load %arg3[%c0_3, %c0_4] : memref<1x96xf32, #tpu.memory_space<vmem>>, vector<1x96xf32>
    %5 = vector.broadcast %4 : vector<1x96xf32> to vector<16x96xf32>
    %6 = arith.addf %3, %5 : vector<16x96xf32>
    %c0_5 = arith.constant 0 : index
    %c0_6 = arith.constant 0 : index
    %7 = vector.load %arg4[%c0_5, %c0_6] : memref<16x96xf32, #tpu.memory_space<vmem>>, vector<16x96xf32>
    tpu.vector_store %arg4[%c0_5, %c0_6], %6 {strides = array<i32>} : memref<16x96xf32, #tpu.memory_space<vmem>>, vector<16x96xf32>,
    return
  }
  func.func @transform_0(%arg0: i32) -> (i32, i32) {
    %c0_i32 = arith.constant 0 : i32
    %c0_i32_0 = arith.constant 0 : i32
    return %arg0, %c0_i32 : i32, i32
  }
  func.func @transform_1(%arg0: i32) -> (i32, i32) {
    %c0_i32 = arith.constant 0 : i32
    %c0_i32_0 = arith.constant 0 : i32
    %c0_i32_1 = arith.constant 0 : i32
    return %c0_i32, %c0_i32_0 : i32, i32
  }
  func.func @transform_2(%arg0: i32) -> (i32, i32) {
    %c0_i32 = arith.constant 0 : i32
    %c0_i32_0 = arith.constant 0 : i32
    %c0_i32_1 = arith.constant 0 : i32
    return %c0_i32, %c0_i32_0 : i32, i32
  }
  func.func @transform_3(%arg0: i32) -> (i32, i32) {
    %c0_i32 = arith.constant 0 : i32
    %c0_i32_0 = arith.constant 0 : i32
    return %arg0, %c0_i32 : i32, i32
  }
}

module attributes {stable_mosaic.version = 11 : i64} {
  func.func @_linear_add_ln_kernel(%arg0: i32, %arg1: memref<16x32xf32, #tpu.memory_space<vmem>>, %arg2: memref<16x32xf32, #tpu.memory_space<vmem>>, %arg3: memref<32x32xbf16, #tpu.memory_space<vmem>>, %arg4: memref<1x32xf32, #tpu.memory_space<vmem>>, %arg5: memref<1x32xf32, #tpu.memory_space<vmem>>, %arg6: memref<1x32xf32, #tpu.memory_space<vmem>>, %arg7: memref<16x32xf32, #tpu.memory_space<vmem>>) attributes {dimension_semantics = [#tpu.dimension_semantics<parallel>], iteration_bounds = array<i64: 1>, scalar_prefetch = 0 : i64, scratch_operands = 0 : i64, tpu.core_type = #tpu.core_type<tc>, window_params = [{transform_indices = @transform_0, window_bounds = array<i64: 16, 32>}, {transform_indices = @transform_1, window_bounds = array<i64: 16, 32>}, {pipeline_mode = #tpu.pipeline_mode<synchronous>, transform_indices = @transform_2, window_bounds = array<i64: 32, 32>}, {pipeline_mode = #tpu.pipeline_mode<synchronous>, transform_indices = @transform_3, window_bounds = array<i64: 1, 32>}, {pipeline_mode = #tpu.pipeline_mode<synchronous>, transform_indices = @transform_4, window_bounds = array<i64: 1, 32>}, {pipeline_mode = #tpu.pipeline_mode<synchronous>, transform_indices = @transform_5, window_bounds = array<i64: 1, 32>}, {transform_indices = @transform_6, window_bounds = array<i64: 16, 32>}]} {
    %c0 = arith.constant 0 : index
    %c0_0 = arith.constant 0 : index
    %0 = vector.load %arg1[%c0, %c0_0] : memref<16x32xf32, #tpu.memory_space<vmem>>, vector<16x32xf32>
    %1 = arith.truncf %0 : vector<16x32xf32> to vector<16x32xbf16>
    %c0_1 = arith.constant 0 : index
    %c0_2 = arith.constant 0 : index
    %2 = vector.load %arg3[%c0_1, %c0_2] : memref<32x32xbf16, #tpu.memory_space<vmem>>, vector<32x32xbf16>
    %cst = arith.constant dense<0.000000e+00> : vector<16x32xf32>
    %3 = tpu.matmul %1, %2, %cst {dimension_numbers = #tpu.dot_dimension_numbers<[1], [0], [0], [1], [0, 0, 1, 1], [], []>} : vector<16x32xbf16>, vector<32x32xbf16>, vector<16x32xf32> -> vector<16x32xf32>
    %c0_3 = arith.constant 0 : index
    %c0_4 = arith.constant 0 : index
    %4 = vector.load %arg4[%c0_3, %c0_4] : memref<1x32xf32, #tpu.memory_space<vmem>>, vector<1x32xf32>
    %5 = vector.broadcast %4 : vector<1x32xf32> to vector<16x32xf32>
    %6 = arith.addf %3, %5 : vector<16x32xf32>
    %c0_5 = arith.constant 0 : index
    %c0_6 = arith.constant 0 : index
    %7 = vector.load %arg2[%c0_5, %c0_6] : memref<16x32xf32, #tpu.memory_space<vmem>>, vector<16x32xf32>
    %8 = arith.addf %7, %6 : vector<16x32xf32>
    %cst_7 = arith.constant dense<0.000000e+00> : vector<16xf32>
    %9 = vector.multi_reduction <add>, %8, %cst_7 [1] : vector<16x32xf32> to vector<16xf32>
    %10 = vector.shape_cast %9 : vector<16xf32> to vector<16x1xf32>
    %cst_8 = arith.constant 3.200000e+01 : f32
    %11 = vector.broadcast %cst_8 : f32 to vector<16x1xf32>
    %12 = arith.divf %10, %11 : vector<16x1xf32>
    %13 = vector.broadcast %12 : vector<16x1xf32> to vector<16x32xf32>
    %14 = arith.subf %8, %13 : vector<16x32xf32>
    %15 = arith.mulf %14, %14 : vector<16x32xf32>
    %cst_9 = arith.constant dense<0.000000e+00> : vector<16xf32>
    %16 = vector.multi_reduction <add>, %15, %cst_9 [1] : vector<16x32xf32> to vector<16xf32>
    %17 = vector.shape_cast %16 : vector<16xf32> to vector<16x1xf32>
    %cst_10 = arith.constant 3.200000e+01 : f32
    %18 = vector.broadcast %cst_10 : f32 to vector<16x1xf32>
    %19 = arith.divf %17, %18 : vector<16x1xf32>
    %20 = vector.broadcast %12 : vector<16x1xf32> to vector<16x32xf32>
    %21 = arith.subf %8, %20 : vector<16x32xf32>
    %cst_11 = arith.constant 9.99999974E-6 : f32
    %22 = vector.broadcast %cst_11 : f32 to vector<16x1xf32>
    %23 = arith.addf %19, %22 : vector<16x1xf32>
    %24 = math.rsqrt %23 : vector<16x1xf32>
    %25 = vector.broadcast %24 : vector<16x1xf32> to vector<16x32xf32>
    %26 = arith.mulf %21, %25 : vector<16x32xf32>
    %c0_12 = arith.constant 0 : index
    %c0_13 = arith.constant 0 : index
    %27 = vector.load %arg5[%c0_12, %c0_13] : memref<1x32xf32, #tpu.memory_space<vmem>>, vector<1x32xf32>
    %28 = vector.broadcast %27 : vector<1x32xf32> to vector<16x32xf32>
    %29 = arith.mulf %26, %28 : vector<16x32xf32>
    %c0_14 = arith.constant 0 : index
    %c0_15 = arith.constant 0 : index
    %30 = vector.load %arg6[%c0_14, %c0_15] : memref<1x32xf32, #tpu.memory_space<vmem>>, vector<1x32xf32>
    %31 = vector.broadcast %30 : vector<1x32xf32> to vector<16x32xf32>
    %32 = arith.addf %29, %31 : vector<16x32xf32>
    %c0_16 = arith.constant 0 : index
    %c0_17 = arith.constant 0 : index
    %33 = vector.load %arg7[%c0_16, %c0_17] : memref<16x32xf32, #tpu.memory_space<vmem>>, vector<16x32xf32>
    tpu.vector_store %arg7[%c0_16, %c0_17], %32 {strides = array<i32>} : memref<16x32xf32, #tpu.memory_space<vmem>>, vector<16x32xf32>,
    return
  }
  func.func @transform_0(%arg0: i32) -> (i32, i32) {
    %c0_i32 = arith.constant 0 : i32
    %c0_i32_0 = arith.constant 0 : i32
    return %arg0, %c0_i32 : i32, i32
  }
  func.func @transform_1(%arg0: i32) -> (i32, i32) {
    %c0_i32 = arith.constant 0 : i32
    %c0_i32_0 = arith.constant 0 : i32
    return %arg0, %c0_i32 : i32, i32
  }
  func.func @transform_2(%arg0: i32) -> (i32, i32) {
    %c0_i32 = arith.constant 0 : i32
    %c0_i32_0 = arith.constant 0 : i32
    %c0_i32_1 = arith.constant 0 : i32
    return %c0_i32, %c0_i32_0 : i32, i32
  }
  func.func @transform_3(%arg0: i32) -> (i32, i32) {
    %c0_i32 = arith.constant 0 : i32
    %c0_i32_0 = arith.constant 0 : i32
    %c0_i32_1 = arith.constant 0 : i32
    return %c0_i32, %c0_i32_0 : i32, i32
  }
  func.func @transform_4(%arg0: i32) -> (i32, i32) {
    %c0_i32 = arith.constant 0 : i32
    %c0_i32_0 = arith.constant 0 : i32
    %c0_i32_1 = arith.constant 0 : i32
    return %c0_i32, %c0_i32_0 : i32, i32
  }
  func.func @transform_5(%arg0: i32) -> (i32, i32) {
    %c0_i32 = arith.constant 0 : i32
    %c0_i32_0 = arith.constant 0 : i32
    %c0_i32_1 = arith.constant 0 : i32
    return %c0_i32, %c0_i32_0 : i32, i32
  }
  func.func @transform_6(%arg0: i32) -> (i32, i32) {
    %c0_i32 = arith.constant 0 : i32
    %c0_i32_0 = arith.constant 0 : i32
    return %arg0, %c0_i32 : i32, i32
  }
}

module attributes {stable_mosaic.version = 11 : i64} {
  func.func @_ffn_ln_kernel(%arg0: i32, %arg1: memref<16x32xf32, #tpu.memory_space<vmem>>, %arg2: memref<32x64xbf16, #tpu.memory_space<vmem>>, %arg3: memref<1x64xf32, #tpu.memory_space<vmem>>, %arg4: memref<64x32xbf16, #tpu.memory_space<vmem>>, %arg5: memref<1x32xf32, #tpu.memory_space<vmem>>, %arg6: memref<1x32xf32, #tpu.memory_space<vmem>>, %arg7: memref<1x32xf32, #tpu.memory_space<vmem>>, %arg8: memref<16x32xf32, #tpu.memory_space<vmem>>) attributes {dimension_semantics = [#tpu.dimension_semantics<parallel>], iteration_bounds = array<i64: 1>, scalar_prefetch = 0 : i64, scratch_operands = 0 : i64, tpu.core_type = #tpu.core_type<tc>, window_params = [{transform_indices = @transform_0, window_bounds = array<i64: 16, 32>}, {pipeline_mode = #tpu.pipeline_mode<synchronous>, transform_indices = @transform_1, window_bounds = array<i64: 32, 64>}, {pipeline_mode = #tpu.pipeline_mode<synchronous>, transform_indices = @transform_2, window_bounds = array<i64: 1, 64>}, {pipeline_mode = #tpu.pipeline_mode<synchronous>, transform_indices = @transform_3, window_bounds = array<i64: 64, 32>}, {pipeline_mode = #tpu.pipeline_mode<synchronous>, transform_indices = @transform_4, window_bounds = array<i64: 1, 32>}, {pipeline_mode = #tpu.pipeline_mode<synchronous>, transform_indices = @transform_5, window_bounds = array<i64: 1, 32>}, {pipeline_mode = #tpu.pipeline_mode<synchronous>, transform_indices = @transform_6, window_bounds = array<i64: 1, 32>}, {transform_indices = @transform_7, window_bounds = array<i64: 16, 32>}]} {
    %c0 = arith.constant 0 : index
    %c0_0 = arith.constant 0 : index
    %0 = vector.load %arg1[%c0, %c0_0] : memref<16x32xf32, #tpu.memory_space<vmem>>, vector<16x32xf32>
    %1 = arith.truncf %0 : vector<16x32xf32> to vector<16x32xbf16>
    %c0_1 = arith.constant 0 : index
    %c0_2 = arith.constant 0 : index
    %2 = vector.load %arg2[%c0_1, %c0_2] : memref<32x64xbf16, #tpu.memory_space<vmem>>, vector<32x64xbf16>
    %cst = arith.constant dense<0.000000e+00> : vector<16x64xf32>
    %3 = tpu.matmul %1, %2, %cst {dimension_numbers = #tpu.dot_dimension_numbers<[1], [0], [0], [1], [0, 0, 1, 1], [], []>} : vector<16x32xbf16>, vector<32x64xbf16>, vector<16x64xf32> -> vector<16x64xf32>
    %c0_3 = arith.constant 0 : index
    %c0_4 = arith.constant 0 : index
    %4 = vector.load %arg3[%c0_3, %c0_4] : memref<1x64xf32, #tpu.memory_space<vmem>>, vector<1x64xf32>
    %5 = vector.broadcast %4 : vector<1x64xf32> to vector<16x64xf32>
    %6 = arith.addf %3, %5 : vector<16x64xf32>
    %7 = arith.negf %6 : vector<16x64xf32>
    %8 = math.exp %7 : vector<16x64xf32>
    %cst_5 = arith.constant 1.000000e+00 : f32
    %9 = vector.broadcast %cst_5 : f32 to vector<16x64xf32>
    %10 = arith.addf %9, %8 : vector<16x64xf32>
    %11 = arith.divf %9, %10 : vector<16x64xf32>
    %12 = arith.mulf %6, %11 : vector<16x64xf32>
    %13 = arith.truncf %12 : vector<16x64xf32> to vector<16x64xbf16>
    %c0_6 = arith.constant 0 : index
    %c0_7 = arith.constant 0 : index
    %14 = vector.load %arg4[%c0_6, %c0_7] : memref<64x32xbf16, #tpu.memory_space<vmem>>, vector<64x32xbf16>
    %cst_8 = arith.constant dense<0.000000e+00> : vector<16x32xf32>
    %15 = tpu.matmul %13, %14, %cst_8 {dimension_numbers = #tpu.dot_dimension_numbers<[1], [0], [0], [1], [0, 0, 1, 1], [], []>} : vector<16x64xbf16>, vector<64x32xbf16>, vector<16x32xf32> -> vector<16x32xf32>
    %c0_9 = arith.constant 0 : index
    %c0_10 = arith.constant 0 : index
    %16 = vector.load %arg5[%c0_9, %c0_10] : memref<1x32xf32, #tpu.memory_space<vmem>>, vector<1x32xf32>
    %17 = vector.broadcast %16 : vector<1x32xf32> to vector<16x32xf32>
    %18 = arith.addf %15, %17 : vector<16x32xf32>
    %19 = arith.addf %0, %18 : vector<16x32xf32>
    %cst_11 = arith.constant dense<0.000000e+00> : vector<16xf32>
    %20 = vector.multi_reduction <add>, %19, %cst_11 [1] : vector<16x32xf32> to vector<16xf32>
    %21 = vector.shape_cast %20 : vector<16xf32> to vector<16x1xf32>
    %cst_12 = arith.constant 3.200000e+01 : f32
    %22 = vector.broadcast %cst_12 : f32 to vector<16x1xf32>
    %23 = arith.divf %21, %22 : vector<16x1xf32>
    %24 = vector.broadcast %23 : vector<16x1xf32> to vector<16x32xf32>
    %25 = arith.subf %19, %24 : vector<16x32xf32>
    %26 = arith.mulf %25, %25 : vector<16x32xf32>
    %cst_13 = arith.constant dense<0.000000e+00> : vector<16xf32>
    %27 = vector.multi_reduction <add>, %26, %cst_13 [1] : vector<16x32xf32> to vector<16xf32>
    %28 = vector.shape_cast %27 : vector<16xf32> to vector<16x1xf32>
    %cst_14 = arith.constant 3.200000e+01 : f32
    %29 = vector.broadcast %cst_14 : f32 to vector<16x1xf32>
    %30 = arith.divf %28, %29 : vector<16x1xf32>
    %31 = vector.broadcast %23 : vector<16x1xf32> to vector<16x32xf32>
    %32 = arith.subf %19, %31 : vector<16x32xf32>
    %cst_15 = arith.constant 9.99999974E-6 : f32
    %33 = vector.broadcast %cst_15 : f32 to vector<16x1xf32>
    %34 = arith.addf %30, %33 : vector<16x1xf32>
    %35 = math.rsqrt %34 : vector<16x1xf32>
    %36 = vector.broadcast %35 : vector<16x1xf32> to vector<16x32xf32>
    %37 = arith.mulf %32, %36 : vector<16x32xf32>
    %c0_16 = arith.constant 0 : index
    %c0_17 = arith.constant 0 : index
    %38 = vector.load %arg6[%c0_16, %c0_17] : memref<1x32xf32, #tpu.memory_space<vmem>>, vector<1x32xf32>
    %39 = vector.broadcast %38 : vector<1x32xf32> to vector<16x32xf32>
    %40 = arith.mulf %37, %39 : vector<16x32xf32>
    %c0_18 = arith.constant 0 : index
    %c0_19 = arith.constant 0 : index
    %41 = vector.load %arg7[%c0_18, %c0_19] : memref<1x32xf32, #tpu.memory_space<vmem>>, vector<1x32xf32>
    %42 = vector.broadcast %41 : vector<1x32xf32> to vector<16x32xf32>
    %43 = arith.addf %40, %42 : vector<16x32xf32>
    %c0_20 = arith.constant 0 : index
    %c0_21 = arith.constant 0 : index
    %44 = vector.load %arg8[%c0_20, %c0_21] : memref<16x32xf32, #tpu.memory_space<vmem>>, vector<16x32xf32>
    tpu.vector_store %arg8[%c0_20, %c0_21], %43 {strides = array<i32>} : memref<16x32xf32, #tpu.memory_space<vmem>>, vector<16x32xf32>,
    return
  }
  func.func @transform_0(%arg0: i32) -> (i32, i32) {
    %c0_i32 = arith.constant 0 : i32
    %c0_i32_0 = arith.constant 0 : i32
    return %arg0, %c0_i32 : i32, i32
  }
  func.func @transform_1(%arg0: i32) -> (i32, i32) {
    %c0_i32 = arith.constant 0 : i32
    %c0_i32_0 = arith.constant 0 : i32
    %c0_i32_1 = arith.constant 0 : i32
    return %c0_i32, %c0_i32_0 : i32, i32
  }
  func.func @transform_2(%arg0: i32) -> (i32, i32) {
    %c0_i32 = arith.constant 0 : i32
    %c0_i32_0 = arith.constant 0 : i32
    %c0_i32_1 = arith.constant 0 : i32
    return %c0_i32, %c0_i32_0 : i32, i32
  }
  func.func @transform_3(%arg0: i32) -> (i32, i32) {
    %c0_i32 = arith.constant 0 : i32
    %c0_i32_0 = arith.constant 0 : i32
    %c0_i32_1 = arith.constant 0 : i32
    return %c0_i32, %c0_i32_0 : i32, i32
  }
  func.func @transform_4(%arg0: i32) -> (i32, i32) {
    %c0_i32 = arith.constant 0 : i32
    %c0_i32_0 = arith.constant 0 : i32
    %c0_i32_1 = arith.constant 0 : i32
    return %c0_i32, %c0_i32_0 : i32, i32
  }
  func.func @transform_5(%arg0: i32) -> (i32, i32) {
    %c0_i32 = arith.constant 0 : i32
    %c0_i32_0 = arith.constant 0 : i32
    %c0_i32_1 = arith.constant 0 : i32
    return %c0_i32, %c0_i32_0 : i32, i32
  }
  func.func @transform_6(%arg0: i32) -> (i32, i32) {
    %c0_i32 = arith.constant 0 : i32
    %c0_i32_0 = arith.constant 0 : i32
    %c0_i32_1 = arith.constant 0 : i32
    return %c0_i32, %c0_i32_0 : i32, i32
  }
  func.func @transform_7(%arg0: i32) -> (i32, i32) {
    %c0_i32 = arith.constant 0 : i32
    %c0_i32_0 = arith.constant 0 : i32
    return %arg0, %c0_i32 : i32, i32
  }
}

module attributes {stable_mosaic.version = 11 : i64} {
  func.func @_conv_module_kernel(%arg0: i32, %arg1: memref<1x7x32xf32, #tpu.memory_space<vmem>>, %arg2: memref<32x32xbf16, #tpu.memory_space<vmem>>, %arg3: memref<1x32xf32, #tpu.memory_space<vmem>>, %arg4: memref<5x32xf32, #tpu.memory_space<vmem>>, %arg5: memref<1x32xf32, #tpu.memory_space<vmem>>, %arg6: memref<1x32xf32, #tpu.memory_space<vmem>>, %arg7: memref<1x32xf32, #tpu.memory_space<vmem>>, %arg8: memref<32x32xbf16, #tpu.memory_space<vmem>>, %arg9: memref<1x32xf32, #tpu.memory_space<vmem>>, %arg10: memref<1x32xf32, #tpu.memory_space<vmem>>, %arg11: memref<1x32xf32, #tpu.memory_space<vmem>>, %arg12: memref<1x7x32xf32, #tpu.memory_space<vmem>>, %arg13: memref<11x32xf32, #tpu.memory_space<vmem>>) attributes {dimension_semantics = [#tpu.dimension_semantics<parallel>], iteration_bounds = array<i64: 2>, scalar_prefetch = 0 : i64, scratch_operands = 1 : i64, tpu.core_type = #tpu.core_type<tc>, window_params = [{transform_indices = @transform_0, window_bounds = array<i64: 1, 7, 32>}, {pipeline_mode = #tpu.pipeline_mode<synchronous>, transform_indices = @transform_1, window_bounds = array<i64: 32, 32>}, {pipeline_mode = #tpu.pipeline_mode<synchronous>, transform_indices = @transform_2, window_bounds = array<i64: 1, 32>}, {pipeline_mode = #tpu.pipeline_mode<synchronous>, transform_indices = @transform_3, window_bounds = array<i64: 5, 32>}, {pipeline_mode = #tpu.pipeline_mode<synchronous>, transform_indices = @transform_4, window_bounds = array<i64: 1, 32>}, {pipeline_mode = #tpu.pipeline_mode<synchronous>, transform_indices = @transform_5, window_bounds = array<i64: 1, 32>}, {pipeline_mode = #tpu.pipeline_mode<synchronous>, transform_indices = @transform_6, window_bounds = array<i64: 1, 32>}, {pipeline_mode = #tpu.pipeline_mode<synchronous>, transform_indices = @transform_7, window_bounds = array<i64: 32, 32>}, {pipeline_mode = #tpu.pipeline_mode<synchronous>, transform_indices = @transform_8, window_bounds = array<i64: 1, 32>}, {pipeline_mode = #tpu.pipeline_mode<synchronous>, transform_indices = @transform_9, window_bounds = array<i64: 1, 32>}, {pipeline_mode = #tpu.pipeline_mode<synchronous>, transform_indices = @transform_10, window_bounds = array<i64: 1, 32>}, {transform_indices = @transform_11, window_bounds = array<i64: 1, 7, 32>}]} {
    %c0 = arith.constant 0 : index
    %c0_0 = arith.constant 0 : index
    %c0_1 = arith.constant 0 : index
    %0 = vector.load %arg1[%c0, %c0_0, %c0_1] : memref<1x7x32xf32, #tpu.memory_space<vmem>>, vector<1x7x32xf32>
    %1 = vector.shape_cast %0 : vector<1x7x32xf32> to vector<7x32xf32>
    %2 = arith.truncf %1 : vector<7x32xf32> to vector<7x32xbf16>
    %c0_2 = arith.constant 0 : index
    %c0_3 = arith.constant 0 : index
    %3 = vector.load %arg2[%c0_2, %c0_3] : memref<32x32xbf16, #tpu.memory_space<vmem>>, vector<32x32xbf16>
    %cst = arith.constant dense<0.000000e+00> : vector<7x32xf32>
    %4 = tpu.matmul %2, %3, %cst {dimension_numbers = #tpu.dot_dimension_numbers<[1], [0], [0], [1], [0, 0, 1, 1], [], []>} : vector<7x32xbf16>, vector<32x32xbf16>, vector<7x32xf32> -> vector<7x32xf32>
    %c0_4 = arith.constant 0 : index
    %c0_5 = arith.constant 0 : index
    %5 = vector.load %arg3[%c0_4, %c0_5] : memref<1x32xf32, #tpu.memory_space<vmem>>, vector<1x32xf32>
    %6 = vector.broadcast %5 : vector<1x32xf32> to vector<7x32xf32>
    %7 = arith.addf %4, %6 : vector<7x32xf32>
    %8 = arith.negf %7 : vector<7x32xf32>
    %9 = math.exp %8 : vector<7x32xf32>
    %cst_6 = arith.constant 1.000000e+00 : f32
    %10 = vector.broadcast %cst_6 : f32 to vector<7x32xf32>
    %11 = arith.addf %10, %9 : vector<7x32xf32>
    %12 = arith.divf %10, %11 : vector<7x32xf32>
    %13 = arith.mulf %7, %12 : vector<7x32xf32>
    %cst_7 = arith.constant 0.000000e+00 : f32
    %14 = vector.broadcast %cst_7 : f32 to vector<11x32xf32>
    %c0_8 = arith.constant 0 : index
    %c0_9 = arith.constant 0 : index
    %15 = vector.load %arg13[%c0_8, %c0_9] : memref<11x32xf32, #tpu.memory_space<vmem>>, vector<11x32xf32>
    tpu.vector_store %arg13[%c0_8, %c0_9], %14 {strides = array<i32>} : memref<11x32xf32, #tpu.memory_space<vmem>>, vector<11x32xf32>,
    %c2 = arith.constant 2 : index
    %c0_10 = arith.constant 0 : index
    %16 = vector.load %arg13[%c2, %c0_10] : memref<11x32xf32, #tpu.memory_space<vmem>>, vector<7x32xf32>
    tpu.vector_store %arg13[%c2, %c0_10], %13 {strides = array<i32>} : memref<11x32xf32, #tpu.memory_space<vmem>>, vector<7x32xf32>,
    %c0_11 = arith.constant 0 : index
    %c0_12 = arith.constant 0 : index
    %17 = vector.load %arg4[%c0_11, %c0_12] : memref<5x32xf32, #tpu.memory_space<vmem>>, vector<5x32xf32>
    %cst_13 = arith.constant 0.000000e+00 : f32
    %18 = vector.broadcast %cst_13 : f32 to vector<7x32xf32>
    %c0_14 = arith.constant 0 : index
    %c0_15 = arith.constant 0 : index
    %19 = vector.load %arg13[%c0_14, %c0_15] : memref<11x32xf32, #tpu.memory_space<vmem>>, vector<7x32xf32>
    %20 = vector.extract_strided_slice %17 {offsets = [0, 0], sizes = [1, 32], strides = [1, 1]} : vector<5x32xf32> to vector<1x32xf32>
    %21 = vector.broadcast %20 : vector<1x32xf32> to vector<7x32xf32>
    %22 = arith.mulf %19, %21 : vector<7x32xf32>
    %23 = arith.addf %18, %22 : vector<7x32xf32>
    %c1 = arith.constant 1 : index
    %c0_16 = arith.constant 0 : index
    %24 = vector.load %arg13[%c1, %c0_16] : memref<11x32xf32, #tpu.memory_space<vmem>>, vector<7x32xf32>
    %25 = vector.extract_strided_slice %17 {offsets = [1, 0], sizes = [1, 32], strides = [1, 1]} : vector<5x32xf32> to vector<1x32xf32>
    %26 = vector.broadcast %25 : vector<1x32xf32> to vector<7x32xf32>
    %27 = arith.mulf %24, %26 : vector<7x32xf32>
    %28 = arith.addf %23, %27 : vector<7x32xf32>
    %c2_17 = arith.constant 2 : index
    %c0_18 = arith.constant 0 : index
    %29 = vector.load %arg13[%c2_17, %c0_18] : memref<11x32xf32, #tpu.memory_space<vmem>>, vector<7x32xf32>
    %30 = vector.extract_strided_slice %17 {offsets = [2, 0], sizes = [1, 32], strides = [1, 1]} : vector<5x32xf32> to vector<1x32xf32>
    %31 = vector.broadcast %30 : vector<1x32xf32> to vector<7x32xf32>
    %32 = arith.mulf %29, %31 : vector<7x32xf32>
    %33 = arith.addf %28, %32 : vector<7x32xf32>
    %c3 = arith.constant 3 : index
    %c0_19 = arith.constant 0 : index
    %34 = vector.load %arg13[%c3, %c0_19] : memref<11x32xf32, #tpu.memory_space<vmem>>, vector<7x32xf32>
    %35 = vector.extract_strided_slice %17 {offsets = [3, 0], sizes = [1, 32], strides = [1, 1]} : vector<5x32xf32> to vector<1x32xf32>
    %36 = vector.broadcast %35 : vector<1x32xf32> to vector<7x32xf32>
    %37 = arith.mulf %34, %36 : vector<7x32xf32>
    %38 = arith.addf %33, %37 : vector<7x32xf32>
    %c4 = arith.constant 4 : index
    %c0_20 = arith.constant 0 : index
    %39 = vector.load %arg13[%c4, %c0_20] : memref<11x32xf32, #tpu.memory_space<vmem>>, vector<7x32xf32>
    %40 = vector.extract_strided_slice %17 {offsets = [4, 0], sizes = [1, 32], strides = [1, 1]} : vector<5x32xf32> to vector<1x32xf32>
    %41 = vector.broadcast %40 : vector<1x32xf32> to vector<7x32xf32>
    %42 = arith.mulf %39, %41 : vector<7x32xf32>
    %43 = arith.addf %38, %42 : vector<7x32xf32>
    %c0_21 = arith.constant 0 : index
    %c0_22 = arith.constant 0 : index
    %44 = vector.load %arg5[%c0_21, %c0_22] : memref<1x32xf32, #tpu.memory_space<vmem>>, vector<1x32xf32>
    %45 = vector.broadcast %44 : vector<1x32xf32> to vector<7x32xf32>
    %46 = arith.addf %43, %45 : vector<7x32xf32>
    %c0_23 = arith.constant 0 : index
    %c0_24 = arith.constant 0 : index
    %47 = vector.load %arg6[%c0_23, %c0_24] : memref<1x32xf32, #tpu.memory_space<vmem>>, vector<1x32xf32>
    %48 = vector.broadcast %47 : vector<1x32xf32> to vector<7x32xf32>
    %49 = arith.mulf %46, %48 : vector<7x32xf32>
    %c0_25 = arith.constant 0 : index
    %c0_26 = arith.constant 0 : index
    %50 = vector.load %arg7[%c0_25, %c0_26] : memref<1x32xf32, #tpu.memory_space<vmem>>, vector<1x32xf32>
    %51 = vector.broadcast %50 : vector<1x32xf32> to vector<7x32xf32>
    %52 = arith.addf %49, %51 : vector<7x32xf32>
    %53 = arith.negf %52 : vector<7x32xf32>
    %54 = math.exp %53 : vector<7x32xf32>
    %cst_27 = arith.constant 1.000000e+00 : f32
    %55 = vector.broadcast %cst_27 : f32 to vector<7x32xf32>
    %56 = arith.addf %55, %54 : vector<7x32xf32>
    %57 = arith.divf %55, %56 : vector<7x32xf32>
    %58 = arith.mulf %52, %57 : vector<7x32xf32>
    %59 = arith.truncf %58 : vector<7x32xf32> to vector<7x32xbf16>
    %c0_28 = arith.constant 0 : index
    %c0_29 = arith.constant 0 : index
    %60 = vector.load %arg8[%c0_28, %c0_29] : memref<32x32xbf16, #tpu.memory_space<vmem>>, vector<32x32xbf16>
    %cst_30 = arith.constant dense<0.000000e+00> : vector<7x32xf32>
    %61 = tpu.matmul %59, %60, %cst_30 {dimension_numbers = #tpu.dot_dimension_numbers<[1], [0], [0], [1], [0, 0, 1, 1], [], []>} : vector<7x32xbf16>, vector<32x32xbf16>, vector<7x32xf32> -> vector<7x32xf32>
    %c0_31 = arith.constant 0 : index
    %c0_32 = arith.constant 0 : index
    %62 = vector.load %arg9[%c0_31, %c0_32] : memref<1x32xf32, #tpu.memory_space<vmem>>, vector<1x32xf32>
    %63 = vector.broadcast %62 : vector<1x32xf32> to vector<7x32xf32>
    %64 = arith.addf %61, %63 : vector<7x32xf32>
    %65 = arith.addf %1, %64 : vector<7x32xf32>
    %cst_33 = arith.constant dense<0.000000e+00> : vector<7xf32>
    %66 = vector.multi_reduction <add>, %65, %cst_33 [1] : vector<7x32xf32> to vector<7xf32>
    %67 = vector.shape_cast %66 : vector<7xf32> to vector<7x1xf32>
    %cst_34 = arith.constant 3.200000e+01 : f32
    %68 = vector.broadcast %cst_34 : f32 to vector<7x1xf32>
    %69 = arith.divf %67, %68 : vector<7x1xf32>
    %70 = vector.broadcast %69 : vector<7x1xf32> to vector<7x32xf32>
    %71 = arith.subf %65, %70 : vector<7x32xf32>
    %72 = arith.mulf %71, %71 : vector<7x32xf32>
    %cst_35 = arith.constant dense<0.000000e+00> : vector<7xf32>
    %73 = vector.multi_reduction <add>, %72, %cst_35 [1] : vector<7x32xf32> to vector<7xf32>
    %74 = vector.shape_cast %73 : vector<7xf32> to vector<7x1xf32>
    %cst_36 = arith.constant 3.200000e+01 : f32
    %75 = vector.broadcast %cst_36 : f32 to vector<7x1xf32>
    %76 = arith.divf %74, %75 : vector<7x1xf32>
    %77 = vector.broadcast %69 : vector<7x1xf32> to vector<7x32xf32>
    %78 = arith.subf %65, %77 : vector<7x32xf32>
    %cst_37 = arith.constant 9.99999974E-6 : f32
    %79 = vector.broadcast %cst_37 : f32 to vector<7x1xf32>
    %80 = arith.addf %76, %79 : vector<7x1xf32>
    %81 = math.rsqrt %80 : vector<7x1xf32>
    %82 = vector.broadcast %81 : vector<7x1xf32> to vector<7x32xf32>
    %83 = arith.mulf %78, %82 : vector<7x32xf32>
    %c0_38 = arith.constant 0 : index
    %c0_39 = arith.constant 0 : index
    %84 = vector.load %arg10[%c0_38, %c0_39] : memref<1x32xf32, #tpu.memory_space<vmem>>, vector<1x32xf32>
    %85 = vector.broadcast %84 : vector<1x32xf32> to vector<7x32xf32>
    %86 = arith.mulf %83, %85 : vector<7x32xf32>
    %c0_40 = arith.constant 0 : index
    %c0_41 = arith.constant 0 : index
    %87 = vector.load %arg11[%c0_40, %c0_41] : memref<1x32xf32, #tpu.memory_space<vmem>>, vector<1x32xf32>
    %88 = vector.broadcast %87 : vector<1x32xf32> to vector<7x32xf32>
    %89 = arith.addf %86, %88 : vector<7x32xf32>
    %c0_42 = arith.constant 0 : index
    %c0_43 = arith.constant 0 : index
    %c0_44 = arith.constant 0 : index
    %90 = vector.load %arg12[%c0_42, %c0_43, %c0_44] : memref<1x7x32xf32, #tpu.memory_space<vmem>>, vector<1x7x32xf32>
    %91 = vector.shape_cast %90 : vector<1x7x32xf32> to vector<7x32xf32>
    %92 = vector.shape_cast %89 : vector<7x32xf32> to vector<1x7x32xf32>
    tpu.vector_store %arg12[%c0_42, %c0_43, %c0_44], %92 {strides = array<i32>} : memref<1x7x32xf32, #tpu.memory_space<vmem>>, vector<1x7x32xf32>,
    return
  }
  func.func @transform_0(%arg0: i32) -> (i32, i32, i32) {
    %c0_i32 = arith.constant 0 : i32
    %c0_i32_0 = arith.constant 0 : i32
    %c0_i32_1 = arith.constant 0 : i32
    return %arg0, %c0_i32, %c0_i32_0 : i32, i32, i32
  }
  func.func @transform_1(%arg0: i32) -> (i32, i32) {
    %c0_i32 = arith.constant 0 : i32
    %c0_i32_0 = arith.constant 0 : i32
    %c0_i32_1 = arith.constant 0 : i32
    return %c0_i32, %c0_i32_0 : i32, i32
  }
  func.func @transform_2(%arg0: i32) -> (i32, i32) {
    %c0_i32 = arith.constant 0 : i32
    %c0_i32_0 = arith.constant 0 : i32
    %c0_i32_1 = arith.constant 0 : i32
    return %c0_i32, %c0_i32_0 : i32, i32
  }
  func.func @transform_3(%arg0: i32) -> (i32, i32) {
    %c0_i32 = arith.constant 0 : i32
    %c0_i32_0 = arith.constant 0 : i32
    %c0_i32_1 = arith.constant 0 : i32
    return %c0_i32, %c0_i32_0 : i32, i32
  }
  func.func @transform_4(%arg0: i32) -> (i32, i32) {
    %c0_i32 = arith.constant 0 : i32
    %c0_i32_0 = arith.constant 0 : i32
    %c0_i32_1 = arith.constant 0 : i32
    return %c0_i32, %c0_i32_0 : i32, i32
  }
  func.func @transform_5(%arg0: i32) -> (i32, i32) {
    %c0_i32 = arith.constant 0 : i32
    %c0_i32_0 = arith.constant 0 : i32
    %c0_i32_1 = arith.constant 0 : i32
    return %c0_i32, %c0_i32_0 : i32, i32
  }
  func.func @transform_6(%arg0: i32) -> (i32, i32) {
    %c0_i32 = arith.constant 0 : i32
    %c0_i32_0 = arith.constant 0 : i32
    %c0_i32_1 = arith.constant 0 : i32
    return %c0_i32, %c0_i32_0 : i32, i32
  }
  func.func @transform_7(%arg0: i32) -> (i32, i32) {
    %c0_i32 = arith.constant 0 : i32
    %c0_i32_0 = arith.constant 0 : i32
    %c0_i32_1 = arith.constant 0 : i32
    return %c0_i32, %c0_i32_0 : i32, i32
  }
  func.func @transform_8(%arg0: i32) -> (i32, i32) {
    %c0_i32 = arith.constant 0 : i32
    %c0_i32_0 = arith.constant 0 : i32
    %c0_i32_1 = arith.constant 0 : i32
    return %c0_i32, %c0_i32_0 : i32, i32
  }
  func.func @transform_9(%arg0: i32) -> (i32, i32) {
    %c0_i32 = arith.constant 0 : i32
    %c0_i32_0 = arith.constant 0 : i32
    %c0_i32_1 = arith.constant 0 : i32
    return %c0_i32, %c0_i32_0 : i32, i32
  }
  func.func @transform_10(%arg0: i32) -> (i32, i32) {
    %c0_i32 = arith.constant 0 : i32
    %c0_i32_0 = arith.constant 0 : i32
    %c0_i32_1 = arith.constant 0 : i32
    return %c0_i32, %c0_i32_0 : i32, i32
  }
  func.func @transform_11(%arg0: i32) -> (i32, i32, i32) {
    %c0_i32 = arith.constant 0 : i32
    %c0_i32_0 = arith.constant 0 : i32
    %c0_i32_1 = arith.constant 0 : i32
    return %arg0, %c0_i32, %c0_i32_0 : i32, i32, i32
  }
}

module attributes {stable_mosaic.version = 11 : i64} {
  func.func @_linear_kernel(%arg0: i32, %arg1: memref<32x96xf32, #tpu.memory_space<vmem>>, %arg2: memref<96x32xbf16, #tpu.memory_space<vmem>>, %arg3: memref<1x32xf32, #tpu.memory_space<vmem>>, %arg4: memref<32x32xf32, #tpu.memory_space<vmem>>) attributes {dimension_semantics = [#tpu.dimension_semantics<parallel>], iteration_bounds = array<i64: 1>, scalar_prefetch = 0 : i64, scratch_operands = 0 : i64, tpu.core_type = #tpu.core_type<tc>, window_params = [{transform_indices = @transform_0, window_bounds = array<i64: 32, 96>}, {pipeline_mode = #tpu.pipeline_mode<synchronous>, transform_indices = @transform_1, window_bounds = array<i64: 96, 32>}, {pipeline_mode = #tpu.pipeline_mode<synchronous>, transform_indices = @transform_2, window_bounds = array<i64: 1, 32>}, {transform_indices = @transform_3, window_bounds = array<i64: 32, 32>}]} {
    %c0 = arith.constant 0 : index
    %c0_0 = arith.constant 0 : index
    %0 = vector.load %arg1[%c0, %c0_0] : memref<32x96xf32, #tpu.memory_space<vmem>>, vector<32x96xf32>
    %1 = arith.truncf %0 : vector<32x96xf32> to vector<32x96xbf16>
    %c0_1 = arith.constant 0 : index
    %c0_2 = arith.constant 0 : index
    %2 = vector.load %arg2[%c0_1, %c0_2] : memref<96x32xbf16, #tpu.memory_space<vmem>>, vector<96x32xbf16>
    %cst = arith.constant dense<0.000000e+00> : vector<32x32xf32>
    %3 = tpu.matmul %1, %2, %cst {dimension_numbers = #tpu.dot_dimension_numbers<[1], [0], [0], [1], [0, 0, 1, 1], [], []>} : vector<32x96xbf16>, vector<96x32xbf16>, vector<32x32xf32> -> vector<32x32xf32>
    %c0_3 = arith.constant 0 : index
    %c0_4 = arith.constant 0 : index
    %4 = vector.load %arg3[%c0_3, %c0_4] : memref<1x32xf32, #tpu.memory_space<vmem>>, vector<1x32xf32>
    %5 = vector.broadcast %4 : vector<1x32xf32> to vector<32x32xf32>
    %6 = arith.addf %3, %5 : vector<32x32xf32>
    %c0_5 = arith.constant 0 : index
    %c0_6 = arith.constant 0 : index
    %7 = vector.load %arg4[%c0_5, %c0_6] : memref<32x32xf32, #tpu.memory_space<vmem>>, vector<32x32xf32>
    tpu.vector_store %arg4[%c0_5, %c0_6], %6 {strides = array<i32>} : memref<32x32xf32, #tpu.memory_space<vmem>>, vector<32x32xf32>,
    return
  }
  func.func @transform_0(%arg0: i32) -> (i32, i32) {
    %c0_i32 = arith.constant 0 : i32
    %c0_i32_0 = arith.constant 0 : i32
    return %arg0, %c0_i32 : i32, i32
  }
  func.func @transform_1(%arg0: i32) -> (i32, i32) {
    %c0_i32 = arith.constant 0 : i32
    %c0_i32_0 = arith.constant 0 : i32
    %c0_i32_1 = arith.constant 0 : i32
    return %c0_i32, %c0_i32_0 : i32, i32
  }
  func.func @transform_2(%arg0: i32) -> (i32, i32) {
    %c0_i32 = arith.constant 0 : i32
    %c0_i32_0 = arith.constant 0 : i32
    %c0_i32_1 = arith.constant 0 : i32
    return %c0_i32, %c0_i32_0 : i32, i32
  }
  func.func @transform_3(%arg0: i32) -> (i32, i32) {
    %c0_i32 = arith.constant 0 : i32
    %c0_i32_0 = arith.constant 0 : i32
    return %arg0, %c0_i32 : i32, i32
  }
}

</mosaic_0001>

<bundles_post_ra>
// kernel: tpu_custom_call.1
= control target key start
LH: loop header
LB: loop body
LE: loop exit
PB: predicated region body
PF: predicated region fallthrough
CT: control target
= control target key end

     0   :  { %6 = vsyncpa [#allocation3], 0  ;;  %s103_s0 = inlined_call_operand.hbm [shape: f32[8,128], index: 0, kind: input, shape index: {}]   ;;  %s104_s1 = inlined_call_operand.hbm [shape: f32[8,128], index: 1, kind: output, shape index: {}]  }
   0x1   :  { %7 = vsyncpa [#allocation4], 0  ;;  %s85_s6 = smov [#allocation2]  }
   0x2   :  { %s14_s7 = sshll.u32 %s85_s6, 4  ;;  %s15_s7 = int_to_ptr.vmem [resolvable:$true] %s14_s7 }
   0x3   :  { %s49_s8 = scalar_lea.vmem %s15_s7, 128  ;;  %p54_p1 = scmp.lt.s32.totalorder %s15_s7, %s15_s7 }
   0x4   :  { %p50_p0 = scmp.ne.s32.totalorder %s15_s7, %s49_s8  ;;  %p55_p2 = scmp.lt.s32.totalorder %s49_s8, %s49_s8 }
   0x6   :  { %p56_p3 = por %p55_p2, %p54_p1 }
   0x8   :  { %p57_p4 = pnand %p56_p3, %p50_p0 }
   0xa   :  { %60 = shalt.err (!%p57_p4)
}
   0xb   :  { %17 = dma.hbm_to_vmem [thread:$0]  %s103_s0, 128, %s15_s7, [#allocation3]  }
   0xc   :  { %81 = dma.done.wait [#allocation3], 128  }
   0xd   :  { %82 = vsyncadd [#allocation3], 4294967168  ;;  %s86_s11 = smov [#allocation5]   ;;  %v21_v0 = vld [vmem:[#allocation2] sm:$0xff] }
   0xe   :  { %s30_s12 = sshll.u32 %s86_s11, 4  ;;  %v22_v1 = vmul.f32 2.0, %v21_v0  ;;  %s31_s12 = int_to_ptr.vmem [resolvable:$true] %s30_s12 }
   0xf   :  { %s61_s13 = scalar_lea.vmem %s31_s12, 128  ;;  %p66_p6 = scmp.lt.s32.totalorder %s31_s12, %s31_s12 }
  0x10   :  { %23 = vst [vmem:[#allocation5] sm:$0xff] %v22_v1  ;;  %p62_p5 = scmp.ne.s32.totalorder %s31_s12, %s61_s13  ;;  %p67_p7 = scmp.lt.s32.totalorder %s61_s13, %s61_s13 }
  0x12   :  { %p68_p8 = por %p67_p7, %p66_p6 }
  0x14   :  { %p69_p9 = pnand %p68_p8, %p62_p5 }
  0x16   :  { %72 = shalt.err (!%p69_p9)
}
  0x17   :  { %33 = dma.vmem_to_hbm [thread:$0]  %s31_s12, 128, %s104_s1, [#allocation4]  }
  0x18   :  { %83 = dma.done.wait [#allocation4], 128  }
  0x19   :  { %84 = vsyncadd [#allocation4], 4294967168 }
  0x1a   :  { %37 = vsyncpa [#allocation3], 1 }
  0x1b   :  { %38 = vsyncpa [#allocation4], 1 }

// kernel: squeezeformer_encoder.28
= control target key start
LH: loop header
LB: loop body
LE: loop exit
PB: predicated region body
PF: predicated region fallthrough
CT: control target
= control target key end

     0   :  { %vm52_vm0 = vcmask 392192   ;;  %vm108_vm1 = vcmask 130048   ;;  %s197_s1 = inlined_call_operand.vmem [shape: bf16[48,16], index: 1, kind: input, shape index: {}]   ;;  %s198_s0 = inlined_call_operand.vmem [shape: f32[32,48], index: 0, kind: input, shape index: {}]   ;;  %s199_s2 = inlined_call_operand.vmem [shape: f32[1,16], index: 2, kind: input, shape index: {}]   ;;  %s200_s3 = inlined_call_operand.vmem [shape: f32[32,16], index: 3, kind: output, shape index: {}]  }
   0x1   :  { %v138_v0 = vld [vmem:[%s197_s1 + $0x10] sm:$0xff]   ;;  %v139_v1 = vld [vmem:[%s197_s1 + $0x8] sm:$0xff]   ;;  %v15_v2 = vld [vmem:[%s198_s0] sm:$0xff] }
   0x2   :  { %128 = vmatprep.subr.bf16.mxu0 %v138_v0  ;;  %v16_v3 = vld [vmem:[%s198_s0 + $0x8] sm:$0xff]  ;;  %v140_v4 = vld [vmem:[%s197_s1] sm:$0xff]   ;;  %v17_v6 = vld [vmem:[%s198_s0 + $0x10] sm:$0xff] }
   0x3   :  { %129 = vmatpush3.bf16.msra.mxu0 %v138_v0  ;;  %v19_v5 = vpack.c.bf16 %v16_v3, %v15_v2  ;;  %v18_v7 = vld [vmem:[%s198_s0 + $0x18] sm:$0xff]  ;;  %v117_v9 = vld [vmem:[%s199_s2] ss:$0 sm:$0xff] }
   0x4   :  { %130 = vmatprep.subr.bf16.mxu0 %v139_v1  ;;  %v20_v8 = vpack.c.bf16 %v18_v7, %v17_v6 }
   0x5   :  { %134 = vmatprep.mubr.msk.bf16.mxu0 %vm52_vm0, %v19_v5 }
   0x7   :  { %131 = vmatpush3.bf16.msra.mxu0 %v139_v1 }
   0x8   :  { %132 = vmatprep.subr.bf16.mxu0 %v140_v4 }
   0xb   :  { %133 = vmatpush3.bf16.msra.mxu0 %v140_v4 }
   0xe   :  { %135 = vmatmul.mubr.msk.bf16.vlgmr.msra.gmra.mxu0 %vm52_vm0, %v20_v8 }
  0xce   :  { %v136_v10 = vpop.f32.mrf.mxu0 }
  0xcf   :  { %v102_v11 = vadd.f32 %v136_v10, %v117_v9 }
  0xd0   :  { %v93_v12 = vpop.f32.mrf.mxu0 }
  0xd1   :  { %111 = vst.msk [vmem:[%s200_s3 + $0x10] sm:$0xff] %vm108_vm1, %v102_v11  ;;  %v94_v13 = vadd.f32 %v117_v9, %v93_v12 }
  0xd2   :  { %v137_v14 = vpop.f32.mrf.mxu0 }
  0xd3   :  { %109 = vst.msk [vmem:[%s200_s3] sm:$0xff] %vm108_vm1, %v94_v13  ;;  %v105_v15 = vadd.f32 %v137_v14, %v117_v9 }
  0xd4   :  { %v96_v16 = vpop.f32.mrf.mxu0 }
  0xd5   :  { %112 = vst.msk [vmem:[%s200_s3 + $0x18] sm:$0xff] %vm108_vm1, %v105_v15  ;;  %v97_v17 = vadd.f32 %v117_v9, %v96_v16 }
  0xd7   :  { %110 = vst.msk [vmem:[%s200_s3 + $0x8] sm:$0xff] %vm108_vm1, %v97_v17 }

// kernel: squeezeformer_encoder.30
= control target key start
LH: loop header
LB: loop body
LE: loop exit
PB: predicated region body
PF: predicated region fallthrough
CT: control target
= control target key end

     0   :  { %vm44_vm0 = vcmask 261120   ;;  %vm100_vm1 = vcmask 785408   ;;  %s181_s1 = inlined_call_operand.vmem [shape: bf16[32,96], index: 1, kind: input, shape index: {}]   ;;  %s182_s0 = inlined_call_operand.vmem [shape: f32[32,32], index: 0, kind: input, shape index: {}]   ;;  %s183_s2 = inlined_call_operand.vmem [shape: f32[1,96], index: 2, kind: input, shape index: {}]   ;;  %s184_s3 = inlined_call_operand.vmem [shape: f32[32,96], index: 3, kind: output, shape index: {}]  }
   0x1   :  { %v126_v0 = vld [vmem:[%s181_s1 + $0x8] sm:$0xff]   ;;  %v127_v1 = vld [vmem:[%s181_s1] sm:$0xff]   ;;  %v17_v5 = vld [vmem:[%s182_s0 + $0x10] sm:$0xff] }
   0x2   :  { %118 = vmatprep.subr.bf16.mxu0 %v126_v0  ;;  %v15_v2 = vld [vmem:[%s182_s0] sm:$0xff]  ;;  %v16_v3 = vld [vmem:[%s182_s0 + $0x8] sm:$0xff]  ;;  %v18_v6 = vld [vmem:[%s182_s0 + $0x18] sm:$0xff] }
   0x3   :  { %119 = vmatpush3.bf16.msra.mxu0 %v126_v0  ;;  %v19_v4 = vpack.c.bf16 %v16_v3, %v15_v2  ;;  %v20_v7 = vpack.c.bf16 %v18_v6, %v17_v5  ;;  %v109_v8 = vld [vmem:[%s183_s2] ss:$0 sm:$0xff] }
   0x4   :  { %120 = vmatprep.subr.bf16.mxu0 %v127_v1 }
   0x5   :  { %122 = vmatprep.mubr.msk.bf16.mxu0 %vm44_vm0, %v19_v4 }
   0x7   :  { %121 = vmatpush3.bf16.msra.mxu0 %v127_v1 }
   0xa   :  { %123 = vmatmul.mubr.msk.bf16.vlgmr.msra.gmra.mxu0 %vm44_vm0, %v20_v7 }
  0xca   :  { %v124_v9 = vpop.f32.mrf.mxu0 }
  0xcb   :  { %v94_v10 = vadd.f32 %v124_v9, %v109_v8 }
  0xcc   :  { %v85_v11 = vpop.f32.mrf.mxu0 }
  0xcd   :  { %103 = vst.msk [vmem:[%s184_s3 + $0x10] sm:$0xff] %vm100_vm1, %v94_v10  ;;  %v86_v12 = vadd.f32 %v109_v8, %v85_v11 }
  0xce   :  { %v125_v13 = vpop.f32.mrf.mxu0 }
  0xcf   :  { %101 = vst.msk [vmem:[%s184_s3] sm:$0xff] %vm100_vm1, %v86_v12  ;;  %v97_v14 = vadd.f32 %v125_v13, %v109_v8 }
  0xd0   :  { %v88_v15 = vpop.f32.mrf.mxu0 }
  0xd1   :  { %104 = vst.msk [vmem:[%s184_s3 + $0x18] sm:$0xff] %vm100_vm1, %v97_v14  ;;  %v89_v16 = vadd.f32 %v109_v8, %v88_v15 }
  0xd3   :  { %102 = vst.msk [vmem:[%s184_s3 + $0x8] sm:$0xff] %vm100_vm1, %v89_v16 }

// kernel: squeezeformer_encoder.29
= control target key start
LH: loop header
LB: loop body
LE: loop exit
PB: predicated region body
PF: predicated region fallthrough
CT: control target
= control target key end

     0   :  { %vm36_vm0 = vcmask 130048   ;;  %vm92_vm1 = vcmask 261120   ;;  %s165_s1 = inlined_call_operand.vmem [shape: bf16[16,32], index: 1, kind: input, shape index: {}]   ;;  %s166_s0 = inlined_call_operand.vmem [shape: f32[32,16], index: 0, kind: input, shape index: {}]   ;;  %s167_s2 = inlined_call_operand.vmem [shape: f32[1,32], index: 2, kind: input, shape index: {}]   ;;  %s168_s3 = inlined_call_operand.vmem [shape: f32[32,32], index: 3, kind: output, shape index: {}]  }
   0x1   :  { %v114_v0 = vld [vmem:[%s165_s1] sm:$0xff]   ;;  %v16_v2 = vld [vmem:[%s166_s0 + $0x8] sm:$0xff]  ;;  %v17_v3 = vld [vmem:[%s166_s0 + $0x10] sm:$0xff] }
   0x2   :  { %v15_v1 = vld [vmem:[%s166_s0] sm:$0xff]  ;;  %108 = vmatprep.subr.bf16.mxu0 %v114_v0  ;;  %v18_v5 = vld [vmem:[%s166_s0 + $0x18] sm:$0xff] }
   0x3   :  { %v19_v4 = vpack.c.bf16 %v16_v2, %v15_v1  ;;  %109 = vmatpush3.bf16.msra.mxu0 %v114_v0  ;;  %v20_v6 = vpack.c.bf16 %v18_v5, %v17_v3  ;;  %v101_v7 = vld [vmem:[%s167_s2] ss:$0 sm:$0xff] }
   0x5   :  { %110 = vmatprep.mubr.msk.bf16.mxu0 %vm36_vm0, %v19_v4 }
   0x6   :  { %111 = vmatmul.mubr.msk.bf16.vlgmr.msra.gmra.mxu0 %vm36_vm0, %v20_v6 }
  0xc6   :  { %v112_v8 = vpop.f32.mrf.mxu0 }
  0xc7   :  { %v86_v9 = vadd.f32 %v112_v8, %v101_v7 }
  0xc8   :  { %v77_v10 = vpop.f32.mrf.mxu0 }
  0xc9   :  { %95 = vst.msk [vmem:[%s168_s3 + $0x10] sm:$0xff] %vm92_vm1, %v86_v9  ;;  %v78_v11 = vadd.f32 %v101_v7, %v77_v10 }
  0xca   :  { %v113_v12 = vpop.f32.mrf.mxu0 }
  0xcb   :  { %93 = vst.msk [vmem:[%s168_s3] sm:$0xff] %vm92_vm1, %v78_v11  ;;  %v89_v13 = vadd.f32 %v113_v12, %v101_v7 }
  0xcc   :  { %v80_v14 = vpop.f32.mrf.mxu0 }
  0xcd   :  { %96 = vst.msk [vmem:[%s168_s3 + $0x18] sm:$0xff] %vm92_vm1, %v89_v13  ;;  %v81_v15 = vadd.f32 %v101_v7, %v80_v14 }
  0xcf   :  { %94 = vst.msk [vmem:[%s168_s3 + $0x8] sm:$0xff] %vm92_vm1, %v81_v15 }

// kernel: squeezeformer_encoder.31
= control target key start
LH: loop header
LB: loop body
LE: loop exit
PB: predicated region body
PF: predicated region fallthrough
CT: control target
= control target key end

     0   :  { %s968_s9 = smov 0   ;;  %s1095_s0 = inlined_call_operand.vmem [shape: f32[2,15,96], index: 0, kind: input, shape index: {}]   ;;  %s1096_s1 = inlined_call_operand.vmem [shape: f32[2,1,15], index: 1, kind: input, shape index: {}]   ;;  %s1097_s2 = inlined_call_operand.vmem [shape: f32[2,15,32], index: 2, kind: output, shape index: {}]  }
   0x1 LB: > { %s784_s10 = sadd.s32 4294967295, %s933_s9   ;;  %p788_p0 = scmp.ge.s32.totalorder %s933_s9, 1  ;;  %s933_s9 = sphi %s968_s9, %s12_s9  }
   0x2   : > { %p120_p1 = scmp.lt.s32.totalorder %s933_s9, 3 }
   0x4   : > { %p121_p2 = pnand %p788_p0, %p120_p1 }
   0x5   : > { %p145_p3 = scmp.lt.s32.totalorder (!%p121_p2), %s784_s10, 1  ;;  %s937_s15 = smov (!%p121_p2), 96  }
   0x6   : > { %124 = sbr.rel (%p121_p2) target bundleno = 1506 (0x5e2), region = 28  ;;  %s939_s19 = smov (!%p121_p2), 64  }
   0x7   : > { %s940_s20 = smov (!%p121_p2), 80   ;;  %s942_s21 = smov (!%p121_p2), 88  }
   0x8   : > { %s943_s22 = smov (!%p121_p2), 120   ;;  %s944_s23 = smov (!%p121_p2), 112  }
   0x9   : > { %s945_s24 = smov (!%p121_p2), 72   ;;  %s946_s25 = smov (!%p121_p2), 104  }
   0xa   : > { %s947_s26 = smov (!%p121_p2), 56   ;;  %s948_s27 = smov (!%p121_p2), 40  }
   0xb   : > { %v935_v0 = vmov 0.0   ;;  %vm936_vm0 = vmmov 0   ;;  %s1099_s10 = smov (!%p145_p3, %s784_s10), 1  ;;  %vm166_vm1 = vcmask 64512   ;;  %v218_v6 = vlaneseq  ;;  %s949_s28 = smov 48  }
   0xc   : > { %821 = vmatprep.subr.bf16.mxu0 %v935_v0  ;;  %823 = vmatprep.mubr.msk.bf16.mxu0 %vm936_vm0, %v935_v0  ;;  %s803_s11 = sshll.u32 %s1099_s10, 4  ;;  %s152_s18 = scalar_lea.vmem %s1096_s1, %s1099_s10  ;;  %v938_v10 = vmov 0   ;;  %vm225_vm4 = vcmask 121856   ;;  %vm229_vm5 = vcmask 120832   ;;  %vm255_vm6 = vcmask 1046528  }
   0xd   : > { %827 = vmatprep.subr.bf16.mxu1 %v935_v0  ;;  %829 = vmatprep.mubr.msk.bf16.mxu1 %vm936_vm0, %v935_v0  ;;  %s149_s14 = scalar_lea.vmem %s1095_s0, %s803_s11  ;;  %v161_v7 = vld [vmem:[%s152_s18] sm:$0x1]  ;;  %v219_v8 = vshrl.u32 %v218_v6, 7  ;;  %vm256_vm7 = vcmask 1047552   ;;  %v941_v26 = vmov 65535   ;;  %s950_s29 = smov 8  }
   0xe   : > { %v159_v1 = vld [vmem:[%s149_s14] sm:$0xff]  ;;  %v160_v2 = vld [vmem:[%s149_s14 + $0x8] sm:$0x7f]  ;;  %vm216_vm2 = vcmp.gt.f32.partialorder %v161_v7, 0.5  ;;  %v257_v27 = vsel %vm255_vm6, 4294967295, %v941_v26  ;;  %s951_s30 = smov 16   ;;  %s157_s6 = scalar_lea.vmem %s1097_s2, %s803_s11 }
   0xf   : > { %v990_v3 = vpack.c.bf16 %v160_v2, %v159_v1  ;;  %v220_v9 = vsub.s32 0, %v219_v8  ;;  %v217_v11 = vsel %vm216_vm2, 1, %v938_v10  ;;  %v1014_v30 = vsel %vm256_vm7, %v257_v27, 0  ;;  %s952_s3 = smov 24  }
  0x10   : > { %vm710_vm8 = vcmask 130048   ;;  %vm713_vm9 = vcmask 195584   ;;  %vm716_vm10 = vcmask 261120   ;;  %vm718_vm11 = vcmask 260096  }
  0x11   : > { %164 = vrot.lane.b32.xlu0 %v990_v3, %s937_s15  ;;  %v1003_v12 = vrot.slane %v217_v11, %v220_v9 }
  0x13   : > { %vm222_vm3 = vcmp.eq.s32.totalorder %v1003_v12, 1 }
  0x83   : > { %v165_v4 = vpop.permute.xlu0 %164 }
  0x84   : > { %v171_v5 = vsel %vm166_vm1, %v165_v4, 0 }
  0x85   : > { %822 = vmatpush3.bf16.xpose.msra.mxu0 %v171_v5 }
  0x86   : > { %839 = vmatprep.subr.bf16.mxu0 %v935_v0 }
  0x8c   : > { %824 = vmatmul.mubr.msk.bf16.vlgmr.msra.gmra.mxu0 %vm166_vm1, %v990_v3 }
  0x8d   : > { %841 = vmatprep.mubr.msk.bf16.mxu0 %vm936_vm0, %v935_v0 }
 0x14c   : > { %v207_v13 = vpop.f32.mrf.mxu0 }
 0x14d   : > { %v214_v14 = vmul.f32 0.35355338, %v207_v13 }
 0x14e   : > { %v825_v15 = vpop.f32.mrf.mxu0 }
 0x14f   : > { %v223_v16 = vsel %vm222_vm3, %v214_v14, -1e+15 }
 0x150   : > { %v210_v17 = vpop.f32.mrf.mxu0  ;;  %v226_v18 = vsel %vm225_vm4, %v223_v16, -inf }
 0x151   : > { %v215_v19 = vmul.f32 0.35355338, %v210_v17  ;;  %227 = vmax.xlane.f32.xlu0 %v226_v18 }
 0x152   : > { %v826_v20 = vpop.f32.mrf.mxu0 }
 0x153   : > { %v224_v21 = vsel %vm222_vm3, %v215_v19, -1e+15 }
 0x154   : > { %v230_v22 = vsel %vm229_vm5, %v224_v21, -inf }
 0x155   : > { %231 = vmax.xlane.f32.xlu1 %v230_v22 }
 0x166   : > { %250 = vrot.lane.b32.xlu1 %v990_v3, %s939_s19 }
 0x167   : > { %432 = vrot.lane.b32.xlu0 %v990_v3, %s940_s20 }
 0x1da   : > { %v228_v23 = vpop.xlane.xlu0 %227 }
 0x1db   : > { %v233_v24 = vsub.f32 %v223_v16, %v228_v23 }
 0x1dd   : > { %v235_v25 = vmul.f32 1.442695, %v233_v24 }
 0x1de   : > { %v232_v28 = vpop.xlane.xlu1 %231  ;;  %v433_v48 = vpop.permute.xlu0 %432 }
 0x1df   : > { %895 = vpow2.f32 %v235_v25  ;;  %v234_v29 = vsub.f32 %v224_v21, %v232_v28  ;;  %v438_v50 = vsel %vm166_vm1, %v433_v48, 0 }
 0x1e1   : > { %v237_v31 = vmul.f32 1.442695, %v234_v29 }
 0x1e2   : > { %v251_v32 = vpop.permute.xlu1 %250 }
 0x1e3   : > { %897 = vpow2.f32 %v237_v31  ;;  %v260_v33 = vand.u32 %v1014_v30, %v251_v32 }
 0x1e5   : > { %828 = vmatpush3.bf16.msra.mxu1 %v260_v33 }
 0x1e6   : > { %833 = vmatprep.subr.bf16.mxu1 %v935_v0 }
 0x1ec   : > { %v896_v34 = vpop.eup %895 }
 0x1ed   : > { %v239_v35 = vsel %vm225_vm4, %v896_v34, 0.0 }
 0x1ee   : > { %240 = vadd.xlane.f32.xlu1 %v239_v35 }
 0x1f0   : > { %v898_v36 = vpop.eup %897 }
 0x1f1   : > { %v242_v37 = vsel %vm229_vm5, %v898_v36, 0.0 }
 0x1f2   : > { %243 = vadd.xlane.f32.xlu1 %v242_v37 }
 0x203   : > { %305 = vrot.lane.b32.xlu1 %v990_v3, %s942_s21 }
 0x207   : > { %303 = vrot.lane.b32.xlu1 %v990_v3, %s943_s22 }
 0x20b   : > { %430 = vrot.lane.b32.xlu1 %v990_v3, %s944_s23 }
 0x20f   : > { %559 = vrot.lane.b32.xlu1 %v990_v3, %s945_s24 }
 0x213   : > { %557 = vrot.lane.b32.xlu1 %v990_v3, %s946_s25 }
 0x277   : > { %v241_v38 = vpop.xlane.xlu1 %240 }
 0x278   : > { %899 = vrcp.f32 %v241_v38 }
 0x27b   : > { %v244_v39 = vpop.xlane.xlu1 %243 }
 0x27c   : > { %901 = vrcp.f32 %v244_v39 }
 0x27f   : > { %v306_v42 = vpop.permute.xlu1 %305 }
 0x280   : > { %v311_v45 = vsel %vm166_vm1, %v306_v42, 0 }
 0x283   : > { %v304_v47 = vpop.permute.xlu1 %303 }
 0x285   : > { %v900_v40 = vpop.eup %899 }
 0x286   : > { %v246_v43 = vmul.f32 %v900_v40, %v896_v34 }
 0x287   : > { %v431_v49 = vpop.permute.xlu1 %430 }
 0x289   : > { %v902_v41 = vpop.eup %901 }
 0x28a   : > { %v248_v44 = vmul.f32 %v902_v41, %v898_v36 }
 0x28b   : > { %v560_v51 = vpop.permute.xlu1 %559 }
 0x28c   : > { %v249_v46 = vpack.c.bf16 %v248_v44, %v246_v43  ;;  %v565_v52 = vsel %vm166_vm1, %v560_v51, 0 }
 0x28e   : > { %830 = vmatmul.mubr.msk.bf16.vlgmr.msra.gmra.mxu1 %vm225_vm4, %v249_v46 }
 0x28f   : > { %834 = vmatpush3.bf16.xpose.msra.mxu1 %v311_v45  ;;  %835 = vmatprep.mubr.msk.bf16.mxu1 %vm936_vm0, %v935_v0  ;;  %v558_v53 = vpop.permute.xlu1 %557 }
 0x290   : > { %845 = vmatprep.subr.bf16.mxu1 %v935_v0 }
 0x296   : > { %836 = vmatmul.mubr.msk.bf16.vlgmr.msra.gmra.mxu1 %vm166_vm1, %v304_v47 }
 0x297   : > { %846 = vmatpush3.bf16.xpose.msra.mxu1 %v438_v50  ;;  %847 = vmatprep.mubr.msk.bf16.mxu1 %vm936_vm0, %v935_v0 }
 0x298   : > { %857 = vmatprep.subr.bf16.mxu1 %v935_v0 }
 0x29e   : > { %848 = vmatmul.mubr.msk.bf16.vlgmr.msra.gmra.mxu1 %vm166_vm1, %v431_v49 }
 0x29f   : > { %858 = vmatpush3.bf16.xpose.msra.mxu1 %v565_v52  ;;  %859 = vmatprep.mubr.msk.bf16.mxu1 %vm936_vm0, %v935_v0 }
 0x2a6   : > { %860 = vmatmul.mubr.msk.bf16.vlgmr.msra.gmra.mxu1 %vm166_vm1, %v558_v53 }
 0x34e   : > { %v1040_v54 = vpop.f32.mrf.mxu1 }
 0x350   : > { %v831_v55 = vpop.f32.mrf.mxu1 }
 0x352   : > { %v1042_v56 = vpop.f32.mrf.mxu1 }
 0x354   : > { %v832_v57 = vpop.f32.mrf.mxu1 }
 0x356   : > { %v347_v58 = vpop.f32.mrf.mxu1 }
 0x357   : > { %v354_v59 = vmul.f32 0.35355338, %v347_v58 }
 0x358   : > { %v837_v60 = vpop.f32.mrf.mxu1 }
 0x359   : > { %v356_v61 = vsel %vm222_vm3, %v354_v59, -1e+15 }
 0x35a   : > { %v350_v62 = vpop.f32.mrf.mxu1  ;;  %v358_v63 = vsel %vm225_vm4, %v356_v61, -inf }
 0x35b   : > { %v355_v1 = vmul.f32 0.35355338, %v350_v62  ;;  %359 = vmax.xlane.f32.xlu1 %v358_v63 }
 0x35c   : > { %v838_v2 = vpop.f32.mrf.mxu1 }
 0x35d   : > { %v357_v4 = vsel %vm222_vm3, %v355_v1, -1e+15 }
 0x35e   : > { %v474_v5 = vpop.f32.mrf.mxu1  ;;  %v361_v6 = vsel %vm229_vm5, %v357_v4, -inf }
 0x35f   : > { %v481_v7 = vmul.f32 0.35355338, %v474_v5  ;;  %362 = vmax.xlane.f32.xlu0 %v361_v6 }
 0x360   : > { %v849_v8 = vpop.f32.mrf.mxu1 }
 0x361   : > { %v483_v9 = vsel %vm222_vm3, %v481_v7, -1e+15 }
 0x362   : > { %v477_v10 = vpop.f32.mrf.mxu1  ;;  %v485_v11 = vsel %vm225_vm4, %v483_v9, -inf }
 0x363   : > { %v482_v13 = vmul.f32 0.35355338, %v477_v10  ;;  %486 = vmax.xlane.f32.xlu1 %v485_v11 }
 0x364   : > { %v850_v14 = vpop.f32.mrf.mxu1 }
 0x365   : > { %v484_v15 = vsel %vm222_vm3, %v482_v13, -1e+15 }
 0x366   : > { %v601_v16 = vpop.f32.mrf.mxu1  ;;  %v488_v17 = vsel %vm229_vm5, %v484_v15, -inf }
 0x367   : > { %v608_v18 = vmul.f32 0.35355338, %v601_v16  ;;  %489 = vmax.xlane.f32.xlu0 %v488_v17 }
 0x368   : > { %v861_v19 = vpop.f32.mrf.mxu1 }
 0x369   : > { %v610_v20 = vsel %vm222_vm3, %v608_v18, -1e+15 }
 0x36a   : > { %v604_v21 = vpop.f32.mrf.mxu1  ;;  %v612_v22 = vsel %vm225_vm4, %v610_v20, -inf }
 0x36b   : > { %v609_v23 = vmul.f32 0.35355338, %v604_v21  ;;  %613 = vmax.xlane.f32.xlu1 %v612_v22 }
 0x36c   : > { %v862_v24 = vpop.f32.mrf.mxu1 }
 0x36d   : > { %v611_v25 = vsel %vm222_vm3, %v609_v23, -1e+15 }
 0x36e   : > { %v615_v26 = vsel %vm229_vm5, %v611_v25, -inf }
 0x36f   : > { %616 = vmax.xlane.f32.xlu0 %v615_v26 }
 0x37c   : > { %381 = vrot.lane.b32.xlu1 %v990_v3, %s947_s26 }
 0x3e4   : > { %v360_v27 = vpop.xlane.xlu1 %359 }
 0x3e5   : > { %v364_v28 = vsub.f32 %v356_v61, %v360_v27 }
 0x3e7   : > { %v366_v29 = vmul.f32 1.442695, %v364_v28 }
 0x3e8   : > { %v363_v31 = vpop.xlane.xlu0 %362 }
 0x3e9   : > { %903 = vpow2.f32 %v366_v29  ;;  %v365_v32 = vsub.f32 %v357_v4, %v363_v31 }
 0x3eb   : > { %v368_v33 = vmul.f32 1.442695, %v365_v32 }
 0x3ec   : > { %v487_v34 = vpop.xlane.xlu1 %486 }
 0x3ed   : > { %905 = vpow2.f32 %v368_v33  ;;  %v491_v35 = vsub.f32 %v483_v9, %v487_v34 }
 0x3ef   : > { %v493_v36 = vmul.f32 1.442695, %v491_v35 }
 0x3f0   : > { %v490_v37 = vpop.xlane.xlu0 %489 }
 0x3f1   : > { %907 = vpow2.f32 %v493_v36  ;;  %v492_v12 = vsub.f32 %v484_v15, %v490_v37 }
 0x3f3   : > { %v495_v38 = vmul.f32 1.442695, %v492_v12 }
 0x3f4   : > { %v614_v39 = vpop.xlane.xlu1 %613 }
 0x3f5   : > { %909 = vpow2.f32 %v495_v38  ;;  %v618_v40 = vsub.f32 %v610_v20, %v614_v39 }
 0x3f6   : > { %v904_v41 = vpop.eup %903 }
 0x3f7   : > { %v620_v42 = vmul.f32 1.442695, %v618_v40  ;;  %v370_v43 = vsel %vm225_vm4, %v904_v41, 0.0 }
 0x3f8   : > { %v617_v44 = vpop.xlane.xlu0 %616  ;;  %371 = vadd.xlane.f32.xlu1 %v370_v43  ;;  %v382_v45 = vpop.permute.xlu1 %381 }
 0x3f9   : > { %911 = vpow2.f32 %v620_v42  ;;  %v619_v46 = vsub.f32 %v611_v25, %v617_v44  ;;  %v387_v47 = vand.u32 %v382_v45, %v1014_v30 }
 0x3fa   : > { %v906_v48 = vpop.eup %905 }
 0x3fb   : > { %v622_v49 = vmul.f32 1.442695, %v619_v46  ;;  %v373_v50 = vsel %vm229_vm5, %v906_v48, 0.0  ;;  %840 = vmatpush3.bf16.msra.mxu0 %v387_v47 }
 0x3fc   : > { %374 = vadd.xlane.f32.xlu0 %v373_v50  ;;  %851 = vmatprep.subr.bf16.mxu0 %v935_v0 }
 0x3fd   : > { %913 = vpow2.f32 %v622_v49 }
 0x3fe   : > { %v908_v51 = vpop.eup %907 }
 0x3ff   : > { %v497_v52 = vsel %vm225_vm4, %v908_v51, 0.0 }
 0x400   : > { %498 = vadd.xlane.f32.xlu1 %v497_v52 }
 0x402   : > { %v910_v53 = vpop.eup %909 }
 0x403   : > { %v500_v55 = vsel %vm229_vm5, %v910_v53, 0.0 }
 0x404   : > { %501 = vadd.xlane.f32.xlu0 %v500_v55 }
 0x406   : > { %v912_v57 = vpop.eup %911 }
 0x407   : > { %v624_v58 = vsel %vm225_vm4, %v912_v57, 0.0 }
 0x408   : > { %625 = vadd.xlane.f32.xlu1 %v624_v58 }
 0x40a   : > { %v914_v59 = vpop.eup %913 }
 0x40b   : > { %v627_v60 = vsel %vm229_vm5, %v914_v59, 0.0 }
 0x40c   : > { %628 = vadd.xlane.f32.xlu0 %v627_v60 }
 0x419   : > { %635 = vrot.lane.b32.xlu1 %v990_v3, %s948_s27 }
 0x422   : > { %508 = vrot.lane.b32.xlu0 %v990_v3, %s949_s28 }
 0x481   : > { %v372_v61 = vpop.xlane.xlu1 %371 }
 0x482   : > { %915 = vrcp.f32 %v372_v61 }
 0x485   : > { %v375_v62 = vpop.xlane.xlu0 %374 }
 0x486   : > { %917 = vrcp.f32 %v375_v62 }
 0x489   : > { %v499_v63 = vpop.xlane.xlu1 %498 }
 0x48a   : > { %919 = vrcp.f32 %v499_v63 }
 0x48d   : > { %v502_v1 = vpop.xlane.xlu0 %501 }
 0x48e   : > { %921 = vrcp.f32 %v502_v1 }
 0x48f   : > { %v916_v2 = vpop.eup %915 }
 0x490   : > { %v377_v6 = vmul.f32 %v916_v2, %v904_v41 }
 0x491   : > { %v626_v4 = vpop.xlane.xlu1 %625 }
 0x492   : > { %923 = vrcp.f32 %v626_v4 }
 0x493   : > { %v918_v5 = vpop.eup %917 }
 0x494   : > { %v379_v7 = vmul.f32 %v918_v5, %v906_v48 }
 0x495   : > { %v629_v8 = vpop.xlane.xlu0 %628  ;;  %v636_v13 = vpop.permute.xlu1 %635 }
 0x496   : > { %925 = vrcp.f32 %v629_v8  ;;  %v380_v9 = vpack.c.bf16 %v379_v7, %v377_v6  ;;  %v641_v17 = vand.u32 %v636_v13, %v1014_v30 }
 0x497   : > { %v920_v3 = vpop.eup %919 }
 0x498   : > { %842 = vmatmul.mubr.msk.bf16.vlgmr.msra.gmra.mxu0 %vm225_vm4, %v380_v9  ;;  %v504_v15 = vmul.f32 %v920_v3, %v908_v51 }
 0x499   : > { %v509_v10 = vpop.permute.xlu0 %508  ;;  %853 = vmatprep.mubr.msk.bf16.mxu0 %vm936_vm0, %v935_v0 }
 0x49a   : > { %v514_v11 = vand.u32 %v509_v10, %v1014_v30 }
 0x49b   : > { %v922_v14 = vpop.eup %921 }
 0x49c   : > { %852 = vmatpush3.bf16.msra.mxu0 %v514_v11  ;;  %v506_v16 = vmul.f32 %v922_v14, %v910_v53 }
 0x49d   : > { %863 = vmatprep.subr.bf16.mxu0 %v935_v0 }
 0x49e   : > { %v507_v18 = vpack.c.bf16 %v506_v16, %v504_v15 }
 0x49f   : > { %v924_v19 = vpop.eup %923 }
 0x4a0   : > { %854 = vmatmul.mubr.msk.bf16.vlgmr.msra.gmra.mxu0 %vm225_vm4, %v507_v18  ;;  %v631_v21 = vmul.f32 %v924_v19, %v912_v57 }
 0x4a1   : > { %864 = vmatpush3.bf16.msra.mxu0 %v641_v17  ;;  %865 = vmatprep.mubr.msk.bf16.mxu0 %vm936_vm0, %v935_v0 }
 0x4a3   : > { %v926_v20 = vpop.eup %925 }
 0x4a4   : > { %v633_v22 = vmul.f32 %v926_v20, %v914_v59 }
 0x4a6   : > { %v634_v23 = vpack.c.bf16 %v633_v22, %v631_v21 }
 0x4a8   : > { %866 = vmatmul.mubr.msk.bf16.vlgmr.msra.gmra.mxu0 %vm225_vm4, %v634_v23 }
 0x558   : > { %v423_v24 = vpop.f32.mrf.mxu0 }
 0x559   : > { %686 = vrot.lane.b32.xlu1 %v423_v24, %s950_s29 }
 0x55a   : > { %v843_v30 = vpop.f32.mrf.mxu0 }
 0x55c   : > { %v426_v25 = vpop.f32.mrf.mxu0 }
 0x55d   : > { %688 = vrot.lane.b32.xlu0 %v426_v25, %s950_s29 }
 0x55e   : > { %v844_v26 = vpop.f32.mrf.mxu0 }
 0x560   : > { %v550_v27 = vpop.f32.mrf.mxu0 }
 0x561   : > { %694 = vrot.lane.b32.xlu1 %v550_v27, %s951_s30 }
 0x562   : > { %v855_v28 = vpop.f32.mrf.mxu0 }
 0x564   : > { %v553_v29 = vpop.f32.mrf.mxu0 }
 0x565   : > { %696 = vrot.lane.b32.xlu0 %v553_v29, %s951_s30 }
 0x566   : > { %v856_v0 = vpop.f32.mrf.mxu0 }
 0x568   : > { %v677_v31 = vpop.f32.mrf.mxu0 }
 0x569   : > { %702 = vrot.lane.b32.xlu1 %v677_v31, %s952_s3 }
 0x56a   : > { %v867_v32 = vpop.f32.mrf.mxu0 }
 0x56c   : > { %v680_v33 = vpop.f32.mrf.mxu0 }
 0x56d   : > { %704 = vrot.lane.b32.xlu0 %v680_v33, %s952_s3 }
 0x56e   : > { %v868_v34 = vpop.f32.mrf.mxu0 }
 0x5cb   : > { %v687_v35 = vpop.permute.xlu1 %686 }
 0x5cc   : > { %v708_v12 = vsel %vm166_vm1, %v1040_v54, %v687_v35 }
 0x5cf   : > { %v689_v36 = vpop.permute.xlu0 %688 }
 0x5d0   : > { %v709_v42 = vsel %vm166_vm1, %v1042_v56, %v689_v36 }
 0x5d3   : > { %v695_v37 = vpop.permute.xlu1 %694 }
 0x5d4   : > { %v711_v38 = vsel %vm710_vm8, %v708_v12, %v695_v37 }
 0x5d7   : > { %v697_v39 = vpop.permute.xlu0 %696 }
 0x5d8   : > { %v712_v43 = vsel %vm710_vm8, %v709_v42, %v697_v39 }
 0x5db   : > { %v703_v40 = vpop.permute.xlu1 %702 }
 0x5dc   : > { %v714_v41 = vsel %vm713_vm9, %v711_v38, %v703_v40 }
 0x5dd   : > { %717 = vst.msk [vmem:[%s157_s6] sm:$0xff] %vm716_vm10, %v714_v41 }
 0x5df   : > { %v705_v44 = vpop.permute.xlu0 %704 }
 0x5e0   : > { %v715_v45 = vsel %vm713_vm9, %v712_v43, %v705_v44 }
 0x5e1   : > { %719 = vst.msk [vmem:[%s157_s6 + $0x8] sm:$0x7f] %vm718_vm11, %v715_v45 }
 0x5e2 PF: > { %s12_s9 = sadd.s32 1, %s933_s9  }
 0x5e3   : > { %p9_p4 = scmp.ge.s32.totalorder %s12_s9, 4  }
 0x5e5   :  { %11 = sbr.rel (!%p9_p4) target bundleno = 1 (0x1), region = 61 }

// kernel: squeezeformer_encoder.32
= control target key start
LH: loop header
LB: loop body
LE: loop exit
PB: predicated region body
PF: predicated region fallthrough
CT: control target
= control target key end

     0   :  { %vm53_vm0 = vcmask 261120   ;;  %s329_s2 = inlined_call_operand.vmem [shape: bf16[32,32], index: 2, kind: input, shape index: {}]   ;;  %s330_s0 = inlined_call_operand.vmem [shape: f32[32,32], index: 0, kind: input, shape index: {}]   ;;  %s331_s3 = inlined_call_operand.vmem [shape: f32[1,32], index: 3, kind: input, shape index: {}]   ;;  %s332_s1 = inlined_call_operand.vmem [shape: f32[32,32], index: 1, kind: input, shape index: {}]   ;;  %s333_s4 = inlined_call_operand.vmem [shape: f32[1,32], index: 4, kind: input, shape index: {}]   ;;  %s334_s5 = inlined_call_operand.vmem [shape: f32[1,32], index: 5, kind: input, shape index: {}]   ;;  %s335_s6 = inlined_call_operand.vmem [shape: f32[32,32], index: 6, kind: output, shape index: {}]  }
   0x1   :  { %v219_v0 = vld [vmem:[%s329_s2 + $0x8] sm:$0xff]   ;;  %v220_v1 = vld [vmem:[%s329_s2] sm:$0xff]   ;;  %v26_v5 = vld [vmem:[%s330_s0 + $0x10] sm:$0xff] }
   0x2   :  { %211 = vmatprep.subr.bf16.mxu0 %v219_v0  ;;  %v24_v2 = vld [vmem:[%s330_s0] sm:$0xff]  ;;  %v25_v3 = vld [vmem:[%s330_s0 + $0x8] sm:$0xff]  ;;  %v27_v6 = vld [vmem:[%s330_s0 + $0x18] sm:$0xff] }
   0x3   :  { %212 = vmatpush3.bf16.msra.mxu0 %v219_v0  ;;  %v28_v4 = vpack.c.bf16 %v25_v3, %v24_v2  ;;  %v29_v7 = vpack.c.bf16 %v27_v6, %v26_v5  ;;  %v200_v8 = vld [vmem:[%s331_s3] ss:$0 sm:$0xff]  ;;  %v111_v10 = vld [vmem:[%s332_s1 + $0x10] sm:$0xff]  ;;  %v112_v17 = vld [vmem:[%s332_s1 + $0x18] sm:$0xff] }
   0x4   :  { %213 = vmatprep.subr.bf16.mxu0 %v220_v1  ;;  %v109_v13 = vld [vmem:[%s332_s1] sm:$0xff]  ;;  %v110_v22 = vld [vmem:[%s332_s1 + $0x8] sm:$0xff] }
   0x5   :  { %215 = vmatprep.mubr.msk.bf16.mxu0 %vm53_vm0, %v28_v4  ;;  %v205_v62 = vld [vmem:[%s333_s4] ss:$0 sm:$0xff] }
   0x6   :  { %v206_v0 = vld [vmem:[%s334_s5] ss:$0 sm:$0xff] }
   0x7   :  { %214 = vmatpush3.bf16.msra.mxu0 %v220_v1 }
   0xa   :  { %216 = vmatmul.mubr.msk.bf16.vlgmr.msra.gmra.mxu0 %vm53_vm0, %v29_v7 }
  0xca   :  { %v217_v9 = vpop.f32.mrf.mxu0 }
  0xcb   :  { %v103_v11 = vadd.f32 %v217_v9, %v200_v8 }
  0xcc   :  { %v94_v12 = vpop.f32.mrf.mxu0 }
  0xcd   :  { %v95_v14 = vadd.f32 %v200_v8, %v94_v12  ;;  %v115_v15 = vadd.f32 %v111_v10, %v103_v11 }
  0xce   :  { %v218_v16 = vpop.f32.mrf.mxu0 }
  0xcf   :  { %v106_v18 = vadd.f32 %v218_v16, %v200_v8  ;;  %v123_v19 = vsel %vm53_vm0, %v115_v15, 0.0  ;;  %v113_v20 = vadd.f32 %v109_v13, %v95_v14 }
  0xd0   :  { %124 = vadd.xlane.f32.xlu1 %v123_v19  ;;  %v97_v21 = vpop.f32.mrf.mxu0 }
  0xd1   :  { %v98_v23 = vadd.f32 %v200_v8, %v97_v21  ;;  %v117_v24 = vsel %vm53_vm0, %v113_v20, 0.0  ;;  %v116_v25 = vadd.f32 %v112_v17, %v106_v18 }
  0xd2   :  { %118 = vadd.xlane.f32.xlu0 %v117_v24 }
  0xd3   :  { %v126_v26 = vsel %vm53_vm0, %v116_v25, 0.0  ;;  %v114_v27 = vadd.f32 %v110_v22, %v98_v23 }
  0xd4   :  { %127 = vadd.xlane.f32.xlu1 %v126_v26 }
  0xd5   :  { %v120_v28 = vsel %vm53_vm0, %v114_v27, 0.0 }
  0xd6   :  { %121 = vadd.xlane.f32.xlu0 %v120_v28 }
 0x159   :  { %v125_v29 = vpop.xlane.xlu1 %124 }
 0x15a   :  { %v132_v30 = vmul.f32 0.03125, %v125_v29 }
 0x15b   :  { %v119_v31 = vpop.xlane.xlu0 %118 }
 0x15c   :  { %v130_v32 = vmul.f32 0.03125, %v119_v31  ;;  %v136_v34 = vsub.f32 %v115_v15, %v132_v30 }
 0x15d   :  { %v128_v33 = vpop.xlane.xlu1 %127 }
 0x15e   :  { %v134_v35 = vsub.f32 %v113_v20, %v130_v32  ;;  %v133_v36 = vmul.f32 0.03125, %v128_v33  ;;  %v140_v43 = vmul.f32 %v136_v34, %v136_v34 }
 0x15f   :  { %v122_v37 = vpop.xlane.xlu0 %121 }
 0x160   :  { %v131_v38 = vmul.f32 0.03125, %v122_v37  ;;  %v138_v39 = vmul.f32 %v134_v35, %v134_v35  ;;  %v137_v40 = vsub.f32 %v116_v25, %v133_v36  ;;  %v148_v45 = vsel %vm53_vm0, %v140_v43, 0.0 }
 0x162   :  { %v135_v41 = vsub.f32 %v114_v27, %v131_v38  ;;  %v142_v42 = vsel %vm53_vm0, %v138_v39, 0.0  ;;  %v141_v47 = vmul.f32 %v137_v40, %v137_v40 }
 0x163   :  { %143 = vadd.xlane.f32.xlu0 %v142_v42 }
 0x164   :  { %v139_v44 = vmul.f32 %v135_v41, %v135_v41  ;;  %v151_v48 = vsel %vm53_vm0, %v141_v47, 0.0 }
 0x166   :  { %v145_v46 = vsel %vm53_vm0, %v139_v44, 0.0 }
 0x167   :  { %149 = vadd.xlane.f32.xlu0 %v148_v45  ;;  %146 = vadd.xlane.f32.xlu1 %v145_v46 }
 0x16b   :  { %152 = vadd.xlane.f32.xlu1 %v151_v48 }
 0x1ec   :  { %v144_v49 = vpop.xlane.xlu0 %143 }
 0x1ed   :  { %v154_v50 = vmul.f32 0.03125, %v144_v49 }
 0x1ef   :  { %v158_v51 = vadd.f32 1e-05, %v154_v50 }
 0x1f0   :  { %v147_v52 = vpop.xlane.xlu1 %146  ;;  %v150_v53 = vpop.xlane.xlu0 %149 }
 0x1f1   :  { %221 = vrsqrt.f32 %v158_v51  ;;  %v155_v54 = vmul.f32 0.03125, %v147_v52  ;;  %v156_v55 = vmul.f32 0.03125, %v150_v53 }
 0x1f3   :  { %v159_v56 = vadd.f32 1e-05, %v155_v54  ;;  %v160_v57 = vadd.f32 1e-05, %v156_v55 }
 0x1f4   :  { %v153_v58 = vpop.xlane.xlu1 %152 }
 0x1f5   :  { %223 = vrsqrt.f32 %v159_v56  ;;  %v157_v59 = vmul.f32 0.03125, %v153_v58 }
 0x1f6   :  { %225 = vrsqrt.f32 %v160_v57 }
 0x1f7   :  { %v161_v60 = vadd.f32 1e-05, %v157_v59 }
 0x1f9   :  { %227 = vrsqrt.f32 %v161_v60 }
 0x1fe   :  { %v222_v61 = vpop.eup %221 }
 0x1ff   :  { %v166_v63 = vmul.f32 %v222_v61, %v134_v35 }
 0x201   :  { %v177_v1 = vmul.f32 %v205_v62, %v166_v63 }
 0x202   :  { %v224_v2 = vpop.eup %223 }
 0x203   :  { %v226_v3 = vpop.eup %225  ;;  %v188_v4 = vadd.f32 %v206_v0, %v177_v1  ;;  %v167_v5 = vmul.f32 %v224_v2, %v135_v41 }
 0x204   :  { %v168_v6 = vmul.f32 %v226_v3, %v136_v34 }
 0x205   :  { %192 = vst.msk [vmem:[%s335_s6] sm:$0xff] %vm53_vm0, %v188_v4  ;;  %v178_v7 = vmul.f32 %v205_v62, %v167_v5 }
 0x206   :  { %v228_v8 = vpop.eup %227  ;;  %v179_v9 = vmul.f32 %v205_v62, %v168_v6 }
 0x207   :  { %v189_v10 = vadd.f32 %v206_v0, %v178_v7  ;;  %v169_v11 = vmul.f32 %v228_v8, %v137_v40 }
 0x208   :  { %v190_v12 = vadd.f32 %v206_v0, %v179_v9 }
 0x209   :  { %193 = vst.msk [vmem:[%s335_s6 + $0x8] sm:$0xff] %vm53_vm0, %v189_v10  ;;  %v180_v13 = vmul.f32 %v205_v62, %v169_v11 }
 0x20a   :  { %194 = vst.msk [vmem:[%s335_s6 + $0x10] sm:$0xff] %vm53_vm0, %v190_v12 }
 0x20b   :  { %v191_v14 = vadd.f32 %v206_v0, %v180_v13 }
 0x20d   :  { %195 = vst.msk [vmem:[%s335_s6 + $0x18] sm:$0xff] %vm53_vm0, %v191_v14 }

// kernel: squeezeformer_encoder.34
= control target key start
LH: loop header
LB: loop body
LE: loop exit
PB: predicated region body
PF: predicated region fallthrough
CT: control target
= control target key end

     0   :  { %s900_s17 = smov 0   ;;  %s980_s0 = inlined_call_operand.vmem [shape: f32[2,15,32], index: 0, kind: input, shape index: {}]   ;;  %s981_s1 = inlined_call_operand.vmem [shape: bf16[32,32], index: 1, kind: input, shape index: {}]   ;;  %s982_s2 = inlined_call_operand.vmem [shape: f32[1,32], index: 2, kind: input, shape index: {}]   ;;  %s983_s3 = inlined_call_operand.vmem [shape: f32[5,32], index: 3, kind: input, shape index: {}]   ;;  %s984_s4 = inlined_call_operand.vmem [shape: f32[1,32], index: 4, kind: input, shape index: {}]   ;;  %s985_s5 = inlined_call_operand.vmem [shape: f32[1,32], index: 5, kind: input, shape index: {}]   ;;  %s986_s6 = inlined_call_operand.vmem [shape: f32[1,32], index: 6, kind: input, shape index: {}]   ;;  %s987_s7 = inlined_call_operand.vmem [shape: bf16[32,32], index: 7, kind: input, shape index: {}]   ;;  %s988_s8 = inlined_call_operand.vmem [shape: f32[1,32], index: 8, kind: input, shape index: {}]   ;;  %s989_s9 = inlined_call_operand.vmem [shape: f32[1,32], index: 9, kind: input, shape index: {}]   ;;  %s990_s10 = inlined_call_operand.vmem [shape: f32[1,32], index: 10, kind: input, shape index: {}]   ;;  %s991_s11 = inlined_call_operand.vmem [shape: f32[2,15,32], index: 11, kind: output, shape index: {}]  }
   0x1 LB: > { %s744_s18 = sadd.s32 4294967295, %s836_s17   ;;  %p748_p0 = scmp.ge.s32.totalorder %s836_s17, 1  ;;  %s836_s17 = sphi %s900_s17, %s21_s17  }
   0x2   : > { %p337_p1 = scmp.lt.s32.totalorder %s836_s17, 3 }
   0x4   : > { %p338_p2 = pnand %p748_p0, %p337_p1 }
   0x5   : > { %p377_p3 = scmp.lt.s32.totalorder (!%p338_p2), %s744_s18, 1 }
   0x6   : > { %341 = sbr.rel (%p338_p2) target bundleno = 824 (0x338), region = 64 }
   0xb   : > { %v806_v0 = vld [vmem:[%s981_s1 + $0x8] sm:$0xff]   ;;  %v838_v1 = vmov 0.0   ;;  %v807_v2 = vld [vmem:[%s981_s1] sm:$0xff]   ;;  %vm839_vm0 = vmmov 0   ;;  %vm414_vm1 = vcmask 261120   ;;  %s993_s18 = smov (!%p377_p3, %s744_s18), 1  ;;  %v483_v21 = vlaneseq }
   0xc   : > { %780 = vmatprep.subr.bf16.mxu0 %v838_v1  ;;  %788 = vmatprep.subr.bf16.mxu1 %v838_v1  ;;  %473 = vst.msk [vmem:[#allocation2] sm:$0xff] %vm414_vm1, %v838_v1  ;;  %474 = vst.msk [vmem:[#allocation2 + $0x8] sm:$0xff] %vm414_vm1, %v838_v1  ;;  %s772_s23 = sshll.u32 %s993_s18, 4  ;;  %vm475_vm2 = vcmask 256000   ;;  %v808_v6 = vld [vmem:[%s987_s7 + $0x8] sm:$0xff]   ;;  %v809_v7 = vld [vmem:[%s987_s7] sm:$0xff]  }
   0xd   : > { %781 = vmatpush3.bf16.msra.mxu0 %v806_v0  ;;  %784 = vmatprep.mubr.msk.bf16.mxu0 %vm839_vm0, %v838_v1  ;;  %s381_s26 = scalar_lea.vmem %s980_s0, %s772_s23  ;;  %476 = vst.msk [vmem:[#allocation2 + $0x10] sm:$0x7] %vm475_vm2, %v838_v1  ;;  %v753_v8 = vld [vmem:[%s982_s2] ss:$0 sm:$0xff]  ;;  %v484_v22 = vshrl.u32 %v483_v21, 7  ;;  %vm478_vm3 = vcmask 260096   ;;  %s386_s14 = scalar_lea.vmem %s991_s11, %s772_s23 }
   0xe   : > { %782 = vmatprep.subr.bf16.mxu0 %v838_v1  ;;  %792 = vmatprep.mubr.msk.bf16.mxu1 %vm839_vm0, %v838_v1  ;;  %v924_v3 = vld [vmem:[%s381_s26] sm:$0xff]  ;;  %v926_v4 = vld [vmem:[%s381_s26 + $0x8] sm:$0x7f] }
   0xf   : > { %v390_v5 = vpack.c.bf16 %v926_v4, %v924_v3  ;;  %789 = vmatpush3.bf16.msra.mxu1 %v808_v6  ;;  %v485_v25 = vsub.s32 0, %v484_v22  ;;  %v495_v26 = vsub.s32 1, %v484_v22  ;;  %v480_v28 = vld [vmem:[%s983_s3] sm:$0x1f]  ;;  %v505_v30 = vsub.s32 2, %v484_v22 }
  0x10   : > { %790 = vmatprep.subr.bf16.mxu1 %v838_v1  ;;  %v515_v33 = vsub.s32 3, %v484_v22  ;;  %v525_v38 = vsub.s32 4, %v484_v22  ;;  %v759_v62 = vld [vmem:[%s984_s4] ss:$0 sm:$0xff] }
  0x11   : > { %783 = vmatpush3.bf16.msra.mxu0 %v807_v2  ;;  %v486_v31 = vrot.slane %v480_v28, %v485_v25  ;;  %v496_v32 = vrot.slane %v480_v28, %v495_v26  ;;  %v506_v34 = vrot.slane %v480_v28, %v505_v30  ;;  %v760_v2 = vld [vmem:[%s985_s5] ss:$0 sm:$0xff] }
  0x12   : > { %v516_v41 = vrot.slane %v480_v28, %v515_v33  ;;  %v526_v47 = vrot.slane %v480_v28, %v525_v38 }
  0x13   : > { %791 = vmatpush3.bf16.msra.mxu1 %v809_v7  ;;  %v761_v7 = vld [vmem:[%s986_s6] ss:$0 sm:$0xff] }
  0x14   : > { %785 = vmatmul.mubr.msk.bf16.vlgmr.msra.gmra.mxu0 %vm414_vm1, %v390_v5 }
  0xd4   : > { %v452_v9 = vpop.f32.mrf.mxu0 }
  0xd5   : > { %v453_v10 = vadd.f32 %v753_v8, %v452_v9 }
  0xd6   : > { %v786_v11 = vpop.f32.mrf.mxu0 }
  0xd7   : > { %v757_v12 = vmul.f32 -1.442695, %v453_v10 }
  0xd8   : > { %v455_v13 = vpop.f32.mrf.mxu0 }
  0xd9   : > { %810 = vpow2.f32 %v757_v12  ;;  %v456_v14 = vadd.f32 %v753_v8, %v455_v13 }
  0xda   : > { %v787_v15 = vpop.f32.mrf.mxu0 }
  0xdb   : > { %v758_v16 = vmul.f32 -1.442695, %v456_v14 }
  0xdd   : > { %812 = vpow2.f32 %v758_v16 }
  0xe6   : > { %v811_v17 = vpop.eup %810 }
  0xe7   : > { %v465_v18 = vadd.f32 1.0, %v811_v17 }
  0xe9   : > { %814 = vrcp.f32 %v465_v18 }
  0xea   : > { %v813_v19 = vpop.eup %812 }
  0xeb   : > { %v466_v20 = vadd.f32 1.0, %v813_v19 }
  0xed   : > { %816 = vrcp.f32 %v466_v20 }
  0xf6   : > { %v815_v23 = vpop.eup %814 }
  0xf7   : > { %v471_v24 = vmul.f32 %v815_v23, %v453_v10 }
  0xf9   : > { %477 = vst.msk [vmem:[#allocation2 + $0x2] sm:$0xff] %vm414_vm1, %v471_v24  ;;  %v764_v24 = vld [vmem:[%s988_s8] ss:$0 sm:$0xff] }
  0xfa   : > { %v817_v27 = vpop.eup %816 }
  0xfb   : > { %v472_v29 = vmul.f32 %v817_v27, %v456_v14 }
  0xfd   : > { %479 = vst.msk [vmem:[#allocation2 + $0xa] sm:$0x7f] %vm478_vm3, %v472_v29 }
 0x100   : > { %v481_v35 = vld [vmem:[#allocation2] sm:$0xff] }
 0x101   : > { %v491_v36 = vld [vmem:[#allocation2 + $0x1] sm:$0xff]  ;;  %v487_v39 = vmul.f32 %v486_v31, %v481_v35 }
 0x102   : > { %v501_v37 = vld [vmem:[#allocation2 + $0x2] sm:$0xff]  ;;  %v497_v40 = vmul.f32 %v496_v32, %v491_v36 }
 0x103   : > { %v507_v43 = vmul.f32 %v506_v34, %v501_v37 }
 0x104   : > { %v499_v42 = vadd.f32 %v497_v40, %v487_v39  ;;  %v482_v44 = vld [vmem:[#allocation2 + $0x8] sm:$0x7f] }
 0x105   : > { %v492_v45 = vld [vmem:[#allocation2 + $0x9] sm:$0x7f]  ;;  %v488_v48 = vmul.f32 %v486_v31, %v482_v44 }
 0x106   : > { %v502_v46 = vld [vmem:[#allocation2 + $0xa] sm:$0x7f]  ;;  %v498_v49 = vmul.f32 %v496_v32, %v492_v45  ;;  %v509_v50 = vadd.f32 %v507_v43, %v499_v42 }
 0x107   : > { %v511_v51 = vld [vmem:[#allocation2 + $0x3] sm:$0xff]  ;;  %v512_v53 = vld [vmem:[#allocation2 + $0xb] sm:$0x7f]  ;;  %v508_v56 = vmul.f32 %v506_v34, %v502_v46 }
 0x108   : > { %v521_v52 = vld [vmem:[#allocation2 + $0x4] sm:$0xff]  ;;  %v517_v54 = vmul.f32 %v516_v41, %v511_v51  ;;  %v500_v55 = vadd.f32 %v498_v49, %v488_v48  ;;  %v522_v58 = vld [vmem:[#allocation2 + $0xc] sm:$0x7f]  ;;  %v518_v61 = vmul.f32 %v516_v41, %v512_v53 }
 0x109   : > { %v527_v59 = vmul.f32 %v526_v47, %v521_v52  ;;  %v528_v1 = vmul.f32 %v526_v47, %v522_v58  ;;  %v769_v52 = vld [vmem:[%s990_s10] ss:$0 sm:$0xff] }
 0x10a   : > { %v519_v57 = vadd.f32 %v517_v54, %v509_v50  ;;  %v510_v60 = vadd.f32 %v508_v56, %v500_v55  ;;  %v768_v50 = vld [vmem:[%s989_s9] ss:$0 sm:$0xff] }
 0x10c   : > { %v529_v63 = vadd.f32 %v527_v59, %v519_v57  ;;  %v520_v0 = vadd.f32 %v518_v61, %v510_v60 }
 0x10e   : > { %v538_v5 = vadd.f32 %v759_v62, %v529_v63  ;;  %v530_v6 = vadd.f32 %v528_v1, %v520_v0 }
 0x110   : > { %v547_v8 = vmul.f32 %v760_v2, %v538_v5  ;;  %v539_v9 = vadd.f32 %v759_v62, %v530_v6 }
 0x112   : > { %v556_v10 = vadd.f32 %v761_v7, %v547_v8  ;;  %v548_v11 = vmul.f32 %v760_v2, %v539_v9 }
 0x114   : > { %v762_v12 = vmul.f32 -1.442695, %v556_v10  ;;  %v557_v13 = vadd.f32 %v761_v7, %v548_v11 }
 0x116   : > { %818 = vpow2.f32 %v762_v12  ;;  %v763_v14 = vmul.f32 -1.442695, %v557_v13 }
 0x118   : > { %820 = vpow2.f32 %v763_v14 }
 0x123   : > { %v819_v15 = vpop.eup %818 }
 0x124   : > { %v564_v16 = vadd.f32 1.0, %v819_v15 }
 0x125   : > { %v821_v17 = vpop.eup %820 }
 0x126   : > { %v565_v18 = vadd.f32 1.0, %v821_v17  ;;  %822 = vrcp.f32 %v564_v16 }
 0x128   : > { %824 = vrcp.f32 %v565_v18 }
 0x133   : > { %v823_v19 = vpop.eup %822 }
 0x134   : > { %v570_v21 = vmul.f32 %v823_v19, %v556_v10 }
 0x135   : > { %v825_v20 = vpop.eup %824 }
 0x136   : > { %v571_v22 = vmul.f32 %v825_v20, %v557_v13 }
 0x138   : > { %v572_v23 = vpack.c.bf16 %v571_v22, %v570_v21 }
 0x13a   : > { %793 = vmatmul.mubr.msk.bf16.vlgmr.msra.gmra.mxu1 %vm414_vm1, %v572_v23 }
 0x1fa   : > { %v633_v25 = vpop.f32.mrf.mxu1 }
 0x1fb   : > { %v634_v26 = vadd.f32 %v764_v24, %v633_v25 }
 0x1fc   : > { %v794_v27 = vpop.f32.mrf.mxu1 }
 0x1fd   : > { %v640_v28 = vadd.f32 %v634_v26, %v924_v3 }
 0x1fe   : > { %v636_v29 = vpop.f32.mrf.mxu1 }
 0x1ff   : > { %v637_v30 = vadd.f32 %v764_v24, %v636_v29  ;;  %v642_v31 = vsel %vm414_vm1, %v640_v28, 0.0 }
 0x200   : > { %643 = vadd.xlane.f32.xlu0 %v642_v31  ;;  %v795_v32 = vpop.f32.mrf.mxu1 }
 0x201   : > { %v641_v33 = vadd.f32 %v637_v30, %v926_v4 }
 0x203   : > { %v645_v34 = vsel %vm478_vm3, %v641_v33, 0.0 }
 0x204   : > { %646 = vadd.xlane.f32.xlu0 %v645_v34 }
 0x289   : > { %v644_v35 = vpop.xlane.xlu0 %643 }
 0x28a   : > { %v649_v36 = vmul.f32 0.03125, %v644_v35 }
 0x28c   : > { %v651_v37 = vsub.f32 %v640_v28, %v649_v36 }
 0x28d   : > { %v647_v38 = vpop.xlane.xlu0 %646 }
 0x28e   : > { %v650_v39 = vmul.f32 0.03125, %v647_v38  ;;  %v653_v40 = vmul.f32 %v651_v37, %v651_v37 }
 0x290   : > { %v652_v41 = vsub.f32 %v641_v33, %v650_v39  ;;  %v655_v3 = vsel %vm414_vm1, %v653_v40, 0.0 }
 0x291   : > { %656 = vadd.xlane.f32.xlu1 %v655_v3 }
 0x292   : > { %v654_v42 = vmul.f32 %v652_v41, %v652_v41 }
 0x294   : > { %v658_v43 = vsel %vm478_vm3, %v654_v42, 0.0 }
 0x295   : > { %659 = vadd.xlane.f32.xlu1 %v658_v43 }
 0x31a   : > { %v657_v44 = vpop.xlane.xlu1 %656 }
 0x31b   : > { %v661_v4 = vmul.f32 0.03125, %v657_v44 }
 0x31d   : > { %v663_v45 = vadd.f32 1e-05, %v661_v4 }
 0x31e   : > { %v660_v46 = vpop.xlane.xlu1 %659 }
 0x31f   : > { %826 = vrsqrt.f32 %v663_v45  ;;  %v662_v47 = vmul.f32 0.03125, %v660_v46 }
 0x321   : > { %v664_v48 = vadd.f32 1e-05, %v662_v47 }
 0x323   : > { %828 = vrsqrt.f32 %v664_v48 }
 0x32c   : > { %v827_v49 = vpop.eup %826 }
 0x32d   : > { %v667_v51 = vmul.f32 %v827_v49, %v651_v37 }
 0x32f   : > { %v676_v53 = vmul.f32 %v768_v50, %v667_v51 }
 0x330   : > { %v829_v54 = vpop.eup %828 }
 0x331   : > { %v685_v55 = vadd.f32 %v769_v52, %v676_v53  ;;  %v668_v56 = vmul.f32 %v829_v54, %v652_v41 }
 0x333   : > { %687 = vst.msk [vmem:[%s386_s14] sm:$0xff] %vm414_vm1, %v685_v55  ;;  %v677_v57 = vmul.f32 %v768_v50, %v668_v56 }
 0x335   : > { %v686_v58 = vadd.f32 %v769_v52, %v677_v57 }
 0x337   : > { %688 = vst.msk [vmem:[%s386_s14 + $0x8] sm:$0x7f] %vm478_vm3, %v686_v58 }
 0x338 PF: > { %s21_s17 = sadd.s32 1, %s836_s17  }
 0x339   : > { %p18_p4 = scmp.ge.s32.totalorder %s21_s17, 4  }
 0x33b   :  { %20 = sbr.rel (!%p18_p4) target bundleno = 1 (0x1), region = 94 }

// kernel: squeezeformer_encoder.33
= control target key start
LH: loop header
LB: loop body
LE: loop exit
PB: predicated region body
PF: predicated region fallthrough
CT: control target
= control target key end

     0   :  { %vm56_vm0 = vcmask 261120   ;;  %vm181_vm1 = vcmask 523264   ;;  %s526_s1 = inlined_call_operand.vmem [shape: bf16[32,64], index: 1, kind: input, shape index: {}]   ;;  %s527_s0 = inlined_call_operand.vmem [shape: f32[32,32], index: 0, kind: input, shape index: {}]   ;;  %s528_s3 = inlined_call_operand.vmem [shape: bf16[64,32], index: 3, kind: input, shape index: {}]   ;;  %s529_s2 = inlined_call_operand.vmem [shape: f32[1,64], index: 2, kind: input, shape index: {}]   ;;  %s530_s4 = inlined_call_operand.vmem [shape: f32[1,32], index: 4, kind: input, shape index: {}]   ;;  %s531_s5 = inlined_call_operand.vmem [shape: f32[1,32], index: 5, kind: input, shape index: {}]   ;;  %s532_s6 = inlined_call_operand.vmem [shape: f32[1,32], index: 6, kind: input, shape index: {}]   ;;  %s533_s7 = inlined_call_operand.vmem [shape: f32[32,32], index: 7, kind: output, shape index: {}]  }
   0x1   :  { %v372_v0 = vld [vmem:[%s526_s1 + $0x8] sm:$0xff]   ;;  %v373_v1 = vld [vmem:[%s526_s1] sm:$0xff]   ;;  %v463_v5 = vld [vmem:[%s527_s0 + $0x10] sm:$0xff] }
   0x2   :  { %352 = vmatprep.subr.bf16.mxu0 %v372_v0  ;;  %v451_v2 = vld [vmem:[%s527_s0] sm:$0xff]  ;;  %v456_v3 = vld [vmem:[%s527_s0 + $0x8] sm:$0xff]  ;;  %v468_v6 = vld [vmem:[%s527_s0 + $0x18] sm:$0xff] }
   0x3   :  { %353 = vmatpush3.bf16.msra.mxu0 %v372_v0  ;;  %v31_v4 = vpack.c.bf16 %v456_v3, %v451_v2  ;;  %v32_v7 = vpack.c.bf16 %v468_v6, %v463_v5  ;;  %v374_v8 = vld [vmem:[%s528_s3 + $0x18] sm:$0xff]   ;;  %v375_v9 = vld [vmem:[%s528_s3 + $0x10] sm:$0xff]   ;;  %v376_v10 = vld [vmem:[%s528_s3 + $0x8] sm:$0xff]  }
   0x4   :  { %354 = vmatprep.subr.bf16.mxu0 %v373_v1  ;;  %360 = vmatprep.subr.bf16.mxu1 %v374_v8  ;;  %v377_v11 = vld [vmem:[%s528_s3] sm:$0xff]  }
   0x5   :  { %356 = vmatprep.mubr.msk.bf16.mxu0 %vm56_vm0, %v31_v4  ;;  %361 = vmatpush3.bf16.msra.mxu1 %v374_v8  ;;  %v324_v12 = vld [vmem:[%s529_s2] ss:$0 sm:$0xff] }
   0x6   :  { %362 = vmatprep.subr.bf16.mxu1 %v375_v9  ;;  %v333_v43 = vld [vmem:[%s530_s4] ss:$0 sm:$0xff] }
   0x7   :  { %355 = vmatpush3.bf16.msra.mxu0 %v373_v1 }
   0x9   :  { %363 = vmatpush3.bf16.msra.mxu1 %v375_v9 }
   0xa   :  { %357 = vmatmul.mubr.msk.bf16.vlgmr.msra.gmra.mxu0 %vm56_vm0, %v32_v7  ;;  %364 = vmatprep.subr.bf16.mxu1 %v376_v10 }
   0xd   :  { %365 = vmatpush3.bf16.msra.mxu1 %v376_v10 }
   0xe   :  { %366 = vmatprep.subr.bf16.mxu1 %v377_v11 }
  0x11   :  { %367 = vmatpush3.bf16.msra.mxu1 %v377_v11 }
  0xca   :  { %v358_v13 = vpop.f32.mrf.mxu0 }
  0xcb   :  { %v106_v14 = vadd.f32 %v358_v13, %v324_v12 }
  0xcc   :  { %v97_v15 = vpop.f32.mrf.mxu0 }
  0xcd   :  { %v331_v16 = vmul.f32 -1.442695, %v106_v14  ;;  %v98_v17 = vadd.f32 %v324_v12, %v97_v15 }
  0xce   :  { %v359_v18 = vpop.f32.mrf.mxu0 }
  0xcf   :  { %v329_v19 = vmul.f32 -1.442695, %v98_v17  ;;  %v109_v20 = vadd.f32 %v359_v18, %v324_v12  ;;  %378 = vpow2.f32 %v331_v16 }
  0xd0   :  { %v100_v21 = vpop.f32.mrf.mxu0 }
  0xd1   :  { %380 = vpow2.f32 %v329_v19  ;;  %v332_v22 = vmul.f32 -1.442695, %v109_v20  ;;  %v101_v23 = vadd.f32 %v324_v12, %v100_v21 }
  0xd3   :  { %382 = vpow2.f32 %v332_v22  ;;  %v330_v24 = vmul.f32 -1.442695, %v101_v23 }
  0xd5   :  { %384 = vpow2.f32 %v330_v24 }
  0xdc   :  { %v379_v25 = vpop.eup %378 }
  0xdd   :  { %v126_v29 = vadd.f32 1.0, %v379_v25 }
  0xde   :  { %v381_v26 = vpop.eup %380 }
  0xdf   :  { %v124_v27 = vadd.f32 1.0, %v381_v26 }
  0xe0   :  { %v383_v28 = vpop.eup %382 }
  0xe1   :  { %v127_v30 = vadd.f32 1.0, %v383_v28  ;;  %386 = vrcp.f32 %v124_v27 }
  0xe2   :  { %v385_v31 = vpop.eup %384 }
  0xe3   :  { %388 = vrcp.f32 %v127_v30  ;;  %v125_v32 = vadd.f32 1.0, %v385_v31  ;;  %v341_v31 = vld [vmem:[%s532_s6] ss:$0 sm:$0xff] }
  0xe4   :  { %390 = vrcp.f32 %v126_v29  ;;  %v340_v29 = vld [vmem:[%s531_s5] ss:$0 sm:$0xff] }
  0xe5   :  { %392 = vrcp.f32 %v125_v32 }
  0xee   :  { %v387_v33 = vpop.eup %386 }
  0xef   :  { %v136_v38 = vmul.f32 %v387_v33, %v98_v17 }
  0xf0   :  { %v389_v34 = vpop.eup %388 }
  0xf1   :  { %v391_v35 = vpop.eup %390  ;;  %v139_v37 = vmul.f32 %v389_v34, %v109_v20 }
  0xf2   :  { %v393_v36 = vpop.eup %392  ;;  %v138_v40 = vmul.f32 %v391_v35, %v106_v14 }
  0xf3   :  { %v137_v39 = vmul.f32 %v393_v36, %v101_v23 }
  0xf4   :  { %v141_v42 = vpack.c.bf16 %v139_v37, %v138_v40 }
  0xf5   :  { %v140_v41 = vpack.c.bf16 %v137_v39, %v136_v38 }
  0xf7   :  { %368 = vmatprep.mubr.msk.bf16.mxu1 %vm181_vm1, %v140_v41 }
  0xf8   :  { %369 = vmatmul.mubr.msk.bf16.vlgmr.msra.gmra.mxu1 %vm181_vm1, %v141_v42 }
 0x1b8   :  { %v370_v44 = vpop.f32.mrf.mxu1 }
 0x1b9   :  { %v231_v45 = vadd.f32 %v370_v44, %v333_v43 }
 0x1ba   :  { %v222_v46 = vpop.f32.mrf.mxu1 }
 0x1bb   :  { %v223_v47 = vadd.f32 %v333_v43, %v222_v46  ;;  %v239_v48 = vadd.f32 %v231_v45, %v463_v5 }
 0x1bc   :  { %v371_v49 = vpop.f32.mrf.mxu1 }
 0x1bd   :  { %v234_v50 = vadd.f32 %v371_v49, %v333_v43  ;;  %v247_v51 = vsel %vm56_vm0, %v239_v48, 0.0  ;;  %v237_v52 = vadd.f32 %v223_v47, %v451_v2 }
 0x1be   :  { %248 = vadd.xlane.f32.xlu1 %v247_v51  ;;  %v225_v53 = vpop.f32.mrf.mxu1 }
 0x1bf   :  { %v226_v54 = vadd.f32 %v333_v43, %v225_v53  ;;  %v241_v55 = vsel %vm56_vm0, %v237_v52, 0.0  ;;  %v240_v56 = vadd.f32 %v234_v50, %v468_v6 }
 0x1c0   :  { %242 = vadd.xlane.f32.xlu0 %v241_v55 }
 0x1c1   :  { %v250_v57 = vsel %vm56_vm0, %v240_v56, 0.0  ;;  %v238_v58 = vadd.f32 %v226_v54, %v456_v3 }
 0x1c2   :  { %251 = vadd.xlane.f32.xlu1 %v250_v57 }
 0x1c3   :  { %v244_v59 = vsel %vm56_vm0, %v238_v58, 0.0 }
 0x1c4   :  { %245 = vadd.xlane.f32.xlu0 %v244_v59 }
 0x247   :  { %v249_v60 = vpop.xlane.xlu1 %248 }
 0x248   :  { %v256_v61 = vmul.f32 0.03125, %v249_v60 }
 0x249   :  { %v243_v62 = vpop.xlane.xlu0 %242 }
 0x24a   :  { %v254_v63 = vmul.f32 0.03125, %v243_v62  ;;  %v260_v1 = vsub.f32 %v239_v48, %v256_v61 }
 0x24b   :  { %v252_v0 = vpop.xlane.xlu1 %251 }
 0x24c   :  { %v258_v2 = vsub.f32 %v237_v52, %v254_v63  ;;  %v257_v4 = vmul.f32 0.03125, %v252_v0  ;;  %v264_v3 = vmul.f32 %v260_v1, %v260_v1 }
 0x24d   :  { %v246_v5 = vpop.xlane.xlu0 %245 }
 0x24e   :  { %v255_v7 = vmul.f32 0.03125, %v246_v5  ;;  %v262_v6 = vmul.f32 %v258_v2, %v258_v2  ;;  %v261_v8 = vsub.f32 %v240_v56, %v257_v4  ;;  %v272_v12 = vsel %vm56_vm0, %v264_v3, 0.0 }
 0x250   :  { %v259_v9 = vsub.f32 %v238_v58, %v255_v7  ;;  %v266_v10 = vsel %vm56_vm0, %v262_v6, 0.0  ;;  %v265_v14 = vmul.f32 %v261_v8, %v261_v8 }
 0x251   :  { %267 = vadd.xlane.f32.xlu0 %v266_v10 }
 0x252   :  { %v263_v11 = vmul.f32 %v259_v9, %v259_v9  ;;  %v275_v15 = vsel %vm56_vm0, %v265_v14, 0.0 }
 0x254   :  { %v269_v13 = vsel %vm56_vm0, %v263_v11, 0.0 }
 0x255   :  { %273 = vadd.xlane.f32.xlu0 %v272_v12  ;;  %270 = vadd.xlane.f32.xlu1 %v269_v13 }
 0x259   :  { %276 = vadd.xlane.f32.xlu1 %v275_v15 }
 0x2da   :  { %v268_v16 = vpop.xlane.xlu0 %267 }
 0x2db   :  { %v278_v17 = vmul.f32 0.03125, %v268_v16 }
 0x2dd   :  { %v282_v18 = vadd.f32 1e-05, %v278_v17 }
 0x2de   :  { %v271_v19 = vpop.xlane.xlu1 %270  ;;  %v274_v20 = vpop.xlane.xlu0 %273 }
 0x2df   :  { %394 = vrsqrt.f32 %v282_v18  ;;  %v279_v21 = vmul.f32 0.03125, %v271_v19  ;;  %v280_v22 = vmul.f32 0.03125, %v274_v20 }
 0x2e1   :  { %v283_v23 = vadd.f32 1e-05, %v279_v21  ;;  %v284_v24 = vadd.f32 1e-05, %v280_v22 }
 0x2e2   :  { %v277_v25 = vpop.xlane.xlu1 %276 }
 0x2e3   :  { %396 = vrsqrt.f32 %v283_v23  ;;  %v281_v26 = vmul.f32 0.03125, %v277_v25 }
 0x2e4   :  { %398 = vrsqrt.f32 %v284_v24 }
 0x2e5   :  { %v285_v27 = vadd.f32 1e-05, %v281_v26 }
 0x2e7   :  { %400 = vrsqrt.f32 %v285_v27 }
 0x2ec   :  { %v395_v28 = vpop.eup %394 }
 0x2ed   :  { %v290_v30 = vmul.f32 %v395_v28, %v258_v2 }
 0x2ef   :  { %v301_v32 = vmul.f32 %v340_v29, %v290_v30 }
 0x2f0   :  { %v397_v33 = vpop.eup %396 }
 0x2f1   :  { %v399_v34 = vpop.eup %398  ;;  %v312_v35 = vadd.f32 %v341_v31, %v301_v32  ;;  %v291_v36 = vmul.f32 %v397_v33, %v259_v9 }
 0x2f2   :  { %v292_v37 = vmul.f32 %v399_v34, %v260_v1 }
 0x2f3   :  { %316 = vst.msk [vmem:[%s533_s7] sm:$0xff] %vm56_vm0, %v312_v35  ;;  %v302_v38 = vmul.f32 %v340_v29, %v291_v36 }
 0x2f4   :  { %v401_v39 = vpop.eup %400  ;;  %v303_v40 = vmul.f32 %v340_v29, %v292_v37 }
 0x2f5   :  { %v313_v41 = vadd.f32 %v341_v31, %v302_v38  ;;  %v293_v42 = vmul.f32 %v401_v39, %v261_v8 }
 0x2f6   :  { %v314_v43 = vadd.f32 %v341_v31, %v303_v40 }
 0x2f7   :  { %317 = vst.msk [vmem:[%s533_s7 + $0x8] sm:$0xff] %vm56_vm0, %v313_v41  ;;  %v304_v44 = vmul.f32 %v340_v29, %v293_v42 }
 0x2f8   :  { %318 = vst.msk [vmem:[%s533_s7 + $0x10] sm:$0xff] %vm56_vm0, %v314_v43 }
 0x2f9   :  { %v315_v45 = vadd.f32 %v341_v31, %v304_v44 }
 0x2fb   :  { %319 = vst.msk [vmem:[%s533_s7 + $0x18] sm:$0xff] %vm56_vm0, %v315_v45 }

// kernel: squeezeformer_encoder.36
= control target key start
LH: loop header
LB: loop body
LE: loop exit
PB: predicated region body
PF: predicated region fallthrough
CT: control target
= control target key end

     0   :  { %s383_s12 = smov 0   ;;  %s385_s13 = smov 0   ;;  %s443_s0 = inlined_call_operand.vmem [shape: f32[3,2,7,32], index: 0, kind: input, shape index: {}]   ;;  %s444_s1 = inlined_call_operand.vmem [shape: f32[3,32], index: 1, kind: input, shape index: {}]   ;;  %s445_s2 = inlined_call_operand.vmem [shape: f32[1,32], index: 2, kind: input, shape index: {}]   ;;  %s446_s3 = inlined_call_operand.vmem [shape: f32[2,7,32], index: 3, kind: output, shape index: {}]  }
   0x1   :  { %s387_s14 = smov 0  }
   0x2 LB: > { %s303_s15 = sadd.s32 4294967295, %s361_s14   ;;  %s400_s16 = sadd.s32 1, %s361_s14   ;;  %s361_s14 = sphi %s387_s14, %s449_s14   ;;  %s357_s13 = sphi %s385_s13, %s448_s13   ;;  %s353_s12 = sphi %s383_s12, %s447_s12  }
   0x3   : > { %s17_s17 = ssub.s32 %s361_s14, %s400_s16  ;;  %s20_s18 = sadd.s32 1, %s357_s13 }
   0x4   : > { %p18_p0 = scmp.eq.s32.totalorder %s17_s17, 0  ;;  %p27_p1 = scmp.ne.s32.totalorder %s357_s13, %s353_s12 }
   0x5   : > { %p28_p2 = scmp.eq.s32.totalorder %s361_s14, 0  ;;  %p306_p4 = scmp.ge.s32.totalorder %s361_s14, 2 }
   0x6   : > { %s409_s19 = scalar_select %p18_p0, %s357_s13, %s20_s18  }
   0x7   : > { %p29_p3 = por %p28_p2, %p27_p1  ;;  %127 = sbr.rel (%p306_p4) target bundleno = 18 (0x12), region = 24 }
   0xc   : > { %130 = sbr.rel (!%p29_p3) target bundleno = 18 (0x12), region = 28  ;;  %s132_s20 = sand.u32 (%p29_p3), 1, %s357_s13  }
   0xd   : > { %s307_s21 = sshll.u32 (%p29_p3), %s361_s14, 3  ;;  %s313_s22 = smul.u32 (%p29_p3), 24, %s132_s20 }
   0xe   : > { %s136_s25 = scalar_lea.vmem (%p29_p3), %s443_s0, %s307_s21 }
   0xf   : > { %v169_v0 = vld [vmem:[%s136_s25] sm:$0xff] (%p29_p3)  ;;  %v171_v1 = vld [vmem:[%s136_s25 + $0x10] sm:$0xff] (%p29_p3)  ;;  %s134_s26 = scalar_lea.vmem (%p29_p3), [#allocation2], %s313_s22 }
  0x10   : > { %v173_v2 = vld [vmem:[%s136_s25 + $0x20] sm:$0xff] (%p29_p3)  ;;  %170 = vst [vmem:[%s134_s26] sm:$0xff] (%p29_p3), %v169_v0  ;;  %172 = vst [vmem:[%s134_s26 + $0x8] sm:$0xff] (%p29_p3), %v171_v1 }
  0x11   : > { %174 = vst [vmem:[%s134_s26 + $0x10] sm:$0xff] %v173_v2 }
  0x12 PF: > { %p308_p5 = scmp.ge.s32.totalorder %s361_s14, 1  ;;  %p179_p6 = scmp.lt.s32.totalorder %s361_s14, 3 }
  0x14   : > { %p180_p7 = pnand %p308_p5, %p179_p6 }
  0x15   : > { %s186_s27 = sand.u32 (!%p180_p7), 1, %s353_s12   ;;  %p208_p8 = scmp.lt.s32.totalorder (!%p180_p7), %s303_s15, 1 }
  0x16   : > { %183 = sbr.rel (%p180_p7) target bundleno = 44 (0x2c), region = 66 }
  0x17   : > { %s314_s28 = smul.u32 (!%p180_p7), 24, %s186_s27 }
  0x19   : > { %s188_s4 = scalar_lea.vmem (!%p180_p7), [#allocation2], %s314_s28 }
  0x1b   : > { %v216_v3 = vlaneseq  ;;  %v215_v5 = vld [vmem:[%s444_s1] sm:$0x7]  ;;  %v214_v11 = vld [vmem:[%s188_s4 + $0x10] sm:$0x7f]  ;;  %s451_s15 = smov (!%p208_p8, %s303_s15), 1  ;;  %vm242_vm0 = vcmask 260096  }
  0x1c   : > { %v212_v7 = vld [vmem:[%s188_s4] sm:$0x7f]  ;;  %v213_v10 = vld [vmem:[%s188_s4 + $0x8] sm:$0x7f]  ;;  %s309_s5 = sshll.u32 %s451_s15, 3 }
  0x1d   : > { %v217_v4 = vshrl.u32 %v216_v3, 7  ;;  %v310_v19 = vld [vmem:[%s445_s2] ss:$0 sm:$0xff]  ;;  %s211_s10 = scalar_lea.vmem %s446_s3, %s309_s5 }
  0x1f   : > { %v218_v6 = vsub.s32 0, %v217_v4  ;;  %v224_v8 = vsub.s32 1, %v217_v4  ;;  %v230_v9 = vsub.s32 2, %v217_v4 }
  0x21   : > { %v219_v12 = vrot.slane %v215_v5, %v218_v6  ;;  %v225_v13 = vrot.slane %v215_v5, %v224_v8  ;;  %v231_v14 = vrot.slane %v215_v5, %v230_v9 }
  0x23   : > { %v220_v15 = vmul.f32 %v219_v12, %v212_v7  ;;  %v226_v16 = vmul.f32 %v225_v13, %v213_v10  ;;  %v232_v17 = vmul.f32 %v231_v14, %v214_v11 }
  0x25   : > { %v227_v18 = vadd.f32 %v226_v16, %v220_v15 }
  0x27   : > { %v233_v20 = vadd.f32 %v232_v17, %v227_v18 }
  0x29   : > { %v241_v21 = vadd.f32 %v310_v19, %v233_v20 }
  0x2b   : > { %243 = vst.msk [vmem:[%s211_s10] sm:$0x7f] %vm242_vm0, %v241_v21 }
  0x2c PF: > { %p10_p9 = scmp.ge.s32.totalorder %s400_s16, 4   ;;  %s447_s12 = smov %s357_s13 }
  0x2d   : > { %s448_s13 = smov %s409_s19  ;;  %s449_s14 = smov %s400_s16 }
  0x2e   :  { %12 = sbr.rel (!%p10_p9) target bundleno = 2 (0x2), region = 105 }

// kernel: squeezeformer_encoder.37
= control target key start
LH: loop header
LB: loop body
LE: loop exit
PB: predicated region body
PF: predicated region fallthrough
CT: control target
= control target key end

     0   :  { %v112_v0 = vmov 0.0   ;;  %vm113_vm0 = vmmov 0   ;;  %vm41_vm1 = vcmask 261120   ;;  %vm86_vm2 = vcmask 785408   ;;  %s155_s1 = inlined_call_operand.vmem [shape: bf16[32,96], index: 1, kind: input, shape index: {}]   ;;  %s156_s0 = inlined_call_operand.vmem [shape: f32[16,32], index: 0, kind: input, shape index: {}]   ;;  %s157_s2 = inlined_call_operand.vmem [shape: f32[1,96], index: 2, kind: input, shape index: {}]   ;;  %s158_s3 = inlined_call_operand.vmem [shape: f32[16,96], index: 3, kind: output, shape index: {}]  }
   0x1   :  { %100 = vmatprep.subr.bf16.mxu0 %v112_v0  ;;  %v110_v1 = vld [vmem:[%s155_s1 + $0x8] sm:$0xff]   ;;  %104 = vmatprep.mubr.msk.bf16.mxu0 %vm113_vm0, %v112_v0  ;;  %v111_v2 = vld [vmem:[%s155_s1] sm:$0xff]  }
   0x2   :  { %101 = vmatpush3.bf16.msra.mxu0 %v110_v1  ;;  %v15_v3 = vld [vmem:[%s156_s0] sm:$0xff]  ;;  %v16_v4 = vld [vmem:[%s156_s0 + $0x8] sm:$0xff] }
   0x3   :  { %102 = vmatprep.subr.bf16.mxu0 %v112_v0  ;;  %v17_v5 = vpack.c.bf16 %v16_v4, %v15_v3  ;;  %v93_v6 = vld [vmem:[%s157_s2] ss:$0 sm:$0xff] }
   0x6   :  { %103 = vmatpush3.bf16.msra.mxu0 %v111_v2 }
   0x9   :  { %105 = vmatmul.mubr.msk.bf16.vlgmr.msra.gmra.mxu0 %vm41_vm1, %v17_v5 }
  0xc9   :  { %v79_v7 = vpop.f32.mrf.mxu0 }
  0xca   :  { %v80_v8 = vadd.f32 %v93_v6, %v79_v7 }
  0xcb   :  { %v106_v9 = vpop.f32.mrf.mxu0 }
  0xcc   :  { %87 = vst.msk [vmem:[%s158_s3] sm:$0xff] %vm86_vm2, %v80_v8 }
  0xcd   :  { %v82_v10 = vpop.f32.mrf.mxu0 }
  0xce   :  { %v83_v11 = vadd.f32 %v93_v6, %v82_v10 }
  0xcf   :  { %v107_v12 = vpop.f32.mrf.mxu0 }
  0xd0   :  { %88 = vst.msk [vmem:[%s158_s3 + $0x8] sm:$0xff] %vm86_vm2, %v83_v11 }

// kernel: squeezeformer_encoder.38
= control target key start
LH: loop header
LB: loop body
LE: loop exit
PB: predicated region body
PF: predicated region fallthrough
CT: control target
= control target key end

     0   :  { %s863_s9 = smov 0   ;;  %s970_s0 = inlined_call_operand.vmem [shape: f32[2,7,96], index: 0, kind: input, shape index: {}]   ;;  %s971_s1 = inlined_call_operand.vmem [shape: f32[2,1,7], index: 1, kind: input, shape index: {}]   ;;  %s972_s2 = inlined_call_operand.vmem [shape: f32[2,7,32], index: 2, kind: output, shape index: {}]  }
   0x1 LB: > { %s699_s10 = sadd.s32 4294967295, %s828_s9   ;;  %p703_p0 = scmp.ge.s32.totalorder %s828_s9, 1  ;;  %s828_s9 = sphi %s863_s9, %s12_s9  }
   0x2   : > { %p119_p1 = scmp.lt.s32.totalorder %s828_s9, 3 }
   0x4   : > { %p120_p2 = pnand %p703_p0, %p119_p1 }
   0x5   : > { %p142_p3 = scmp.lt.s32.totalorder (!%p120_p2), %s699_s10, 1  ;;  %s832_s15 = smov (!%p120_p2), 96  }
   0x6   : > { %123 = sbr.rel (%p120_p2) target bundleno = 1539 (0x603), region = 28  ;;  %s833_s16 = smov (!%p120_p2), 64  }
   0x7   : > { %s834_s17 = smov (!%p120_p2), 88   ;;  %s836_s21 = smov (!%p120_p2), 72  }
   0x8   : > { %s838_s22 = smov (!%p120_p2), 120   ;;  %s839_s23 = smov (!%p120_p2), 80  }
   0x9   : > { %s840_s24 = smov (!%p120_p2), 112   ;;  %s841_s25 = smov (!%p120_p2), 104  }
   0xa   : > { %s842_s26 = smov (!%p120_p2), 56   ;;  %s843_s27 = smov (!%p120_p2), 48  }
   0xb   : > { %v830_v0 = vmov 0.0   ;;  %vm831_vm0 = vmmov 0   ;;  %s974_s10 = smov (!%p142_p3, %s699_s10), 1  ;;  %vm160_vm1 = vcmask 64512   ;;  %v210_v5 = vlaneseq  ;;  %s844_s28 = smov 40  }
   0xc   : > { %732 = vmatprep.subr.bf16.mxu0 %v830_v0  ;;  %734 = vmatprep.mubr.msk.bf16.mxu0 %vm831_vm0, %v830_v0  ;;  %s704_s11 = sshll.u32 %s974_s10, 3  ;;  %s148_s20 = scalar_lea.vmem %s971_s1, %s974_s10  ;;  %v835_v9 = vmov 0   ;;  %vm216_vm4 = vcmask 55296   ;;  %vm235_vm5 = vcmask 1042432   ;;  %vm236_vm6 = vcmask 1043456  }
   0xd   : > { %738 = vmatprep.subr.bf16.mxu1 %v830_v0  ;;  %740 = vmatprep.mubr.msk.bf16.mxu1 %vm831_vm0, %v830_v0  ;;  %s145_s14 = scalar_lea.vmem %s970_s0, %s704_s11  ;;  %v155_v6 = vld [vmem:[%s148_s20] sm:$0x1]  ;;  %v211_v7 = vshrl.u32 %v210_v5, 7  ;;  %v837_v20 = vmov 65535   ;;  %vm231_vm7 = vcmask 56320   ;;  %s845_s29 = smov 8  }
   0xe   : > { %v154_v1 = vld [vmem:[%s145_s14] sm:$0x7f]  ;;  %vm208_vm2 = vcmp.gt.f32.partialorder %v155_v6, 0.5  ;;  %v237_v21 = vsel %vm235_vm5, 4294967295, %v837_v20  ;;  %s846_s30 = smov 16   ;;  %s847_s3 = smov 24  }
   0xf   : > { %v885_v2 = vpack.c.bf16 %v154_v1, %v154_v1  ;;  %v212_v8 = vsub.s32 0, %v211_v7  ;;  %v209_v10 = vsel %vm208_vm2, 1, %v835_v9  ;;  %v907_v22 = vsel %vm236_vm6, %v237_v21, 0  ;;  %s152_s6 = scalar_lea.vmem %s972_s2, %s704_s11 }
  0x10   : > { %vm631_vm8 = vcmask 130048   ;;  %vm633_vm9 = vcmask 195584   ;;  %vm635_vm10 = vcmask 260096  }
  0x11   : > { %158 = vrot.lane.b32.xlu0 %v885_v2, %s832_s15  ;;  %229 = vrot.lane.b32.xlu1 %v885_v2, %s833_s16  ;;  %v900_v11 = vrot.slane %v209_v10, %v212_v8 }
  0x13   : > { %vm214_vm3 = vcmp.eq.s32.totalorder %v900_v11, 1 }
  0x15   : > { %284 = vrot.lane.b32.xlu1 %v885_v2, %s834_s17 }
  0x83   : > { %v159_v3 = vpop.permute.xlu0 %158  ;;  %v230_v19 = vpop.permute.xlu1 %229 }
  0x84   : > { %v165_v4 = vsel %vm160_vm1, %v159_v3, 0  ;;  %v240_v23 = vand.u32 %v907_v22, %v230_v19 }
  0x85   : > { %733 = vmatpush3.bf16.xpose.msra.mxu0 %v165_v4 }
  0x86   : > { %750 = vmatprep.subr.bf16.mxu0 %v830_v0  ;;  %739 = vmatpush3.bf16.msra.mxu1 %v240_v23 }
  0x87   : > { %744 = vmatprep.subr.bf16.mxu1 %v830_v0  ;;  %v285_v29 = vpop.permute.xlu1 %284 }
  0x88   : > { %v290_v35 = vsel %vm160_vm1, %v285_v29, 0 }
  0x8c   : > { %735 = vmatmul.mubr.msk.bf16.vlgmr.msra.gmra.mxu0 %vm160_vm1, %v885_v2 }
  0x8d   : > { %752 = vmatprep.mubr.msk.bf16.mxu0 %vm831_vm0, %v830_v0 }
 0x14c   : > { %v201_v12 = vpop.f32.mrf.mxu0 }
 0x14d   : > { %v207_v13 = vmul.f32 0.35355338, %v201_v12 }
 0x14e   : > { %v736_v14 = vpop.f32.mrf.mxu0 }
 0x14f   : > { %v215_v15 = vsel %vm214_vm3, %v207_v13, -1e+15 }
 0x150   : > { %v204_v16 = vpop.f32.mrf.mxu0  ;;  %v217_v17 = vsel %vm216_vm4, %v215_v15, -inf }
 0x151   : > { %218 = vmax.xlane.f32.xlu0 %v217_v17 }
 0x152   : > { %v737_v18 = vpop.f32.mrf.mxu0 }
 0x167   : > { %508 = vrot.lane.b32.xlu0 %v885_v2, %s836_s21 }
 0x1da   : > { %v219_v24 = vpop.xlane.xlu0 %218 }
 0x1db   : > { %v220_v25 = vsub.f32 %v215_v15, %v219_v24 }
 0x1dd   : > { %v221_v26 = vmul.f32 1.442695, %v220_v25 }
 0x1de   : > { %v509_v38 = vpop.permute.xlu0 %508 }
 0x1df   : > { %806 = vpow2.f32 %v221_v26  ;;  %v514_v40 = vsel %vm160_vm1, %v509_v38, 0 }
 0x1ec   : > { %v807_v27 = vpop.eup %806 }
 0x1ed   : > { %v223_v28 = vsel %vm216_vm4, %v807_v27, 0.0 }
 0x1ee   : > { %224 = vadd.xlane.f32.xlu1 %v223_v28 }
 0x1ff   : > { %282 = vrot.lane.b32.xlu1 %v885_v2, %s838_s22 }
 0x203   : > { %396 = vrot.lane.b32.xlu1 %v885_v2, %s839_s23 }
 0x207   : > { %394 = vrot.lane.b32.xlu1 %v885_v2, %s840_s24 }
 0x20b   : > { %506 = vrot.lane.b32.xlu1 %v885_v2, %s841_s25 }
 0x277   : > { %v225_v30 = vpop.xlane.xlu1 %224 }
 0x278   : > { %808 = vrcp.f32 %v225_v30 }
 0x27b   : > { %v283_v33 = vpop.permute.xlu1 %282 }
 0x27f   : > { %v397_v36 = vpop.permute.xlu1 %396 }
 0x280   : > { %v402_v37 = vsel %vm160_vm1, %v397_v36, 0 }
 0x283   : > { %v395_v39 = vpop.permute.xlu1 %394 }
 0x285   : > { %v809_v31 = vpop.eup %808 }
 0x286   : > { %v227_v32 = vmul.f32 %v809_v31, %v807_v27 }
 0x287   : > { %v507_v41 = vpop.permute.xlu1 %506 }
 0x288   : > { %v228_v34 = vpack.c.bf16 %v227_v32, %v227_v32 }
 0x28a   : > { %741 = vmatmul.mubr.msk.bf16.vlgmr.msra.gmra.mxu1 %vm231_vm7, %v228_v34 }
 0x28b   : > { %745 = vmatpush3.bf16.xpose.msra.mxu1 %v290_v35  ;;  %746 = vmatprep.mubr.msk.bf16.mxu1 %vm831_vm0, %v830_v0 }
 0x28c   : > { %756 = vmatprep.subr.bf16.mxu1 %v830_v0 }
 0x292   : > { %747 = vmatmul.mubr.msk.bf16.vlgmr.msra.gmra.mxu1 %vm160_vm1, %v283_v33 }
 0x293   : > { %757 = vmatpush3.bf16.xpose.msra.mxu1 %v402_v37  ;;  %758 = vmatprep.mubr.msk.bf16.mxu1 %vm831_vm0, %v830_v0 }
 0x294   : > { %768 = vmatprep.subr.bf16.mxu1 %v830_v0 }
 0x29a   : > { %759 = vmatmul.mubr.msk.bf16.vlgmr.msra.gmra.mxu1 %vm160_vm1, %v395_v39 }
 0x29b   : > { %769 = vmatpush3.bf16.xpose.msra.mxu1 %v514_v40  ;;  %770 = vmatprep.mubr.msk.bf16.mxu1 %vm831_vm0, %v830_v0 }
 0x2a2   : > { %771 = vmatmul.mubr.msk.bf16.vlgmr.msra.gmra.mxu1 %vm160_vm1, %v507_v41 }
 0x34a   : > { %v931_v42 = vpop.f32.mrf.mxu1 }
 0x34c   : > { %v742_v43 = vpop.f32.mrf.mxu1 }
 0x34e   : > { %v279_v44 = vpop.f32.mrf.mxu1 }
 0x350   : > { %v743_v45 = vpop.f32.mrf.mxu1 }
 0x352   : > { %v326_v46 = vpop.f32.mrf.mxu1 }
 0x353   : > { %v332_v47 = vmul.f32 0.35355338, %v326_v46 }
 0x354   : > { %v748_v48 = vpop.f32.mrf.mxu1 }
 0x355   : > { %v333_v49 = vsel %vm214_vm3, %v332_v47, -1e+15 }
 0x356   : > { %v329_v50 = vpop.f32.mrf.mxu1  ;;  %v334_v51 = vsel %vm216_vm4, %v333_v49, -inf }
 0x357   : > { %335 = vmax.xlane.f32.xlu1 %v334_v51 }
 0x358   : > { %v749_v52 = vpop.f32.mrf.mxu1 }
 0x35a   : > { %v438_v53 = vpop.f32.mrf.mxu1 }
 0x35b   : > { %v444_v54 = vmul.f32 0.35355338, %v438_v53 }
 0x35c   : > { %v760_v55 = vpop.f32.mrf.mxu1 }
 0x35d   : > { %v445_v56 = vsel %vm214_vm3, %v444_v54, -1e+15 }
 0x35e   : > { %v441_v57 = vpop.f32.mrf.mxu1  ;;  %v446_v58 = vsel %vm216_vm4, %v445_v56, -inf }
 0x35f   : > { %447 = vmax.xlane.f32.xlu0 %v446_v58 }
 0x360   : > { %v761_v59 = vpop.f32.mrf.mxu1 }
 0x362   : > { %v550_v60 = vpop.f32.mrf.mxu1 }
 0x363   : > { %v556_v61 = vmul.f32 0.35355338, %v550_v60 }
 0x364   : > { %v772_v62 = vpop.f32.mrf.mxu1 }
 0x365   : > { %v557_v63 = vsel %vm214_vm3, %v556_v61, -1e+15 }
 0x366   : > { %v558_v1 = vsel %vm216_vm4, %v557_v63, -inf  ;;  %v553_v3 = vpop.f32.mrf.mxu1 }
 0x367   : > { %559 = vmax.xlane.f32.xlu1 %v558_v1 }
 0x368   : > { %v773_v4 = vpop.f32.mrf.mxu1 }
 0x3e0   : > { %v336_v5 = vpop.xlane.xlu1 %335 }
 0x3e1   : > { %v337_v6 = vsub.f32 %v333_v49, %v336_v5 }
 0x3e3   : > { %v338_v7 = vmul.f32 1.442695, %v337_v6 }
 0x3e5   : > { %810 = vpow2.f32 %v338_v7 }
 0x3e8   : > { %v448_v15 = vpop.xlane.xlu0 %447 }
 0x3e9   : > { %v449_v16 = vsub.f32 %v445_v56, %v448_v15 }
 0x3eb   : > { %v450_v17 = vmul.f32 1.442695, %v449_v16 }
 0x3f0   : > { %v560_v8 = vpop.xlane.xlu1 %559 }
 0x3f1   : > { %v561_v9 = vsub.f32 %v557_v63, %v560_v8 }
 0x3f2   : > { %v811_v10 = vpop.eup %810 }
 0x3f3   : > { %v562_v12 = vmul.f32 1.442695, %v561_v9  ;;  %v340_v13 = vsel %vm216_vm4, %v811_v10, 0.0 }
 0x3f4   : > { %341 = vadd.xlane.f32.xlu1 %v340_v13 }
 0x3f5   : > { %812 = vpow2.f32 %v562_v12 }
 0x3f6   : > { %814 = vpow2.f32 %v450_v17 }
 0x402   : > { %v813_v14 = vpop.eup %812 }
 0x403   : > { %v564_v11 = vsel %vm216_vm4, %v813_v14, 0.0  ;;  %v815_v18 = vpop.eup %814 }
 0x404   : > { %565 = vadd.xlane.f32.xlu0 %v564_v11  ;;  %v452_v19 = vsel %vm216_vm4, %v815_v18, 0.0 }
 0x405   : > { %346 = vrot.lane.b32.xlu1 %v885_v2, %s842_s26 }
 0x41a   : > { %458 = vrot.lane.b32.xlu0 %v885_v2, %s843_s27 }
 0x429   : > { %453 = vadd.xlane.f32.xlu1 %v452_v19 }
 0x43a   : > { %570 = vrot.lane.b32.xlu1 %v885_v2, %s844_s28 }
 0x47d   : > { %v342_v20 = vpop.xlane.xlu1 %341 }
 0x47e   : > { %816 = vrcp.f32 %v342_v20 }
 0x481   : > { %v347_v21 = vpop.permute.xlu1 %346 }
 0x482   : > { %v352_v23 = vand.u32 %v347_v21, %v907_v22 }
 0x484   : > { %751 = vmatpush3.bf16.msra.mxu0 %v352_v23 }
 0x485   : > { %762 = vmatprep.subr.bf16.mxu0 %v830_v0 }
 0x48b   : > { %v817_v24 = vpop.eup %816 }
 0x48c   : > { %v344_v25 = vmul.f32 %v817_v24, %v811_v10 }
 0x48d   : > { %v566_v26 = vpop.xlane.xlu0 %565 }
 0x48e   : > { %v345_v27 = vpack.c.bf16 %v344_v25, %v344_v25 }
 0x490   : > { %753 = vmatmul.mubr.msk.bf16.vlgmr.msra.gmra.mxu0 %vm231_vm7, %v345_v27 }
 0x491   : > { %v459_v28 = vpop.permute.xlu0 %458  ;;  %764 = vmatprep.mubr.msk.bf16.mxu0 %vm831_vm0, %v830_v0 }
 0x492   : > { %v464_v2 = vand.u32 %v459_v28, %v907_v22 }
 0x494   : > { %763 = vmatpush3.bf16.msra.mxu0 %v464_v2 }
 0x495   : > { %774 = vmatprep.subr.bf16.mxu0 %v830_v0 }
 0x4b2   : > { %v454_v29 = vpop.xlane.xlu1 %453 }
 0x4b3   : > { %818 = vrcp.f32 %v454_v29 }
 0x4b4   : > { %820 = vrcp.f32 %v566_v26 }
 0x4b6   : > { %v571_v30 = vpop.permute.xlu1 %570 }
 0x4b7   : > { %v576_v33 = vand.u32 %v571_v30, %v907_v22 }
 0x4c0   : > { %v819_v31 = vpop.eup %818 }
 0x4c1   : > { %v456_v32 = vmul.f32 %v819_v31, %v815_v18  ;;  %v821_v35 = vpop.eup %820 }
 0x4c2   : > { %v568_v36 = vmul.f32 %v821_v35, %v813_v14 }
 0x4c3   : > { %v457_v34 = vpack.c.bf16 %v456_v32, %v456_v32 }
 0x4c4   : > { %v569_v37 = vpack.c.bf16 %v568_v36, %v568_v36 }
 0x4c5   : > { %765 = vmatmul.mubr.msk.bf16.vlgmr.msra.gmra.mxu0 %vm231_vm7, %v457_v34 }
 0x4c6   : > { %775 = vmatpush3.bf16.msra.mxu0 %v576_v33  ;;  %776 = vmatprep.mubr.msk.bf16.mxu0 %vm831_vm0, %v830_v0 }
 0x4cd   : > { %777 = vmatmul.mubr.msk.bf16.vlgmr.msra.gmra.mxu0 %vm231_vm7, %v569_v37 }
 0x550   : > { %v388_v38 = vpop.f32.mrf.mxu0 }
 0x551   : > { %619 = vrot.lane.b32.xlu1 %v388_v38, %s845_s29 }
 0x552   : > { %v754_v39 = vpop.f32.mrf.mxu0 }
 0x554   : > { %v391_v40 = vpop.f32.mrf.mxu0 }
 0x556   : > { %v755_v41 = vpop.f32.mrf.mxu0 }
 0x585   : > { %v500_v43 = vpop.f32.mrf.mxu0 }
 0x586   : > { %623 = vrot.lane.b32.xlu0 %v500_v43, %s846_s30 }
 0x587   : > { %v766_v22 = vpop.f32.mrf.mxu0 }
 0x589   : > { %v503_v44 = vpop.f32.mrf.mxu0 }
 0x58b   : > { %v767_v45 = vpop.f32.mrf.mxu0 }
 0x58d   : > { %v612_v46 = vpop.f32.mrf.mxu0 }
 0x58e   : > { %627 = vrot.lane.b32.xlu1 %v612_v46, %s847_s3 }
 0x58f   : > { %v778_v0 = vpop.f32.mrf.mxu0 }
 0x591   : > { %v615_v47 = vpop.f32.mrf.mxu0 }
 0x593   : > { %v779_v48 = vpop.f32.mrf.mxu0 }
 0x5c3   : > { %v620_v49 = vpop.permute.xlu1 %619 }
 0x5c4   : > { %v630_v51 = vsel %vm160_vm1, %v931_v42, %v620_v49 }
 0x5f8   : > { %v624_v50 = vpop.permute.xlu0 %623 }
 0x5f9   : > { %v632_v52 = vsel %vm631_vm8, %v630_v51, %v624_v50 }
 0x600   : > { %v628_v53 = vpop.permute.xlu1 %627 }
 0x601   : > { %v634_v54 = vsel %vm633_vm9, %v632_v52, %v628_v53 }
 0x602   : > { %636 = vst.msk [vmem:[%s152_s6] sm:$0x7f] %vm635_vm10, %v634_v54 }
 0x603 PF: > { %s12_s9 = sadd.s32 1, %s828_s9  }
 0x604   : > { %p9_p4 = scmp.ge.s32.totalorder %s12_s9, 4  }
 0x606   :  { %11 = sbr.rel (!%p9_p4) target bundleno = 1 (0x1), region = 61 }

// kernel: squeezeformer_encoder.39
= control target key start
LH: loop header
LB: loop body
LE: loop exit
PB: predicated region body
PF: predicated region fallthrough
CT: control target
= control target key end

     0   :  { %v175_v0 = vmov 0.0   ;;  %vm176_vm0 = vmmov 0   ;;  %vm50_vm1 = vcmask 261120   ;;  %s252_s2 = inlined_call_operand.vmem [shape: bf16[32,32], index: 2, kind: input, shape index: {}]   ;;  %s253_s0 = inlined_call_operand.vmem [shape: f32[16,32], index: 0, kind: input, shape index: {}]   ;;  %s254_s3 = inlined_call_operand.vmem [shape: f32[1,32], index: 3, kind: input, shape index: {}]   ;;  %s255_s1 = inlined_call_operand.vmem [shape: f32[16,32], index: 1, kind: input, shape index: {}]   ;;  %s256_s4 = inlined_call_operand.vmem [shape: f32[1,32], index: 4, kind: input, shape index: {}]   ;;  %s257_s5 = inlined_call_operand.vmem [shape: f32[1,32], index: 5, kind: input, shape index: {}]   ;;  %s258_s6 = inlined_call_operand.vmem [shape: f32[16,32], index: 6, kind: output, shape index: {}]  }
   0x1   :  { %159 = vmatprep.subr.bf16.mxu0 %v175_v0  ;;  %v169_v1 = vld [vmem:[%s252_s2 + $0x8] sm:$0xff]   ;;  %163 = vmatprep.mubr.msk.bf16.mxu0 %vm176_vm0, %v175_v0  ;;  %v170_v2 = vld [vmem:[%s252_s2] sm:$0xff]  }
   0x2   :  { %160 = vmatpush3.bf16.msra.mxu0 %v169_v1  ;;  %v24_v3 = vld [vmem:[%s253_s0] sm:$0xff]  ;;  %v25_v4 = vld [vmem:[%s253_s0 + $0x8] sm:$0xff] }
   0x3   :  { %161 = vmatprep.subr.bf16.mxu0 %v175_v0  ;;  %v26_v5 = vpack.c.bf16 %v25_v4, %v24_v3  ;;  %v150_v6 = vld [vmem:[%s254_s3] ss:$0 sm:$0xff]  ;;  %v96_v13 = vld [vmem:[%s255_s1 + $0x8] sm:$0xff] }
   0x4   :  { %v95_v8 = vld [vmem:[%s255_s1] sm:$0xff] }
   0x5   :  { %v154_v36 = vld [vmem:[%s256_s4] ss:$0 sm:$0xff] }
   0x6   :  { %162 = vmatpush3.bf16.msra.mxu0 %v170_v2  ;;  %v155_v38 = vld [vmem:[%s257_s5] ss:$0 sm:$0xff] }
   0x9   :  { %164 = vmatmul.mubr.msk.bf16.vlgmr.msra.gmra.mxu0 %vm50_vm1, %v26_v5 }
  0xc9   :  { %v88_v7 = vpop.f32.mrf.mxu0 }
  0xca   :  { %v89_v9 = vadd.f32 %v150_v6, %v88_v7 }
  0xcb   :  { %v165_v10 = vpop.f32.mrf.mxu0 }
  0xcc   :  { %v97_v11 = vadd.f32 %v95_v8, %v89_v9 }
  0xcd   :  { %v91_v12 = vpop.f32.mrf.mxu0 }
  0xce   :  { %v92_v14 = vadd.f32 %v150_v6, %v91_v12  ;;  %v99_v15 = vsel %vm50_vm1, %v97_v11, 0.0 }
  0xcf   :  { %100 = vadd.xlane.f32.xlu0 %v99_v15  ;;  %v166_v16 = vpop.f32.mrf.mxu0 }
  0xd0   :  { %v98_v17 = vadd.f32 %v96_v13, %v92_v14 }
  0xd2   :  { %v102_v18 = vsel %vm50_vm1, %v98_v17, 0.0 }
  0xd3   :  { %103 = vadd.xlane.f32.xlu0 %v102_v18 }
 0x158   :  { %v101_v19 = vpop.xlane.xlu0 %100 }
 0x159   :  { %v106_v20 = vmul.f32 0.03125, %v101_v19 }
 0x15b   :  { %v108_v21 = vsub.f32 %v97_v11, %v106_v20 }
 0x15c   :  { %v104_v22 = vpop.xlane.xlu0 %103 }
 0x15d   :  { %v107_v23 = vmul.f32 0.03125, %v104_v22  ;;  %v110_v24 = vmul.f32 %v108_v21, %v108_v21 }
 0x15f   :  { %v109_v25 = vsub.f32 %v98_v17, %v107_v23  ;;  %v112_v26 = vsel %vm50_vm1, %v110_v24, 0.0 }
 0x160   :  { %113 = vadd.xlane.f32.xlu1 %v112_v26 }
 0x161   :  { %v111_v27 = vmul.f32 %v109_v25, %v109_v25 }
 0x163   :  { %v115_v28 = vsel %vm50_vm1, %v111_v27, 0.0 }
 0x164   :  { %116 = vadd.xlane.f32.xlu1 %v115_v28 }
 0x1e9   :  { %v114_v29 = vpop.xlane.xlu1 %113 }
 0x1ea   :  { %v118_v30 = vmul.f32 0.03125, %v114_v29 }
 0x1ec   :  { %v120_v31 = vadd.f32 1e-05, %v118_v30 }
 0x1ed   :  { %v117_v32 = vpop.xlane.xlu1 %116 }
 0x1ee   :  { %171 = vrsqrt.f32 %v120_v31  ;;  %v119_v33 = vmul.f32 0.03125, %v117_v32 }
 0x1f0   :  { %v121_v34 = vadd.f32 1e-05, %v119_v33 }
 0x1f2   :  { %173 = vrsqrt.f32 %v121_v34 }
 0x1fb   :  { %v172_v35 = vpop.eup %171 }
 0x1fc   :  { %v124_v37 = vmul.f32 %v172_v35, %v108_v21 }
 0x1fe   :  { %v133_v39 = vmul.f32 %v154_v36, %v124_v37 }
 0x1ff   :  { %v174_v40 = vpop.eup %173 }
 0x200   :  { %v142_v41 = vadd.f32 %v155_v38, %v133_v39  ;;  %v125_v42 = vmul.f32 %v174_v40, %v109_v25 }
 0x202   :  { %144 = vst.msk [vmem:[%s258_s6] sm:$0xff] %vm50_vm1, %v142_v41  ;;  %v134_v43 = vmul.f32 %v154_v36, %v125_v42 }
 0x204   :  { %v143_v44 = vadd.f32 %v155_v38, %v134_v43 }
 0x206   :  { %145 = vst.msk [vmem:[%s258_s6 + $0x8] sm:$0xff] %vm50_vm1, %v143_v44 }

// kernel: squeezeformer_encoder.40
= control target key start
LH: loop header
LB: loop body
LE: loop exit
PB: predicated region body
PF: predicated region fallthrough
CT: control target
= control target key end

     0   :  { %v312_v0 = vmov 0.0   ;;  %vm313_vm0 = vmmov 0   ;;  %vm53_vm1 = vcmask 261120   ;;  %vm152_vm2 = vcmask 523264   ;;  %s403_s1 = inlined_call_operand.vmem [shape: bf16[32,64], index: 1, kind: input, shape index: {}]   ;;  %s404_s0 = inlined_call_operand.vmem [shape: f32[16,32], index: 0, kind: input, shape index: {}]   ;;  %s405_s3 = inlined_call_operand.vmem [shape: bf16[64,32], index: 3, kind: input, shape index: {}]   ;;  %s406_s2 = inlined_call_operand.vmem [shape: f32[1,64], index: 2, kind: input, shape index: {}]   ;;  %s407_s4 = inlined_call_operand.vmem [shape: f32[1,32], index: 4, kind: input, shape index: {}]   ;;  %s408_s5 = inlined_call_operand.vmem [shape: f32[1,32], index: 5, kind: input, shape index: {}]   ;;  %s409_s6 = inlined_call_operand.vmem [shape: f32[1,32], index: 6, kind: input, shape index: {}]   ;;  %s410_s7 = inlined_call_operand.vmem [shape: f32[16,32], index: 7, kind: output, shape index: {}]  }
   0x1   :  { %272 = vmatprep.subr.bf16.mxu0 %v312_v0  ;;  %v294_v1 = vld [vmem:[%s403_s1 + $0x8] sm:$0xff]   ;;  %276 = vmatprep.mubr.msk.bf16.mxu0 %vm313_vm0, %v312_v0  ;;  %v295_v2 = vld [vmem:[%s403_s1] sm:$0xff]   ;;  %v296_v6 = vld [vmem:[%s405_s3 + $0x18] sm:$0xff]  }
   0x2   :  { %280 = vmatprep.subr.bf16.mxu1 %v312_v0  ;;  %288 = vmatprep.mubr.msk.bf16.mxu1 %vm313_vm0, %v312_v0  ;;  %v27_v3 = vld [vmem:[%s404_s0] sm:$0xff]  ;;  %v28_v4 = vld [vmem:[%s404_s0 + $0x8] sm:$0xff]  ;;  %v297_v7 = vld [vmem:[%s405_s3 + $0x10] sm:$0xff]  }
   0x3   :  { %273 = vmatpush3.bf16.msra.mxu0 %v294_v1  ;;  %v29_v5 = vpack.c.bf16 %v28_v4, %v27_v3  ;;  %281 = vmatpush3.bf16.msra.mxu1 %v296_v6  ;;  %v298_v8 = vld [vmem:[%s405_s3 + $0x8] sm:$0xff]   ;;  %v299_v9 = vld [vmem:[%s405_s3] sm:$0xff]  }
   0x4   :  { %274 = vmatprep.subr.bf16.mxu0 %v312_v0  ;;  %282 = vmatprep.subr.bf16.mxu1 %v312_v0  ;;  %v250_v10 = vld [vmem:[%s406_s2] ss:$0 sm:$0xff] }
   0x5   :  { %v256_v28 = vld [vmem:[%s407_s4] ss:$0 sm:$0xff] }
   0x6   :  { %v262_v56 = vld [vmem:[%s408_s5] ss:$0 sm:$0xff] }
   0x7   :  { %275 = vmatpush3.bf16.msra.mxu0 %v295_v2  ;;  %283 = vmatpush3.bf16.msra.mxu1 %v297_v7  ;;  %v263_v58 = vld [vmem:[%s409_s6] ss:$0 sm:$0xff] }
   0x8   :  { %284 = vmatprep.subr.bf16.mxu1 %v312_v0 }
   0xa   :  { %277 = vmatmul.mubr.msk.bf16.vlgmr.msra.gmra.mxu0 %vm53_vm1, %v29_v5 }
   0xb   :  { %285 = vmatpush3.bf16.msra.mxu1 %v298_v8 }
   0xc   :  { %286 = vmatprep.subr.bf16.mxu1 %v312_v0 }
   0xf   :  { %287 = vmatpush3.bf16.msra.mxu1 %v299_v9 }
  0xca   :  { %v91_v11 = vpop.f32.mrf.mxu0 }
  0xcb   :  { %v92_v12 = vadd.f32 %v250_v10, %v91_v11 }
  0xcc   :  { %v278_v13 = vpop.f32.mrf.mxu0 }
  0xcd   :  { %v254_v14 = vmul.f32 -1.442695, %v92_v12 }
  0xce   :  { %v94_v15 = vpop.f32.mrf.mxu0 }
  0xcf   :  { %300 = vpow2.f32 %v254_v14  ;;  %v95_v16 = vadd.f32 %v250_v10, %v94_v15 }
  0xd0   :  { %v279_v17 = vpop.f32.mrf.mxu0 }
  0xd1   :  { %v255_v18 = vmul.f32 -1.442695, %v95_v16 }
  0xd3   :  { %302 = vpow2.f32 %v255_v18 }
  0xdc   :  { %v301_v19 = vpop.eup %300 }
  0xdd   :  { %v104_v20 = vadd.f32 1.0, %v301_v19 }
  0xdf   :  { %304 = vrcp.f32 %v104_v20 }
  0xe0   :  { %v303_v21 = vpop.eup %302 }
  0xe1   :  { %v105_v22 = vadd.f32 1.0, %v303_v21 }
  0xe3   :  { %306 = vrcp.f32 %v105_v22 }
  0xec   :  { %v305_v23 = vpop.eup %304 }
  0xed   :  { %v110_v25 = vmul.f32 %v305_v23, %v92_v12 }
  0xf0   :  { %v307_v24 = vpop.eup %306 }
  0xf1   :  { %v111_v26 = vmul.f32 %v307_v24, %v95_v16 }
  0xf3   :  { %v112_v27 = vpack.c.bf16 %v111_v26, %v110_v25 }
  0xf5   :  { %289 = vmatmul.mubr.msk.bf16.vlgmr.msra.gmra.mxu1 %vm152_vm2, %v112_v27 }
 0x1b5   :  { %v190_v29 = vpop.f32.mrf.mxu1 }
 0x1b6   :  { %v191_v30 = vadd.f32 %v256_v28, %v190_v29 }
 0x1b7   :  { %v290_v31 = vpop.f32.mrf.mxu1 }
 0x1b8   :  { %v197_v32 = vadd.f32 %v191_v30, %v27_v3 }
 0x1b9   :  { %v193_v33 = vpop.f32.mrf.mxu1 }
 0x1ba   :  { %v194_v34 = vadd.f32 %v256_v28, %v193_v33  ;;  %v199_v35 = vsel %vm53_vm1, %v197_v32, 0.0 }
 0x1bb   :  { %200 = vadd.xlane.f32.xlu0 %v199_v35  ;;  %v291_v36 = vpop.f32.mrf.mxu1 }
 0x1bc   :  { %v198_v37 = vadd.f32 %v194_v34, %v28_v4 }
 0x1be   :  { %v202_v38 = vsel %vm53_vm1, %v198_v37, 0.0 }
 0x1bf   :  { %203 = vadd.xlane.f32.xlu0 %v202_v38 }
 0x244   :  { %v201_v39 = vpop.xlane.xlu0 %200 }
 0x245   :  { %v206_v40 = vmul.f32 0.03125, %v201_v39 }
 0x247   :  { %v208_v41 = vsub.f32 %v197_v32, %v206_v40 }
 0x248   :  { %v204_v42 = vpop.xlane.xlu0 %203 }
 0x249   :  { %v207_v43 = vmul.f32 0.03125, %v204_v42  ;;  %v210_v44 = vmul.f32 %v208_v41, %v208_v41 }
 0x24b   :  { %v209_v45 = vsub.f32 %v198_v37, %v207_v43  ;;  %v212_v46 = vsel %vm53_vm1, %v210_v44, 0.0 }
 0x24c   :  { %213 = vadd.xlane.f32.xlu1 %v212_v46 }
 0x24d   :  { %v211_v47 = vmul.f32 %v209_v45, %v209_v45 }
 0x24f   :  { %v215_v48 = vsel %vm53_vm1, %v211_v47, 0.0 }
 0x250   :  { %216 = vadd.xlane.f32.xlu1 %v215_v48 }
 0x2d5   :  { %v214_v49 = vpop.xlane.xlu1 %213 }
 0x2d6   :  { %v218_v50 = vmul.f32 0.03125, %v214_v49 }
 0x2d8   :  { %v220_v51 = vadd.f32 1e-05, %v218_v50 }
 0x2d9   :  { %v217_v52 = vpop.xlane.xlu1 %216 }
 0x2da   :  { %308 = vrsqrt.f32 %v220_v51  ;;  %v219_v53 = vmul.f32 0.03125, %v217_v52 }
 0x2dc   :  { %v221_v54 = vadd.f32 1e-05, %v219_v53 }
 0x2de   :  { %310 = vrsqrt.f32 %v221_v54 }
 0x2e7   :  { %v309_v55 = vpop.eup %308 }
 0x2e8   :  { %v224_v57 = vmul.f32 %v309_v55, %v208_v41 }
 0x2ea   :  { %v233_v59 = vmul.f32 %v262_v56, %v224_v57 }
 0x2eb   :  { %v311_v60 = vpop.eup %310 }
 0x2ec   :  { %v242_v61 = vadd.f32 %v263_v58, %v233_v59  ;;  %v225_v62 = vmul.f32 %v311_v60, %v209_v45 }
 0x2ee   :  { %244 = vst.msk [vmem:[%s410_s7] sm:$0xff] %vm53_vm1, %v242_v61  ;;  %v234_v63 = vmul.f32 %v262_v56, %v225_v62 }
 0x2f0   :  { %v243_v0 = vadd.f32 %v263_v58, %v234_v63 }
 0x2f2   :  { %245 = vst.msk [vmem:[%s410_s7 + $0x8] sm:$0xff] %vm53_vm1, %v243_v0 }

// kernel: squeezeformer_encoder.41
= control target key start
LH: loop header
LB: loop body
LE: loop exit
PB: predicated region body
PF: predicated region fallthrough
CT: control target
= control target key end

     0   :  { %s823_s17 = smov 0   ;;  %s895_s0 = inlined_call_operand.vmem [shape: f32[2,7,32], index: 0, kind: input, shape index: {}]   ;;  %s896_s1 = inlined_call_operand.vmem [shape: bf16[32,32], index: 1, kind: input, shape index: {}]   ;;  %s897_s2 = inlined_call_operand.vmem [shape: f32[1,32], index: 2, kind: input, shape index: {}]   ;;  %s898_s3 = inlined_call_operand.vmem [shape: f32[5,32], index: 3, kind: input, shape index: {}]   ;;  %s899_s4 = inlined_call_operand.vmem [shape: f32[1,32], index: 4, kind: input, shape index: {}]   ;;  %s900_s5 = inlined_call_operand.vmem [shape: f32[1,32], index: 5, kind: input, shape index: {}]   ;;  %s901_s6 = inlined_call_operand.vmem [shape: f32[1,32], index: 6, kind: input, shape index: {}]   ;;  %s902_s7 = inlined_call_operand.vmem [shape: bf16[32,32], index: 7, kind: input, shape index: {}]   ;;  %s903_s8 = inlined_call_operand.vmem [shape: f32[1,32], index: 8, kind: input, shape index: {}]   ;;  %s904_s9 = inlined_call_operand.vmem [shape: f32[1,32], index: 9, kind: input, shape index: {}]   ;;  %s905_s10 = inlined_call_operand.vmem [shape: f32[1,32], index: 10, kind: input, shape index: {}]   ;;  %s906_s11 = inlined_call_operand.vmem [shape: f32[2,7,32], index: 11, kind: output, shape index: {}]  }
   0x1 LB: > { %s683_s18 = sadd.s32 4294967295, %s759_s17   ;;  %p687_p0 = scmp.ge.s32.totalorder %s759_s17, 1  ;;  %s759_s17 = sphi %s823_s17, %s21_s17  }
   0x2   : > { %p336_p1 = scmp.lt.s32.totalorder %s759_s17, 3 }
   0x4   : > { %p337_p2 = pnand %p687_p0, %p336_p1 }
   0x5   : > { %p374_p3 = scmp.lt.s32.totalorder (!%p337_p2), %s683_s18, 1 }
   0x6   : > { %340 = sbr.rel (%p337_p2) target bundleno = 816 (0x330), region = 64 }
   0xb   : > { %v739_v0 = vld [vmem:[%s896_s1 + $0x8] sm:$0xff]   ;;  %v761_v1 = vmov 0.0   ;;  %v740_v2 = vld [vmem:[%s896_s1] sm:$0xff]   ;;  %vm762_vm0 = vmmov 0   ;;  %vm408_vm1 = vcmask 261120   ;;  %s908_s18 = smov (!%p374_p3, %s683_s18), 1  ;;  %v466_v16 = vlaneseq }
   0xc   : > { %713 = vmatprep.subr.bf16.mxu0 %v761_v1  ;;  %721 = vmatprep.subr.bf16.mxu1 %v761_v1  ;;  %459 = vst.msk [vmem:[#allocation2] sm:$0xff] %vm408_vm1, %v761_v1  ;;  %s688_s23 = sshll.u32 %s908_s18, 3  ;;  %vm460_vm2 = vcmask 256000   ;;  %v741_v5 = vld [vmem:[%s902_s7 + $0x8] sm:$0xff]   ;;  %v742_v6 = vld [vmem:[%s902_s7] sm:$0xff]   ;;  %vm462_vm3 = vcmask 260096  }
   0xd   : > { %714 = vmatpush3.bf16.msra.mxu0 %v739_v0  ;;  %717 = vmatprep.mubr.msk.bf16.mxu0 %vm762_vm0, %v761_v1  ;;  %s377_s26 = scalar_lea.vmem %s895_s0, %s688_s23  ;;  %461 = vst.msk [vmem:[#allocation2 + $0x8] sm:$0x7] %vm460_vm2, %v761_v1  ;;  %v690_v7 = vld [vmem:[%s897_s2] ss:$0 sm:$0xff]  ;;  %v467_v17 = vshrl.u32 %v466_v16, 7  ;;  %s381_s14 = scalar_lea.vmem %s906_s11, %s688_s23 }
   0xe   : > { %715 = vmatprep.subr.bf16.mxu0 %v761_v1  ;;  %725 = vmatprep.mubr.msk.bf16.mxu1 %vm762_vm0, %v761_v1  ;;  %v846_v3 = vld [vmem:[%s377_s26] sm:$0x7f] }
   0xf   : > { %v384_v4 = vpack.c.bf16 %v846_v3, %v846_v3  ;;  %722 = vmatpush3.bf16.msra.mxu1 %v741_v5  ;;  %v468_v20 = vsub.s32 0, %v467_v17  ;;  %v475_v21 = vsub.s32 1, %v467_v17  ;;  %v464_v22 = vld [vmem:[%s898_s3] sm:$0x1f]  ;;  %v482_v23 = vsub.s32 2, %v467_v17 }
  0x10   : > { %723 = vmatprep.subr.bf16.mxu1 %v761_v1  ;;  %v489_v26 = vsub.s32 3, %v467_v17  ;;  %v496_v28 = vsub.s32 4, %v467_v17  ;;  %v695_v44 = vld [vmem:[%s899_s4] ss:$0 sm:$0xff] }
  0x11   : > { %716 = vmatpush3.bf16.msra.mxu0 %v740_v2  ;;  %v469_v24 = vrot.slane %v464_v22, %v468_v20  ;;  %v476_v25 = vrot.slane %v464_v22, %v475_v21  ;;  %v483_v27 = vrot.slane %v464_v22, %v482_v23  ;;  %v696_v46 = vld [vmem:[%s900_s5] ss:$0 sm:$0xff] }
  0x12   : > { %v490_v34 = vrot.slane %v464_v22, %v489_v26  ;;  %v497_v38 = vrot.slane %v464_v22, %v496_v28  ;;  %v697_v48 = vld [vmem:[%s901_s6] ss:$0 sm:$0xff] }
  0x13   : > { %724 = vmatpush3.bf16.msra.mxu1 %v742_v6  ;;  %v699_v57 = vld [vmem:[%s903_s8] ss:$0 sm:$0xff] }
  0x14   : > { %718 = vmatmul.mubr.msk.bf16.vlgmr.msra.gmra.mxu0 %vm408_vm1, %v384_v4 }
  0xd4   : > { %v446_v8 = vpop.f32.mrf.mxu0 }
  0xd5   : > { %v447_v9 = vadd.f32 %v690_v7, %v446_v8 }
  0xd6   : > { %v719_v10 = vpop.f32.mrf.mxu0 }
  0xd7   : > { %v694_v11 = vmul.f32 -1.442695, %v447_v9 }
  0xd8   : > { %v449_v12 = vpop.f32.mrf.mxu0 }
  0xd9   : > { %743 = vpow2.f32 %v694_v11  ;;  %v704_v12 = vld [vmem:[%s905_s10] ss:$0 sm:$0xff] }
  0xda   : > { %v720_v13 = vpop.f32.mrf.mxu0 }
  0xe6   : > { %v744_v14 = vpop.eup %743 }
  0xe7   : > { %v455_v15 = vadd.f32 1.0, %v744_v14 }
  0xe9   : > { %745 = vrcp.f32 %v455_v15 }
  0xf6   : > { %v746_v18 = vpop.eup %745 }
  0xf7   : > { %v458_v19 = vmul.f32 %v746_v18, %v447_v9 }
  0xf9   : > { %463 = vst.msk [vmem:[#allocation2 + $0x2] sm:$0x7f] %vm462_vm3, %v458_v19 }
 0x100   : > { %v465_v29 = vld [vmem:[#allocation2] sm:$0x7f] }
 0x101   : > { %v472_v30 = vld [vmem:[#allocation2 + $0x1] sm:$0x7f]  ;;  %v470_v32 = vmul.f32 %v469_v24, %v465_v29 }
 0x102   : > { %v479_v31 = vld [vmem:[#allocation2 + $0x2] sm:$0x7f]  ;;  %v477_v33 = vmul.f32 %v476_v25, %v472_v30 }
 0x103   : > { %v486_v35 = vld [vmem:[#allocation2 + $0x3] sm:$0x7f]  ;;  %v484_v37 = vmul.f32 %v483_v27, %v479_v31 }
 0x104   : > { %v478_v36 = vadd.f32 %v477_v33, %v470_v32  ;;  %v493_v39 = vld [vmem:[#allocation2 + $0x4] sm:$0x7f]  ;;  %v491_v41 = vmul.f32 %v490_v34, %v486_v35 }
 0x105   : > { %v498_v43 = vmul.f32 %v497_v38, %v493_v39 }
 0x106   : > { %v485_v40 = vadd.f32 %v484_v37, %v478_v36 }
 0x108   : > { %v492_v42 = vadd.f32 %v491_v41, %v485_v40 }
 0x10a   : > { %v499_v45 = vadd.f32 %v498_v43, %v492_v42 }
 0x10c   : > { %v507_v47 = vadd.f32 %v695_v44, %v499_v45 }
 0x10e   : > { %v515_v49 = vmul.f32 %v696_v46, %v507_v47 }
 0x110   : > { %v523_v50 = vadd.f32 %v697_v48, %v515_v49 }
 0x112   : > { %v698_v51 = vmul.f32 -1.442695, %v523_v50 }
 0x114   : > { %747 = vpow2.f32 %v698_v51 }
 0x121   : > { %v748_v52 = vpop.eup %747 }
 0x122   : > { %v527_v53 = vadd.f32 1.0, %v748_v52 }
 0x124   : > { %749 = vrcp.f32 %v527_v53 }
 0x131   : > { %v750_v54 = vpop.eup %749 }
 0x132   : > { %v530_v55 = vmul.f32 %v750_v54, %v523_v50 }
 0x134   : > { %v531_v56 = vpack.c.bf16 %v530_v55, %v530_v55 }
 0x136   : > { %726 = vmatmul.mubr.msk.bf16.vlgmr.msra.gmra.mxu1 %vm408_vm1, %v531_v56 }
 0x1f6   : > { %v592_v58 = vpop.f32.mrf.mxu1 }
 0x1f7   : > { %v593_v59 = vadd.f32 %v699_v57, %v592_v58 }
 0x1f8   : > { %v727_v60 = vpop.f32.mrf.mxu1 }
 0x1f9   : > { %v598_v61 = vadd.f32 %v593_v59, %v846_v3  ;;  %v703_v3 = vld [vmem:[%s904_s9] ss:$0 sm:$0xff] }
 0x1fa   : > { %v595_v62 = vpop.f32.mrf.mxu1 }
 0x1fb   : > { %v599_v63 = vsel %vm462_vm3, %v598_v61, 0.0 }
 0x1fc   : > { %600 = vadd.xlane.f32.xlu0 %v599_v63  ;;  %v728_v0 = vpop.f32.mrf.mxu1 }
 0x285   : > { %v601_v1 = vpop.xlane.xlu0 %600 }
 0x286   : > { %v603_v2 = vmul.f32 0.03125, %v601_v1 }
 0x288   : > { %v604_v4 = vsub.f32 %v598_v61, %v603_v2 }
 0x28a   : > { %v605_v5 = vmul.f32 %v604_v4, %v604_v4 }
 0x28c   : > { %v606_v6 = vsel %vm462_vm3, %v605_v5, 0.0 }
 0x28d   : > { %607 = vadd.xlane.f32.xlu0 %v606_v6 }
 0x316   : > { %v608_v7 = vpop.xlane.xlu0 %607 }
 0x317   : > { %v609_v8 = vmul.f32 0.03125, %v608_v7 }
 0x319   : > { %v610_v9 = vadd.f32 1e-05, %v609_v8 }
 0x31b   : > { %751 = vrsqrt.f32 %v610_v9 }
 0x328   : > { %v752_v10 = vpop.eup %751 }
 0x329   : > { %v612_v11 = vmul.f32 %v752_v10, %v604_v4 }
 0x32b   : > { %v620_v13 = vmul.f32 %v703_v3, %v612_v11 }
 0x32d   : > { %v628_v14 = vadd.f32 %v704_v12, %v620_v13 }
 0x32f   : > { %629 = vst.msk [vmem:[%s381_s14] sm:$0x7f] %vm462_vm3, %v628_v14 }
 0x330 PF: > { %s21_s17 = sadd.s32 1, %s759_s17  }
 0x331   : > { %p18_p4 = scmp.ge.s32.totalorder %s21_s17, 4  }
 0x333   :  { %20 = sbr.rel (!%p18_p4) target bundleno = 1 (0x1), region = 94 }

// kernel: squeezeformer_encoder.49
= control target key start
LH: loop header
LB: loop body
LE: loop exit
PB: predicated region body
PF: predicated region fallthrough
CT: control target
= control target key end

     0   :  { %vm76_vm0 = vcmask 785408   ;;  %vm132_vm1 = vcmask 261120   ;;  %s247_s1 = inlined_call_operand.vmem [shape: bf16[96,32], index: 1, kind: input, shape index: {}]   ;;  %s248_s0 = inlined_call_operand.vmem [shape: f32[32,96], index: 0, kind: input, shape index: {}]   ;;  %s249_s2 = inlined_call_operand.vmem [shape: f32[1,32], index: 2, kind: input, shape index: {}]   ;;  %s250_s3 = inlined_call_operand.vmem [shape: f32[32,32], index: 3, kind: output, shape index: {}]  }
   0x1   :  { %v174_v0 = vld [vmem:[%s247_s1 + $0x28] sm:$0xff]   ;;  %v175_v1 = vld [vmem:[%s247_s1 + $0x20] sm:$0xff]   ;;  %v176_v2 = vld [vmem:[%s247_s1 + $0x18] sm:$0xff]  }
   0x2   :  { %158 = vmatprep.subr.bf16.mxu0 %v174_v0  ;;  %v15_v3 = vld [vmem:[%s248_s0] sm:$0xff]  ;;  %v16_v4 = vld [vmem:[%s248_s0 + $0x8] sm:$0xff]  ;;  %v177_v6 = vld [vmem:[%s247_s1 + $0x10] sm:$0xff]  }
   0x3   :  { %159 = vmatpush3.bf16.msra.mxu0 %v174_v0  ;;  %v19_v5 = vpack.c.bf16 %v16_v4, %v15_v3  ;;  %v178_v7 = vld [vmem:[%s247_s1 + $0x8] sm:$0xff]   ;;  %v179_v8 = vld [vmem:[%s247_s1] sm:$0xff]   ;;  %v17_v9 = vld [vmem:[%s248_s0 + $0x10] sm:$0xff] }
   0x4   :  { %160 = vmatprep.subr.bf16.mxu0 %v175_v1  ;;  %v18_v10 = vld [vmem:[%s248_s0 + $0x18] sm:$0xff]  ;;  %v141_v12 = vld [vmem:[%s249_s2] ss:$0 sm:$0xff] }
   0x5   :  { %170 = vmatprep.mubr.msk.bf16.mxu0 %vm76_vm0, %v19_v5  ;;  %v20_v11 = vpack.c.bf16 %v18_v10, %v17_v9 }
   0x7   :  { %161 = vmatpush3.bf16.msra.mxu0 %v175_v1 }
   0x8   :  { %162 = vmatprep.subr.bf16.mxu0 %v176_v2 }
   0xb   :  { %163 = vmatpush3.bf16.msra.mxu0 %v176_v2 }
   0xc   :  { %164 = vmatprep.subr.bf16.mxu0 %v177_v6 }
   0xf   :  { %165 = vmatpush3.bf16.msra.mxu0 %v177_v6 }
  0x10   :  { %166 = vmatprep.subr.bf16.mxu0 %v178_v7 }
  0x13   :  { %167 = vmatpush3.bf16.msra.mxu0 %v178_v7 }
  0x14   :  { %168 = vmatprep.subr.bf16.mxu0 %v179_v8 }
  0x17   :  { %169 = vmatpush3.bf16.msra.mxu0 %v179_v8 }
  0x1a   :  { %171 = vmatmul.mubr.msk.bf16.vlgmr.msra.gmra.mxu0 %vm76_vm0, %v20_v11 }
  0xda   :  { %v172_v13 = vpop.f32.mrf.mxu0 }
  0xdb   :  { %v126_v14 = vadd.f32 %v172_v13, %v141_v12 }
  0xdc   :  { %v117_v15 = vpop.f32.mrf.mxu0 }
  0xdd   :  { %135 = vst.msk [vmem:[%s250_s3 + $0x10] sm:$0xff] %vm132_vm1, %v126_v14  ;;  %v118_v16 = vadd.f32 %v141_v12, %v117_v15 }
  0xde   :  { %v173_v17 = vpop.f32.mrf.mxu0 }
  0xdf   :  { %133 = vst.msk [vmem:[%s250_s3] sm:$0xff] %vm132_vm1, %v118_v16  ;;  %v129_v18 = vadd.f32 %v173_v17, %v141_v12 }
  0xe0   :  { %v120_v19 = vpop.f32.mrf.mxu0 }
  0xe1   :  { %136 = vst.msk [vmem:[%s250_s3 + $0x18] sm:$0xff] %vm132_vm1, %v129_v18  ;;  %v121_v20 = vadd.f32 %v141_v12, %v120_v19 }
  0xe3   :  { %134 = vst.msk [vmem:[%s250_s3 + $0x8] sm:$0xff] %vm132_vm1, %v121_v20 }

</bundles_post_ra>
